<compile_context>
chip_gen: v6e
topology: v6e:2x2x1
jax: 0.10.0
libtpu: 0.0.40
codegen_flags: <defaults>
</compile_context>

<pallas_src>
import functools

import jax
import jax.numpy as jnp
import numpy as np
from jax.experimental import pallas as pl
from jax.experimental.pallas import tpu as pltpu

NEG_SLOPE = 0.02


def _round_up(x, m):
  return ((x + m - 1) // m) * m


# ------------------------------ fused kernel ------------------------------- #
def _fused_kernel(a_ref, mask_ref, wct_ref, w3_ref, b_ref, o_ref, *, R, lens):
  """All 5 conv layers fused; one batch element per grid step.

  a_ref    : (1, Cp, L1p) f32   zero-prefixed, dilated+padded input plane
  mask_ref : (4, Cp, Lm)  f32   per-layer pre-offset validity masks
  wct_ref  : (4, Cp, 4*Cp) bf16 ConvT weight, grouped per kh (cols = kw,cin)
  w3_ref   : (4, 3, Cp, 3*Cp) bf16  u1/c1/c2/c3 weights, grouped per kh
  b_ref    : (5, Cp, 1)  f32    biases (ct, u1, c1, c2, c3)
  o_ref    : (1, Cp, L6) f32    final slab; pixel (oh, ow) at index oh*R + ow
  """
  L2, L3, L4, L5, L6 = lens

  def layer(a, w_groups, bias, out_len, act, mask):
    K = len(w_groups)
    acc = jnp.zeros((a.shape[0], out_len), jnp.float32)
    for kh, wg in enumerate(w_groups):
      # K lane-shifted taps of the f32 activation, stacked along sublanes
      # (whole 8-row pieces), then cast once to bf16 for the MXU.
      grp = jnp.concatenate(
          [a[:, kh * R + kw: kh * R + kw + out_len] for kw in range(K)],
          axis=0).astype(jnp.bfloat16)                       # (K*Cp, out_len)
      acc = acc + jnp.dot(wg, grp,
                          preferred_element_type=jnp.float32)  # (Cp, out_len)
    acc = acc + bias                                           # f32 epilogue
    if act:
      acc = jnp.where(acc >= 0.0, acc, NEG_SLOPE * acc)        # LeakyReLU(0.02)
    if mask is not None:
      acc = acc * mask                                         # zero pad ring
    return acc

  a = a_ref[0]                                                 # (Cp, L1p) f32
  # up_conv: ConvTranspose2d(4,2,1) (as stride-1 conv on dilated input) + LReLU
  a = layer(a, [wct_ref[k] for k in range(4)], b_ref[0], L2, True,
            mask_ref[0, :, :L2])
  #          Conv2d(mch, och, 3, 1, 1) + LReLU
  a = layer(a, [w3_ref[0, k] for k in range(3)], b_ref[1], L3, True,
            mask_ref[1, :, :L3])
  # conv: Conv2d(och,mch)+LReLU, Conv2d(mch,mch)+LReLU, Conv2d(mch,och)
  a = layer(a, [w3_ref[1, k] for k in range(3)], b_ref[2], L4, True,
            mask_ref[2, :, :L4])
  a = layer(a, [w3_ref[2, k] for k in range(3)], b_ref[3], L5, True,
            mask_ref[3, :, :L5])
  a = layer(a, [w3_ref[3, k] for k in range(3)], b_ref[4], L6, False, None)
  o_ref[0] = a.astype(o_ref.dtype)


# ----------------------------- weight prep (XLA) ---------------------------- #
def _ct_weight_groups(w_ct, cp):
  """(ich, mch, 4, 4) ConvTranspose2d weight -> (4, cp, 4*cp) bf16.

  Equivalent stride-1 conv weight (spatial flip + in/out swap), grouped per
  kh; columns ordered (kw, cin) to match the in-kernel tap stacking."""
  ich, mch = w_ct.shape[0], w_ct.shape[1]
  w = jnp.transpose(w_ct[:, :, ::-1, ::-1], (2, 3, 0, 1))   # (kh, kw, cin, cout)
  w = jnp.pad(w, ((0, 0), (0, 0), (0, cp - ich), (0, cp - mch)))
  return jnp.transpose(w, (0, 3, 1, 2)).reshape(4, cp, 4 * cp).astype(
      jnp.bfloat16)


def _conv_weight_groups(w, cp):
  """(cout, cin, 3, 3) Conv2d weight -> (3, cp, 3*cp) bf16, per-kh groups."""
  cout, cin = w.shape[0], w.shape[1]
  wt = jnp.transpose(w, (2, 3, 1, 0))                        # (kh, kw, cin, cout)
  wt = jnp.pad(wt, ((0, 0), (0, 0), (0, cp - cin), (0, cp - cout)))
  return jnp.transpose(wt, (0, 3, 1, 2)).reshape(3, cp, 3 * cp).astype(
      jnp.bfloat16)


def _pad_bias(b, cp):
  return jnp.pad(b.astype(jnp.float32), (0, cp - b.shape[0])).reshape(cp, 1)


# ------------------------------- the module -------------------------------- #
def up_block_wo_det_forward(x_nchw, p):
  """Matches up_block_wo_det(ich, mch, och, scale=2).forward.  I/O is NCHW."""
  N, ich, H, W = x_nchw.shape
  mch = p["ct_w"].shape[1]
  och = p["c3_b"].shape[0]
  Cp = _round_up(max(ich, mch, och), 8)   # uniform padded channel count
  Ho, Wo = 2 * H, 2 * W
  R = Wo + 4                      # flat row stride (padded dilated width)
  shift = R + 1                   # per-layer padded-plane origin shift
  L6 = Ho * R                     # final output slab length (multiple of 128)
  L5 = L6 + 2 * shift             # each 3x3 layer needs 2*shift extra halo
  L4 = L5 + 2 * shift
  L3 = L4 + 2 * shift
  L2 = L3 + 2 * shift
  L1 = L2 + 3 * shift             # the 4x4 (ConvT) layer needs 3*shift
  L1p = _round_up(L1, 128)        # lane-dense input slab
  Lm = _round_up(L2, 128)         # lane-dense mask rows
  plane_len = (Ho + 4) * R        # flattened dilated+padded input plane

  # --- a0: [4*shift zeros | zero-dilated x, padded by 2, flattened | zeros],
  #     channels zero-padded to Cp ------------------------------------------
  x = x_nchw.astype(jnp.float32)
  zc = jnp.zeros_like(x)
  xw = jnp.stack([x, zc], axis=-1).reshape(N, ich, H, 2 * W)      # cols 2i
  xw = jnp.pad(xw, ((0, 0), (0, 0), (0, 0), (2, R - 2 * W - 2)))  # cols 2i+2
  zr = jnp.zeros_like(xw)
  xr = jnp.stack([xw, zr], axis=3).reshape(N, ich, Ho, R)         # rows 2j
  plane = jnp.pad(xr, ((0, 0), (0, 0), (2, 2), (0, 0)))           # rows 2j+2
  plane = plane.reshape(N, ich, plane_len)
  a0 = jnp.pad(plane, ((0, 0), (0, Cp - ich),
                       (4 * shift, L1p - 4 * shift - plane_len)))

  # --- per-layer validity masks, pre-offset + pre-broadcast to Cp sublanes --
  #     plane position (hp, wp) holds real data iff 1<=hp<=Ho and 1<=wp<=Wo.
  pos = jnp.arange(L2, dtype=jnp.int32) - 3 * shift
  hp = pos // R
  wp = pos - hp * R
  master = ((hp >= 1) & (hp <= Ho) & (wp >= 1) & (wp <= Wo)).astype(jnp.float32)
  master = jnp.pad(master, (0, 3 * shift + Lm - L2))
  rows = jnp.stack([master[j * shift: j * shift + Lm] for j in range(4)])
  masks = jnp.broadcast_to(rows[:, None, :], (4, Cp, Lm))

  # --- matmul-ready bf16 weights (per-kh groups) / f32 biases ----------------
  w_ct = _ct_weight_groups(p["ct_w"], Cp)                    # (4, Cp, 4*Cp)
  w3 = jnp.stack([_conv_weight_groups(p[k], Cp)
                  for k in ("u1_w", "c1_w", "c2_w", "c3_w")])  # (4, 3, Cp, 3*Cp)
  bias = jnp.stack([_pad_bias(p[k], Cp)
                    for k in ("ct_b", "u1_b", "c1_b", "c2_b", "c3_b")])

  kernel = functools.partial(_fused_kernel, R=R, lens=(L2, L3, L4, L5, L6))

  def rep(a):    # weights / biases / masks: same (resident) block every step
    return pl.BlockSpec(a.shape, lambda n, nd=a.ndim: (0,) * nd)

  out_flat = pl.pallas_call(
      kernel,
      out_shape=jax.ShapeDtypeStruct((N, Cp, L6), jnp.float32),
      grid=(N,),
      in_specs=[
          pl.BlockSpec((1, Cp, L1p), lambda n: (n, 0, 0)),
          rep(masks),
          rep(w_ct),
          rep(w3),
          rep(bias),
      ],
      out_specs=pl.BlockSpec((1, Cp, L6), lambda n: (n, 0, 0)),
      compiler_params=pltpu.CompilerParams(
          dimension_semantics=("parallel",),
          vmem_limit_bytes=32 * 1024 * 1024),
  )(a0, masks, w_ct, w3, bias)

  # output pixel (oh, ow) lives at flat index oh*R + ow; drop padded channels
  # and junk columns
  out = out_flat.reshape(N, Cp, Ho, R)[:, :och, :, :Wo]
  return out


# --------------------------------- params ---------------------------------- #
def init_params(key, ich, mch, och):
  ks = jax.random.split(key, 10)
  s = 0.1
  return {
      # up_conv: ConvTranspose2d(ich,mch,4,2,1) -> LReLU -> Conv2d(mch,och,3,1,1) -> LReLU
      "ct_w": jax.random.normal(ks[0], (ich, mch, 4, 4), jnp.float32) * s,
      "ct_b": jax.random.normal(ks[1], (mch,), jnp.float32) * s,
      "u1_w": jax.random.normal(ks[2], (och, mch, 3, 3), jnp.float32) * s,
      "u1_b": jax.random.normal(ks[3], (och,), jnp.float32) * s,
      # conv: Conv2d(och,mch) -> LReLU -> Conv2d(mch,mch) -> LReLU -> Conv2d(mch,och)
      "c1_w": jax.random.normal(ks[4], (mch, och, 3, 3), jnp.float32) * s,
      "c1_b": jax.random.normal(ks[5], (mch,), jnp.float32) * s,
      "c2_w": jax.random.normal(ks[6], (mch, mch, 3, 3), jnp.float32) * s,
      "c2_b": jax.random.normal(ks[7], (mch,), jnp.float32) * s,
      "c3_w": jax.random.normal(ks[8], (och, mch, 3, 3), jnp.float32) * s,
      "c3_b": jax.random.normal(ks[9], (och,), jnp.float32) * s,
  }


# ---------------------------- pure-JAX reference ---------------------------- #
def _lrelu(y):
  return jnp.where(y >= 0, y, NEG_SLOPE * y)


def _ref_conv(x_nhwc, w_pt, b):
  w = jnp.transpose(w_pt, (2, 3, 1, 0))                # HWIO
  y = jax.lax.conv_general_dilated(
      x_nhwc, w, window_strides=(1, 1), padding="SAME",
      dimension_numbers=("NHWC", "HWIO", "NHWC"))
  return y + b


def _ref_convT(x_nhwc, w_pt, b):
  w = jnp.transpose(w_pt[:, :, ::-1, ::-1], (2, 3, 0, 1))  # HWIO, flipped
  y = jax.lax.conv_general_dilated(
      x_nhwc, w, window_strides=(1, 1), padding=[(2, 2), (2, 2)],
      lhs_dilation=(2, 2), dimension_numbers=("NHWC", "HWIO", "NHWC"))
  return y + b


def reference_forward(x_nchw, p):
  x = jnp.transpose(x_nchw, (0, 2, 3, 1))
  up = _lrelu(_ref_convT(x, p["ct_w"], p["ct_b"]))
  up = _lrelu(_ref_conv(up, p["u1_w"], p["u1_b"]))
  sr = _lrelu(_ref_conv(up, p["c1_w"], p["c1_b"]))
  sr = _lrelu(_ref_conv(sr, p["c2_w"], p["c2_b"]))
  sr = _ref_conv(sr, p["c3_w"], p["c3_b"])
  return jnp.transpose(sr, (0, 3, 1, 2))


# ---------------------------------- main ----------------------------------- #
if __name__ == "__main__":
  ich, mch, och = 4, 8, 4
  N, H, W = 2, 16, 16

  key = jax.random.PRNGKey(0)
  k_x, k_p = jax.random.split(key)
  x = jax.random.normal(k_x, (N, ich, H, W), jnp.float32)
  params = init_params(k_p, ich, mch, och)

  out = jax.jit(up_block_wo_det_forward)(x, params)
  out = jax.block_until_ready(out)
  assert out.shape == (N, och, 2 * H, 2 * W), out.shape

  ref = jax.block_until_ready(reference_forward(x, params))
  # bf16 MXU operands (per perf review) through 5 stacked conv layers ->
  # compare against the f32 reference at bf16-level tolerance.
  np.testing.assert_allclose(np.asarray(out), np.asarray(ref),
                             rtol=2e-2, atol=2e-2)
  print("KERNEL_OK")
</pallas_src>

<mosaic_0001>
module attributes {stable_mosaic.version = 11 : i64} {
  func.func @_fused_kernel(%arg0: i32, %arg1: memref<1x8x1664xf32, #tpu.memory_space<vmem>>, %arg2: memref<4x8x1536xf32, #tpu.memory_space<vmem>>, %arg3: memref<4x8x32xbf16, #tpu.memory_space<vmem>>, %arg4: memref<4x3x8x24xbf16, #tpu.memory_space<vmem>>, %arg5: memref<5x8x1xf32, #tpu.memory_space<vmem>>, %arg6: memref<1x8x1152xf32, #tpu.memory_space<vmem>>) attributes {dimension_semantics = [#tpu.dimension_semantics<parallel>], iteration_bounds = array<i64: 2>, scalar_prefetch = 0 : i64, scratch_operands = 0 : i64, tpu.core_type = #tpu.core_type<tc>, window_params = [{transform_indices = @transform_0, window_bounds = array<i64: 1, 8, 1664>}, {pipeline_mode = #tpu.pipeline_mode<synchronous>, transform_indices = @transform_1, window_bounds = array<i64: 4, 8, 1536>}, {pipeline_mode = #tpu.pipeline_mode<synchronous>, transform_indices = @transform_2, window_bounds = array<i64: 4, 8, 32>}, {pipeline_mode = #tpu.pipeline_mode<synchronous>, transform_indices = @transform_3, window_bounds = array<i64: 4, 3, 8, 24>}, {pipeline_mode = #tpu.pipeline_mode<synchronous>, transform_indices = @transform_4, window_bounds = array<i64: 5, 8, 1>}, {transform_indices = @transform_5, window_bounds = array<i64: 1, 8, 1152>}]} {
    %c0 = arith.constant 0 : index
    %c0_0 = arith.constant 0 : index
    %c0_1 = arith.constant 0 : index
    %0 = vector.load %arg1[%c0, %c0_0, %c0_1] : memref<1x8x1664xf32, #tpu.memory_space<vmem>>, vector<1x8x1664xf32>
    %1 = vector.shape_cast %0 : vector<1x8x1664xf32> to vector<8x1664xf32>
    %c0_2 = arith.constant 0 : index
    %c0_3 = arith.constant 0 : index
    %c0_4 = arith.constant 0 : index
    %2 = vector.load %arg3[%c0_2, %c0_3, %c0_4] : memref<4x8x32xbf16, #tpu.memory_space<vmem>>, vector<1x8x32xbf16>
    %3 = vector.shape_cast %2 : vector<1x8x32xbf16> to vector<8x32xbf16>
    %c1 = arith.constant 1 : index
    %c0_5 = arith.constant 0 : index
    %c0_6 = arith.constant 0 : index
    %4 = vector.load %arg3[%c1, %c0_5, %c0_6] : memref<4x8x32xbf16, #tpu.memory_space<vmem>>, vector<1x8x32xbf16>
    %5 = vector.shape_cast %4 : vector<1x8x32xbf16> to vector<8x32xbf16>
    %c2 = arith.constant 2 : index
    %c0_7 = arith.constant 0 : index
    %c0_8 = arith.constant 0 : index
    %6 = vector.load %arg3[%c2, %c0_7, %c0_8] : memref<4x8x32xbf16, #tpu.memory_space<vmem>>, vector<1x8x32xbf16>
    %7 = vector.shape_cast %6 : vector<1x8x32xbf16> to vector<8x32xbf16>
    %c3 = arith.constant 3 : index
    %c0_9 = arith.constant 0 : index
    %c0_10 = arith.constant 0 : index
    %8 = vector.load %arg3[%c3, %c0_9, %c0_10] : memref<4x8x32xbf16, #tpu.memory_space<vmem>>, vector<1x8x32xbf16>
    %9 = vector.shape_cast %8 : vector<1x8x32xbf16> to vector<8x32xbf16>
    %c0_11 = arith.constant 0 : index
    %c0_12 = arith.constant 0 : index
    %c0_13 = arith.constant 0 : index
    %10 = vector.load %arg5[%c0_11, %c0_12, %c0_13] : memref<5x8x1xf32, #tpu.memory_space<vmem>>, vector<1x8x1xf32>
    %11 = vector.shape_cast %10 : vector<1x8x1xf32> to vector<8x1xf32>
    %c0_14 = arith.constant 0 : index
    %c0_15 = arith.constant 0 : index
    %c0_16 = arith.constant 0 : index
    %12 = vector.load %arg2[%c0_14, %c0_15, %c0_16] : memref<4x8x1536xf32, #tpu.memory_space<vmem>>, vector<1x8x1448xf32>
    %13 = vector.shape_cast %12 : vector<1x8x1448xf32> to vector<8x1448xf32>
    %cst = arith.constant 0.000000e+00 : f32
    %14 = vector.broadcast %cst : f32 to vector<8x1448xf32>
    %15 = vector.extract_strided_slice %1 {offsets = [0, 0], sizes = [8, 1448], strides = [1, 1]} : vector<8x1664xf32> to vector<8x1448xf32>
    %16 = vector.extract_strided_slice %1 {offsets = [0, 1], sizes = [8, 1448], strides = [1, 1]} : vector<8x1664xf32> to vector<8x1448xf32>
    %17 = vector.extract_strided_slice %1 {offsets = [0, 2], sizes = [8, 1448], strides = [1, 1]} : vector<8x1664xf32> to vector<8x1448xf32>
    %18 = vector.extract_strided_slice %1 {offsets = [0, 3], sizes = [8, 1448], strides = [1, 1]} : vector<8x1664xf32> to vector<8x1448xf32>
    %19 = tpu.concatenate %15, %16, %17, %18 in 0 : vector<8x1448xf32>, vector<8x1448xf32>, vector<8x1448xf32>, vector<8x1448xf32> -> vector<32x1448xf32>
    %20 = arith.truncf %19 : vector<32x1448xf32> to vector<32x1448xbf16>
    %cst_17 = arith.constant dense<0.000000e+00> : vector<8x1448xf32>
    %21 = tpu.matmul %3, %20, %cst_17 {dimension_numbers = #tpu.dot_dimension_numbers<[1], [0], [0], [1], [0, 0, 1, 1], [], []>} : vector<8x32xbf16>, vector<32x1448xbf16>, vector<8x1448xf32> -> vector<8x1448xf32>
    %22 = arith.addf %14, %21 : vector<8x1448xf32>
    %23 = vector.extract_strided_slice %1 {offsets = [0, 36], sizes = [8, 1448], strides = [1, 1]} : vector<8x1664xf32> to vector<8x1448xf32>
    %24 = vector.extract_strided_slice %1 {offsets = [0, 37], sizes = [8, 1448], strides = [1, 1]} : vector<8x1664xf32> to vector<8x1448xf32>
    %25 = vector.extract_strided_slice %1 {offsets = [0, 38], sizes = [8, 1448], strides = [1, 1]} : vector<8x1664xf32> to vector<8x1448xf32>
    %26 = vector.extract_strided_slice %1 {offsets = [0, 39], sizes = [8, 1448], strides = [1, 1]} : vector<8x1664xf32> to vector<8x1448xf32>
    %27 = tpu.concatenate %23, %24, %25, %26 in 0 : vector<8x1448xf32>, vector<8x1448xf32>, vector<8x1448xf32>, vector<8x1448xf32> -> vector<32x1448xf32>
    %28 = arith.truncf %27 : vector<32x1448xf32> to vector<32x1448xbf16>
    %cst_18 = arith.constant dense<0.000000e+00> : vector<8x1448xf32>
    %29 = tpu.matmul %5, %28, %cst_18 {dimension_numbers = #tpu.dot_dimension_numbers<[1], [0], [0], [1], [0, 0, 1, 1], [], []>} : vector<8x32xbf16>, vector<32x1448xbf16>, vector<8x1448xf32> -> vector<8x1448xf32>
    %30 = arith.addf %22, %29 : vector<8x1448xf32>
    %31 = vector.extract_strided_slice %1 {offsets = [0, 72], sizes = [8, 1448], strides = [1, 1]} : vector<8x1664xf32> to vector<8x1448xf32>
    %32 = vector.extract_strided_slice %1 {offsets = [0, 73], sizes = [8, 1448], strides = [1, 1]} : vector<8x1664xf32> to vector<8x1448xf32>
    %33 = vector.extract_strided_slice %1 {offsets = [0, 74], sizes = [8, 1448], strides = [1, 1]} : vector<8x1664xf32> to vector<8x1448xf32>
    %34 = vector.extract_strided_slice %1 {offsets = [0, 75], sizes = [8, 1448], strides = [1, 1]} : vector<8x1664xf32> to vector<8x1448xf32>
    %35 = tpu.concatenate %31, %32, %33, %34 in 0 : vector<8x1448xf32>, vector<8x1448xf32>, vector<8x1448xf32>, vector<8x1448xf32> -> vector<32x1448xf32>
    %36 = arith.truncf %35 : vector<32x1448xf32> to vector<32x1448xbf16>
    %cst_19 = arith.constant dense<0.000000e+00> : vector<8x1448xf32>
    %37 = tpu.matmul %7, %36, %cst_19 {dimension_numbers = #tpu.dot_dimension_numbers<[1], [0], [0], [1], [0, 0, 1, 1], [], []>} : vector<8x32xbf16>, vector<32x1448xbf16>, vector<8x1448xf32> -> vector<8x1448xf32>
    %38 = arith.addf %30, %37 : vector<8x1448xf32>
    %39 = vector.extract_strided_slice %1 {offsets = [0, 108], sizes = [8, 1448], strides = [1, 1]} : vector<8x1664xf32> to vector<8x1448xf32>
    %40 = vector.extract_strided_slice %1 {offsets = [0, 109], sizes = [8, 1448], strides = [1, 1]} : vector<8x1664xf32> to vector<8x1448xf32>
    %41 = vector.extract_strided_slice %1 {offsets = [0, 110], sizes = [8, 1448], strides = [1, 1]} : vector<8x1664xf32> to vector<8x1448xf32>
    %42 = vector.extract_strided_slice %1 {offsets = [0, 111], sizes = [8, 1448], strides = [1, 1]} : vector<8x1664xf32> to vector<8x1448xf32>
    %43 = tpu.concatenate %39, %40, %41, %42 in 0 : vector<8x1448xf32>, vector<8x1448xf32>, vector<8x1448xf32>, vector<8x1448xf32> -> vector<32x1448xf32>
    %44 = arith.truncf %43 : vector<32x1448xf32> to vector<32x1448xbf16>
    %cst_20 = arith.constant dense<0.000000e+00> : vector<8x1448xf32>
    %45 = tpu.matmul %9, %44, %cst_20 {dimension_numbers = #tpu.dot_dimension_numbers<[1], [0], [0], [1], [0, 0, 1, 1], [], []>} : vector<8x32xbf16>, vector<32x1448xbf16>, vector<8x1448xf32> -> vector<8x1448xf32>
    %46 = arith.addf %38, %45 : vector<8x1448xf32>
    %47 = vector.broadcast %11 : vector<8x1xf32> to vector<8x1448xf32>
    %48 = arith.addf %46, %47 : vector<8x1448xf32>
    %cst_21 = arith.constant 0.000000e+00 : f32
    %49 = vector.broadcast %cst_21 : f32 to vector<8x1448xf32>
    %50 = arith.cmpf oge, %48, %49 : vector<8x1448xf32>
    %cst_22 = arith.constant 2.000000e-02 : f32
    %51 = vector.broadcast %cst_22 : f32 to vector<8x1448xf32>
    %52 = arith.mulf %51, %48 : vector<8x1448xf32>
    %53 = arith.select %50, %48, %52 : vector<8x1448xi1>, vector<8x1448xf32>
    %54 = arith.mulf %53, %13 : vector<8x1448xf32>
    %c0_23 = arith.constant 0 : index
    %c0_24 = arith.constant 0 : index
    %c0_25 = arith.constant 0 : index
    %c0_26 = arith.constant 0 : index
    %55 = vector.load %arg4[%c0_23, %c0_24, %c0_25, %c0_26] : memref<4x3x8x24xbf16, #tpu.memory_space<vmem>>, vector<1x1x8x24xbf16>
    %56 = vector.shape_cast %55 : vector<1x1x8x24xbf16> to vector<8x24xbf16>
    %c0_27 = arith.constant 0 : index
    %c1_28 = arith.constant 1 : index
    %c0_29 = arith.constant 0 : index
    %c0_30 = arith.constant 0 : index
    %57 = vector.load %arg4[%c0_27, %c1_28, %c0_29, %c0_30] : memref<4x3x8x24xbf16, #tpu.memory_space<vmem>>, vector<1x1x8x24xbf16>
    %58 = vector.shape_cast %57 : vector<1x1x8x24xbf16> to vector<8x24xbf16>
    %c0_31 = arith.constant 0 : index
    %c2_32 = arith.constant 2 : index
    %c0_33 = arith.constant 0 : index
    %c0_34 = arith.constant 0 : index
    %59 = vector.load %arg4[%c0_31, %c2_32, %c0_33, %c0_34] : memref<4x3x8x24xbf16, #tpu.memory_space<vmem>>, vector<1x1x8x24xbf16>
    %60 = vector.shape_cast %59 : vector<1x1x8x24xbf16> to vector<8x24xbf16>
    %c1_35 = arith.constant 1 : index
    %c0_36 = arith.constant 0 : index
    %c0_37 = arith.constant 0 : index
    %61 = vector.load %arg5[%c1_35, %c0_36, %c0_37] : memref<5x8x1xf32, #tpu.memory_space<vmem>>, vector<1x8x1xf32>
    %62 = vector.shape_cast %61 : vector<1x8x1xf32> to vector<8x1xf32>
    %c1_38 = arith.constant 1 : index
    %c0_39 = arith.constant 0 : index
    %c0_40 = arith.constant 0 : index
    %63 = vector.load %arg2[%c1_38, %c0_39, %c0_40] : memref<4x8x1536xf32, #tpu.memory_space<vmem>>, vector<1x8x1374xf32>
    %64 = vector.shape_cast %63 : vector<1x8x1374xf32> to vector<8x1374xf32>
    %cst_41 = arith.constant 0.000000e+00 : f32
    %65 = vector.broadcast %cst_41 : f32 to vector<8x1374xf32>
    %66 = vector.extract_strided_slice %54 {offsets = [0, 0], sizes = [8, 1374], strides = [1, 1]} : vector<8x1448xf32> to vector<8x1374xf32>
    %67 = vector.extract_strided_slice %54 {offsets = [0, 1], sizes = [8, 1374], strides = [1, 1]} : vector<8x1448xf32> to vector<8x1374xf32>
    %68 = vector.extract_strided_slice %54 {offsets = [0, 2], sizes = [8, 1374], strides = [1, 1]} : vector<8x1448xf32> to vector<8x1374xf32>
    %69 = tpu.concatenate %66, %67, %68 in 0 : vector<8x1374xf32>, vector<8x1374xf32>, vector<8x1374xf32> -> vector<24x1374xf32>
    %70 = arith.truncf %69 : vector<24x1374xf32> to vector<24x1374xbf16>
    %cst_42 = arith.constant dense<0.000000e+00> : vector<8x1374xf32>
    %71 = tpu.matmul %56, %70, %cst_42 {dimension_numbers = #tpu.dot_dimension_numbers<[1], [0], [0], [1], [0, 0, 1, 1], [], []>} : vector<8x24xbf16>, vector<24x1374xbf16>, vector<8x1374xf32> -> vector<8x1374xf32>
    %72 = arith.addf %65, %71 : vector<8x1374xf32>
    %73 = vector.extract_strided_slice %54 {offsets = [0, 36], sizes = [8, 1374], strides = [1, 1]} : vector<8x1448xf32> to vector<8x1374xf32>
    %74 = vector.extract_strided_slice %54 {offsets = [0, 37], sizes = [8, 1374], strides = [1, 1]} : vector<8x1448xf32> to vector<8x1374xf32>
    %75 = vector.extract_strided_slice %54 {offsets = [0, 38], sizes = [8, 1374], strides = [1, 1]} : vector<8x1448xf32> to vector<8x1374xf32>
    %76 = tpu.concatenate %73, %74, %75 in 0 : vector<8x1374xf32>, vector<8x1374xf32>, vector<8x1374xf32> -> vector<24x1374xf32>
    %77 = arith.truncf %76 : vector<24x1374xf32> to vector<24x1374xbf16>
    %cst_43 = arith.constant dense<0.000000e+00> : vector<8x1374xf32>
    %78 = tpu.matmul %58, %77, %cst_43 {dimension_numbers = #tpu.dot_dimension_numbers<[1], [0], [0], [1], [0, 0, 1, 1], [], []>} : vector<8x24xbf16>, vector<24x1374xbf16>, vector<8x1374xf32> -> vector<8x1374xf32>
    %79 = arith.addf %72, %78 : vector<8x1374xf32>
    %80 = vector.extract_strided_slice %54 {offsets = [0, 72], sizes = [8, 1374], strides = [1, 1]} : vector<8x1448xf32> to vector<8x1374xf32>
    %81 = vector.extract_strided_slice %54 {offsets = [0, 73], sizes = [8, 1374], strides = [1, 1]} : vector<8x1448xf32> to vector<8x1374xf32>
    %82 = vector.extract_strided_slice %54 {offsets = [0, 74], sizes = [8, 1374], strides = [1, 1]} : vector<8x1448xf32> to vector<8x1374xf32>
    %83 = tpu.concatenate %80, %81, %82 in 0 : vector<8x1374xf32>, vector<8x1374xf32>, vector<8x1374xf32> -> vector<24x1374xf32>
    %84 = arith.truncf %83 : vector<24x1374xf32> to vector<24x1374xbf16>
    %cst_44 = arith.constant dense<0.000000e+00> : vector<8x1374xf32>
    %85 = tpu.matmul %60, %84, %cst_44 {dimension_numbers = #tpu.dot_dimension_numbers<[1], [0], [0], [1], [0, 0, 1, 1], [], []>} : vector<8x24xbf16>, vector<24x1374xbf16>, vector<8x1374xf32> -> vector<8x1374xf32>
    %86 = arith.addf %79, %85 : vector<8x1374xf32>
    %87 = vector.broadcast %62 : vector<8x1xf32> to vector<8x1374xf32>
    %88 = arith.addf %86, %87 : vector<8x1374xf32>
    %cst_45 = arith.constant 0.000000e+00 : f32
    %89 = vector.broadcast %cst_45 : f32 to vector<8x1374xf32>
    %90 = arith.cmpf oge, %88, %89 : vector<8x1374xf32>
    %cst_46 = arith.constant 2.000000e-02 : f32
    %91 = vector.broadcast %cst_46 : f32 to vector<8x1374xf32>
    %92 = arith.mulf %91, %88 : vector<8x1374xf32>
    %93 = arith.select %90, %88, %92 : vector<8x1374xi1>, vector<8x1374xf32>
    %94 = arith.mulf %93, %64 : vector<8x1374xf32>
    %c1_47 = arith.constant 1 : index
    %c0_48 = arith.constant 0 : index
    %c0_49 = arith.constant 0 : index
    %c0_50 = arith.constant 0 : index
    %95 = vector.load %arg4[%c1_47, %c0_48, %c0_49, %c0_50] : memref<4x3x8x24xbf16, #tpu.memory_space<vmem>>, vector<1x1x8x24xbf16>
    %96 = vector.shape_cast %95 : vector<1x1x8x24xbf16> to vector<8x24xbf16>
    %c1_51 = arith.constant 1 : index
    %c1_52 = arith.constant 1 : index
    %c0_53 = arith.constant 0 : index
    %c0_54 = arith.constant 0 : index
    %97 = vector.load %arg4[%c1_51, %c1_52, %c0_53, %c0_54] : memref<4x3x8x24xbf16, #tpu.memory_space<vmem>>, vector<1x1x8x24xbf16>
    %98 = vector.shape_cast %97 : vector<1x1x8x24xbf16> to vector<8x24xbf16>
    %c1_55 = arith.constant 1 : index
    %c2_56 = arith.constant 2 : index
    %c0_57 = arith.constant 0 : index
    %c0_58 = arith.constant 0 : index
    %99 = vector.load %arg4[%c1_55, %c2_56, %c0_57, %c0_58] : memref<4x3x8x24xbf16, #tpu.memory_space<vmem>>, vector<1x1x8x24xbf16>
    %100 = vector.shape_cast %99 : vector<1x1x8x24xbf16> to vector<8x24xbf16>
    %c2_59 = arith.constant 2 : index
    %c0_60 = arith.constant 0 : index
    %c0_61 = arith.constant 0 : index
    %101 = vector.load %arg5[%c2_59, %c0_60, %c0_61] : memref<5x8x1xf32, #tpu.memory_space<vmem>>, vector<1x8x1xf32>
    %102 = vector.shape_cast %101 : vector<1x8x1xf32> to vector<8x1xf32>
    %c2_62 = arith.constant 2 : index
    %c0_63 = arith.constant 0 : index
    %c0_64 = arith.constant 0 : index
    %103 = vector.load %arg2[%c2_62, %c0_63, %c0_64] : memref<4x8x1536xf32, #tpu.memory_space<vmem>>, vector<1x8x1300xf32>
    %104 = vector.shape_cast %103 : vector<1x8x1300xf32> to vector<8x1300xf32>
    %cst_65 = arith.constant 0.000000e+00 : f32
    %105 = vector.broadcast %cst_65 : f32 to vector<8x1300xf32>
    %106 = vector.extract_strided_slice %94 {offsets = [0, 0], sizes = [8, 1300], strides = [1, 1]} : vector<8x1374xf32> to vector<8x1300xf32>
    %107 = vector.extract_strided_slice %94 {offsets = [0, 1], sizes = [8, 1300], strides = [1, 1]} : vector<8x1374xf32> to vector<8x1300xf32>
    %108 = vector.extract_strided_slice %94 {offsets = [0, 2], sizes = [8, 1300], strides = [1, 1]} : vector<8x1374xf32> to vector<8x1300xf32>
    %109 = tpu.concatenate %106, %107, %108 in 0 : vector<8x1300xf32>, vector<8x1300xf32>, vector<8x1300xf32> -> vector<24x1300xf32>
    %110 = arith.truncf %109 : vector<24x1300xf32> to vector<24x1300xbf16>
    %cst_66 = arith.constant dense<0.000000e+00> : vector<8x1300xf32>
    %111 = tpu.matmul %96, %110, %cst_66 {dimension_numbers = #tpu.dot_dimension_numbers<[1], [0], [0], [1], [0, 0, 1, 1], [], []>} : vector<8x24xbf16>, vector<24x1300xbf16>, vector<8x1300xf32> -> vector<8x1300xf32>
    %112 = arith.addf %105, %111 : vector<8x1300xf32>
    %113 = vector.extract_strided_slice %94 {offsets = [0, 36], sizes = [8, 1300], strides = [1, 1]} : vector<8x1374xf32> to vector<8x1300xf32>
    %114 = vector.extract_strided_slice %94 {offsets = [0, 37], sizes = [8, 1300], strides = [1, 1]} : vector<8x1374xf32> to vector<8x1300xf32>
    %115 = vector.extract_strided_slice %94 {offsets = [0, 38], sizes = [8, 1300], strides = [1, 1]} : vector<8x1374xf32> to vector<8x1300xf32>
    %116 = tpu.concatenate %113, %114, %115 in 0 : vector<8x1300xf32>, vector<8x1300xf32>, vector<8x1300xf32> -> vector<24x1300xf32>
    %117 = arith.truncf %116 : vector<24x1300xf32> to vector<24x1300xbf16>
    %cst_67 = arith.constant dense<0.000000e+00> : vector<8x1300xf32>
    %118 = tpu.matmul %98, %117, %cst_67 {dimension_numbers = #tpu.dot_dimension_numbers<[1], [0], [0], [1], [0, 0, 1, 1], [], []>} : vector<8x24xbf16>, vector<24x1300xbf16>, vector<8x1300xf32> -> vector<8x1300xf32>
    %119 = arith.addf %112, %118 : vector<8x1300xf32>
    %120 = vector.extract_strided_slice %94 {offsets = [0, 72], sizes = [8, 1300], strides = [1, 1]} : vector<8x1374xf32> to vector<8x1300xf32>
    %121 = vector.extract_strided_slice %94 {offsets = [0, 73], sizes = [8, 1300], strides = [1, 1]} : vector<8x1374xf32> to vector<8x1300xf32>
    %122 = vector.extract_strided_slice %94 {offsets = [0, 74], sizes = [8, 1300], strides = [1, 1]} : vector<8x1374xf32> to vector<8x1300xf32>
    %123 = tpu.concatenate %120, %121, %122 in 0 : vector<8x1300xf32>, vector<8x1300xf32>, vector<8x1300xf32> -> vector<24x1300xf32>
    %124 = arith.truncf %123 : vector<24x1300xf32> to vector<24x1300xbf16>
    %cst_68 = arith.constant dense<0.000000e+00> : vector<8x1300xf32>
    %125 = tpu.matmul %100, %124, %cst_68 {dimension_numbers = #tpu.dot_dimension_numbers<[1], [0], [0], [1], [0, 0, 1, 1], [], []>} : vector<8x24xbf16>, vector<24x1300xbf16>, vector<8x1300xf32> -> vector<8x1300xf32>
    %126 = arith.addf %119, %125 : vector<8x1300xf32>
    %127 = vector.broadcast %102 : vector<8x1xf32> to vector<8x1300xf32>
    %128 = arith.addf %126, %127 : vector<8x1300xf32>
    %cst_69 = arith.constant 0.000000e+00 : f32
    %129 = vector.broadcast %cst_69 : f32 to vector<8x1300xf32>
    %130 = arith.cmpf oge, %128, %129 : vector<8x1300xf32>
    %cst_70 = arith.constant 2.000000e-02 : f32
    %131 = vector.broadcast %cst_70 : f32 to vector<8x1300xf32>
    %132 = arith.mulf %131, %128 : vector<8x1300xf32>
    %133 = arith.select %130, %128, %132 : vector<8x1300xi1>, vector<8x1300xf32>
    %134 = arith.mulf %133, %104 : vector<8x1300xf32>
    %c2_71 = arith.constant 2 : index
    %c0_72 = arith.constant 0 : index
    %c0_73 = arith.constant 0 : index
    %c0_74 = arith.constant 0 : index
    %135 = vector.load %arg4[%c2_71, %c0_72, %c0_73, %c0_74] : memref<4x3x8x24xbf16, #tpu.memory_space<vmem>>, vector<1x1x8x24xbf16>
    %136 = vector.shape_cast %135 : vector<1x1x8x24xbf16> to vector<8x24xbf16>
    %c2_75 = arith.constant 2 : index
    %c1_76 = arith.constant 1 : index
    %c0_77 = arith.constant 0 : index
    %c0_78 = arith.constant 0 : index
    %137 = vector.load %arg4[%c2_75, %c1_76, %c0_77, %c0_78] : memref<4x3x8x24xbf16, #tpu.memory_space<vmem>>, vector<1x1x8x24xbf16>
    %138 = vector.shape_cast %137 : vector<1x1x8x24xbf16> to vector<8x24xbf16>
    %c2_79 = arith.constant 2 : index
    %c2_80 = arith.constant 2 : index
    %c0_81 = arith.constant 0 : index
    %c0_82 = arith.constant 0 : index
    %139 = vector.load %arg4[%c2_79, %c2_80, %c0_81, %c0_82] : memref<4x3x8x24xbf16, #tpu.memory_space<vmem>>, vector<1x1x8x24xbf16>
    %140 = vector.shape_cast %139 : vector<1x1x8x24xbf16> to vector<8x24xbf16>
    %c3_83 = arith.constant 3 : index
    %c0_84 = arith.constant 0 : index
    %c0_85 = arith.constant 0 : index
    %141 = vector.load %arg5[%c3_83, %c0_84, %c0_85] : memref<5x8x1xf32, #tpu.memory_space<vmem>>, vector<1x8x1xf32>
    %142 = vector.shape_cast %141 : vector<1x8x1xf32> to vector<8x1xf32>
    %c3_86 = arith.constant 3 : index
    %c0_87 = arith.constant 0 : index
    %c0_88 = arith.constant 0 : index
    %143 = vector.load %arg2[%c3_86, %c0_87, %c0_88] : memref<4x8x1536xf32, #tpu.memory_space<vmem>>, vector<1x8x1226xf32>
    %144 = vector.shape_cast %143 : vector<1x8x1226xf32> to vector<8x1226xf32>
    %cst_89 = arith.constant 0.000000e+00 : f32
    %145 = vector.broadcast %cst_89 : f32 to vector<8x1226xf32>
    %146 = vector.extract_strided_slice %134 {offsets = [0, 0], sizes = [8, 1226], strides = [1, 1]} : vector<8x1300xf32> to vector<8x1226xf32>
    %147 = vector.extract_strided_slice %134 {offsets = [0, 1], sizes = [8, 1226], strides = [1, 1]} : vector<8x1300xf32> to vector<8x1226xf32>
    %148 = vector.extract_strided_slice %134 {offsets = [0, 2], sizes = [8, 1226], strides = [1, 1]} : vector<8x1300xf32> to vector<8x1226xf32>
    %149 = tpu.concatenate %146, %147, %148 in 0 : vector<8x1226xf32>, vector<8x1226xf32>, vector<8x1226xf32> -> vector<24x1226xf32>
    %150 = arith.truncf %149 : vector<24x1226xf32> to vector<24x1226xbf16>
    %cst_90 = arith.constant dense<0.000000e+00> : vector<8x1226xf32>
    %151 = tpu.matmul %136, %150, %cst_90 {dimension_numbers = #tpu.dot_dimension_numbers<[1], [0], [0], [1], [0, 0, 1, 1], [], []>} : vector<8x24xbf16>, vector<24x1226xbf16>, vector<8x1226xf32> -> vector<8x1226xf32>
    %152 = arith.addf %145, %151 : vector<8x1226xf32>
    %153 = vector.extract_strided_slice %134 {offsets = [0, 36], sizes = [8, 1226], strides = [1, 1]} : vector<8x1300xf32> to vector<8x1226xf32>
    %154 = vector.extract_strided_slice %134 {offsets = [0, 37], sizes = [8, 1226], strides = [1, 1]} : vector<8x1300xf32> to vector<8x1226xf32>
    %155 = vector.extract_strided_slice %134 {offsets = [0, 38], sizes = [8, 1226], strides = [1, 1]} : vector<8x1300xf32> to vector<8x1226xf32>
    %156 = tpu.concatenate %153, %154, %155 in 0 : vector<8x1226xf32>, vector<8x1226xf32>, vector<8x1226xf32> -> vector<24x1226xf32>
    %157 = arith.truncf %156 : vector<24x1226xf32> to vector<24x1226xbf16>
    %cst_91 = arith.constant dense<0.000000e+00> : vector<8x1226xf32>
    %158 = tpu.matmul %138, %157, %cst_91 {dimension_numbers = #tpu.dot_dimension_numbers<[1], [0], [0], [1], [0, 0, 1, 1], [], []>} : vector<8x24xbf16>, vector<24x1226xbf16>, vector<8x1226xf32> -> vector<8x1226xf32>
    %159 = arith.addf %152, %158 : vector<8x1226xf32>
    %160 = vector.extract_strided_slice %134 {offsets = [0, 72], sizes = [8, 1226], strides = [1, 1]} : vector<8x1300xf32> to vector<8x1226xf32>
    %161 = vector.extract_strided_slice %134 {offsets = [0, 73], sizes = [8, 1226], strides = [1, 1]} : vector<8x1300xf32> to vector<8x1226xf32>
    %162 = vector.extract_strided_slice %134 {offsets = [0, 74], sizes = [8, 1226], strides = [1, 1]} : vector<8x1300xf32> to vector<8x1226xf32>
    %163 = tpu.concatenate %160, %161, %162 in 0 : vector<8x1226xf32>, vector<8x1226xf32>, vector<8x1226xf32> -> vector<24x1226xf32>
    %164 = arith.truncf %163 : vector<24x1226xf32> to vector<24x1226xbf16>
    %cst_92 = arith.constant dense<0.000000e+00> : vector<8x1226xf32>
    %165 = tpu.matmul %140, %164, %cst_92 {dimension_numbers = #tpu.dot_dimension_numbers<[1], [0], [0], [1], [0, 0, 1, 1], [], []>} : vector<8x24xbf16>, vector<24x1226xbf16>, vector<8x1226xf32> -> vector<8x1226xf32>
    %166 = arith.addf %159, %165 : vector<8x1226xf32>
    %167 = vector.broadcast %142 : vector<8x1xf32> to vector<8x1226xf32>
    %168 = arith.addf %166, %167 : vector<8x1226xf32>
    %cst_93 = arith.constant 0.000000e+00 : f32
    %169 = vector.broadcast %cst_93 : f32 to vector<8x1226xf32>
    %170 = arith.cmpf oge, %168, %169 : vector<8x1226xf32>
    %cst_94 = arith.constant 2.000000e-02 : f32
    %171 = vector.broadcast %cst_94 : f32 to vector<8x1226xf32>
    %172 = arith.mulf %171, %168 : vector<8x1226xf32>
    %173 = arith.select %170, %168, %172 : vector<8x1226xi1>, vector<8x1226xf32>
    %174 = arith.mulf %173, %144 : vector<8x1226xf32>
    %c3_95 = arith.constant 3 : index
    %c0_96 = arith.constant 0 : index
    %c0_97 = arith.constant 0 : index
    %c0_98 = arith.constant 0 : index
    %175 = vector.load %arg4[%c3_95, %c0_96, %c0_97, %c0_98] : memref<4x3x8x24xbf16, #tpu.memory_space<vmem>>, vector<1x1x8x24xbf16>
    %176 = vector.shape_cast %175 : vector<1x1x8x24xbf16> to vector<8x24xbf16>
    %c3_99 = arith.constant 3 : index
    %c1_100 = arith.constant 1 : index
    %c0_101 = arith.constant 0 : index
    %c0_102 = arith.constant 0 : index
    %177 = vector.load %arg4[%c3_99, %c1_100, %c0_101, %c0_102] : memref<4x3x8x24xbf16, #tpu.memory_space<vmem>>, vector<1x1x8x24xbf16>
    %178 = vector.shape_cast %177 : vector<1x1x8x24xbf16> to vector<8x24xbf16>
    %c3_103 = arith.constant 3 : index
    %c2_104 = arith.constant 2 : index
    %c0_105 = arith.constant 0 : index
    %c0_106 = arith.constant 0 : index
    %179 = vector.load %arg4[%c3_103, %c2_104, %c0_105, %c0_106] : memref<4x3x8x24xbf16, #tpu.memory_space<vmem>>, vector<1x1x8x24xbf16>
    %180 = vector.shape_cast %179 : vector<1x1x8x24xbf16> to vector<8x24xbf16>
    %c4 = arith.constant 4 : index
    %c0_107 = arith.constant 0 : index
    %c0_108 = arith.constant 0 : index
    %181 = vector.load %arg5[%c4, %c0_107, %c0_108] : memref<5x8x1xf32, #tpu.memory_space<vmem>>, vector<1x8x1xf32>
    %182 = vector.shape_cast %181 : vector<1x8x1xf32> to vector<8x1xf32>
    %cst_109 = arith.constant 0.000000e+00 : f32
    %183 = vector.broadcast %cst_109 : f32 to vector<8x1152xf32>
    %184 = vector.extract_strided_slice %174 {offsets = [0, 0], sizes = [8, 1152], strides = [1, 1]} : vector<8x1226xf32> to vector<8x1152xf32>
    %185 = vector.extract_strided_slice %174 {offsets = [0, 1], sizes = [8, 1152], strides = [1, 1]} : vector<8x1226xf32> to vector<8x1152xf32>
    %186 = vector.extract_strided_slice %174 {offsets = [0, 2], sizes = [8, 1152], strides = [1, 1]} : vector<8x1226xf32> to vector<8x1152xf32>
    %187 = tpu.concatenate %184, %185, %186 in 0 : vector<8x1152xf32>, vector<8x1152xf32>, vector<8x1152xf32> -> vector<24x1152xf32>
    %188 = arith.truncf %187 : vector<24x1152xf32> to vector<24x1152xbf16>
    %cst_110 = arith.constant dense<0.000000e+00> : vector<8x1152xf32>
    %189 = tpu.matmul %176, %188, %cst_110 {dimension_numbers = #tpu.dot_dimension_numbers<[1], [0], [0], [1], [0, 0, 1, 1], [], []>} : vector<8x24xbf16>, vector<24x1152xbf16>, vector<8x1152xf32> -> vector<8x1152xf32>
    %190 = arith.addf %183, %189 : vector<8x1152xf32>
    %191 = vector.extract_strided_slice %174 {offsets = [0, 36], sizes = [8, 1152], strides = [1, 1]} : vector<8x1226xf32> to vector<8x1152xf32>
    %192 = vector.extract_strided_slice %174 {offsets = [0, 37], sizes = [8, 1152], strides = [1, 1]} : vector<8x1226xf32> to vector<8x1152xf32>
    %193 = vector.extract_strided_slice %174 {offsets = [0, 38], sizes = [8, 1152], strides = [1, 1]} : vector<8x1226xf32> to vector<8x1152xf32>
    %194 = tpu.concatenate %191, %192, %193 in 0 : vector<8x1152xf32>, vector<8x1152xf32>, vector<8x1152xf32> -> vector<24x1152xf32>
    %195 = arith.truncf %194 : vector<24x1152xf32> to vector<24x1152xbf16>
    %cst_111 = arith.constant dense<0.000000e+00> : vector<8x1152xf32>
    %196 = tpu.matmul %178, %195, %cst_111 {dimension_numbers = #tpu.dot_dimension_numbers<[1], [0], [0], [1], [0, 0, 1, 1], [], []>} : vector<8x24xbf16>, vector<24x1152xbf16>, vector<8x1152xf32> -> vector<8x1152xf32>
    %197 = arith.addf %190, %196 : vector<8x1152xf32>
    %198 = vector.extract_strided_slice %174 {offsets = [0, 72], sizes = [8, 1152], strides = [1, 1]} : vector<8x1226xf32> to vector<8x1152xf32>
    %199 = vector.extract_strided_slice %174 {offsets = [0, 73], sizes = [8, 1152], strides = [1, 1]} : vector<8x1226xf32> to vector<8x1152xf32>
    %200 = vector.extract_strided_slice %174 {offsets = [0, 74], sizes = [8, 1152], strides = [1, 1]} : vector<8x1226xf32> to vector<8x1152xf32>
    %201 = tpu.concatenate %198, %199, %200 in 0 : vector<8x1152xf32>, vector<8x1152xf32>, vector<8x1152xf32> -> vector<24x1152xf32>
    %202 = arith.truncf %201 : vector<24x1152xf32> to vector<24x1152xbf16>
    %cst_112 = arith.constant dense<0.000000e+00> : vector<8x1152xf32>
    %203 = tpu.matmul %180, %202, %cst_112 {dimension_numbers = #tpu.dot_dimension_numbers<[1], [0], [0], [1], [0, 0, 1, 1], [], []>} : vector<8x24xbf16>, vector<24x1152xbf16>, vector<8x1152xf32> -> vector<8x1152xf32>
    %204 = arith.addf %197, %203 : vector<8x1152xf32>
    %205 = vector.broadcast %182 : vector<8x1xf32> to vector<8x1152xf32>
    %206 = arith.addf %204, %205 : vector<8x1152xf32>
    %c0_113 = arith.constant 0 : index
    %c0_114 = arith.constant 0 : index
    %c0_115 = arith.constant 0 : index
    %207 = vector.load %arg6[%c0_113, %c0_114, %c0_115] : memref<1x8x1152xf32, #tpu.memory_space<vmem>>, vector<1x8x1152xf32>
    %208 = vector.shape_cast %207 : vector<1x8x1152xf32> to vector<8x1152xf32>
    %209 = vector.shape_cast %206 : vector<8x1152xf32> to vector<1x8x1152xf32>
    tpu.vector_store %arg6[%c0_113, %c0_114, %c0_115], %209 {strides = array<i32>} : memref<1x8x1152xf32, #tpu.memory_space<vmem>>, vector<1x8x1152xf32>,
    return
  }
  func.func @transform_0(%arg0: i32) -> (i32, i32, i32) {
    %c0_i32 = arith.constant 0 : i32
    %c0_i32_0 = arith.constant 0 : i32
    %c0_i32_1 = arith.constant 0 : i32
    return %arg0, %c0_i32, %c0_i32_0 : i32, i32, i32
  }
  func.func @transform_1(%arg0: i32) -> (i32, i32, i32) {
    %c0_i32 = arith.constant 0 : i32
    %c0_i32_0 = arith.constant 0 : i32
    %c0_i32_1 = arith.constant 0 : i32
    %c0_i32_2 = arith.constant 0 : i32
    return %c0_i32, %c0_i32_0, %c0_i32_1 : i32, i32, i32
  }
  func.func @transform_2(%arg0: i32) -> (i32, i32, i32) {
    %c0_i32 = arith.constant 0 : i32
    %c0_i32_0 = arith.constant 0 : i32
    %c0_i32_1 = arith.constant 0 : i32
    %c0_i32_2 = arith.constant 0 : i32
    return %c0_i32, %c0_i32_0, %c0_i32_1 : i32, i32, i32
  }
  func.func @transform_3(%arg0: i32) -> (i32, i32, i32, i32) {
    %c0_i32 = arith.constant 0 : i32
    %c0_i32_0 = arith.constant 0 : i32
    %c0_i32_1 = arith.constant 0 : i32
    %c0_i32_2 = arith.constant 0 : i32
    %c0_i32_3 = arith.constant 0 : i32
    return %c0_i32, %c0_i32_0, %c0_i32_1, %c0_i32_2 : i32, i32, i32, i32
  }
  func.func @transform_4(%arg0: i32) -> (i32, i32, i32) {
    %c0_i32 = arith.constant 0 : i32
    %c0_i32_0 = arith.constant 0 : i32
    %c0_i32_1 = arith.constant 0 : i32
    %c0_i32_2 = arith.constant 0 : i32
    return %c0_i32, %c0_i32_0, %c0_i32_1 : i32, i32, i32
  }
  func.func @transform_5(%arg0: i32) -> (i32, i32, i32) {
    %c0_i32 = arith.constant 0 : i32
    %c0_i32_0 = arith.constant 0 : i32
    %c0_i32_1 = arith.constant 0 : i32
    return %arg0, %c0_i32, %c0_i32_0 : i32, i32, i32
  }
}

</mosaic_0001>

<bundles_post_ra>
// kernel: up_block_wo_det_forward.1
= control target key start
LH: loop header
LB: loop body
LE: loop exit
PB: predicated region body
PF: predicated region fallthrough
CT: control target
= control target key end

     0   :  { %s7163_s18 = smov 0   ;;  %s9603_s0 = inlined_call_operand.vmem [shape: f32[2,8,1664], index: 0, kind: input, shape index: {}]   ;;  %s9604_s1 = inlined_call_operand.vmem [shape: f32[4,8,1536], index: 1, kind: input, shape index: {}]   ;;  %s9605_s2 = inlined_call_operand.vmem [shape: bf16[4,8,32], index: 2, kind: input, shape index: {}]   ;;  %s9606_s3 = inlined_call_operand.vmem [shape: bf16[4,3,8,24], index: 3, kind: input, shape index: {}]   ;;  %s9607_s4 = inlined_call_operand.vmem [shape: f32[5,8,1], index: 4, kind: input, shape index: {}]   ;;  %s9608_s5 = inlined_call_operand.vmem [shape: f32[2,8,1152], index: 5, kind: output, shape index: {}]  }
   0x1 LB: > { %s6490_s19 = sadd.s32 4294967295, %s7122_s18   ;;  %p6494_p0 = scmp.ge.s32.totalorder %s7122_s18, 1  ;;  %s7122_s18 = sphi %s7163_s18, %s15_s18  }
   0x2   : > { %p187_p1 = scmp.lt.s32.totalorder %s7122_s18, 3 }
   0x4   : > { %p188_p2 = pnand %p6494_p0, %p187_p1 }
   0x5   : > { %p215_p3 = scmp.lt.s32.totalorder (!%p188_p2), %s6490_s19, 1  ;;  %s7124_s24 = smov (!%p188_p2), 125  }
   0x6   : > { %191 = sbr.rel (%p188_p2) target bundleno = 2694 (0xa86), region = 40  ;;  %s7125_s25 = smov (!%p188_p2), 126  }
   0x7   : > { %s7126_s26 = smov (!%p188_p2), 127   ;;  %s7127_s27 = smov (!%p188_p2), 92  }
   0x8   : > { %s7129_s28 = smov (!%p188_p2), 56   ;;  %s7130_s29 = smov (!%p188_p2), 20  }
   0xb   : > { %s9610_s19 = smov (!%p215_p3, %s6490_s19), 1  ;;  %vm391_vm0 = vcmask 1022976   ;;  %vm343_vm1 = vcmask 1031168   ;;  %vm295_vm2 = vcmask 1039360   ;;  %vm511_vm3 = vcmask 752640  }
   0xc   : > { %s6795_s20 = smul.u32 104, %s9610_s19  ;;  %vm558_vm4 = vcmask 261120   ;;  %vm1105_vm5 = vcmask 457728   ;;  %vm1489_vm6 = vcmask 162816  }
   0xd   : > { %s6796_s17 = smul.u32 72, %s9610_s19 }
   0xe   : > { %s7177_s23 = scalar_lea.vmem %s9603_s0, %s6795_s20 }
   0xf   : > { %v7180_v0 = vld [vmem:[%s7177_s23 + $0x8] sm:$0xff]  ;;  %v7183_v1 = vld [vmem:[%s7177_s23 + $0x10] sm:$0xff]  ;;  %v7186_v2 = vld [vmem:[%s7177_s23] sm:$0xff]  ;;  %s9586_s22 = scalar_lea.vmem %s9608_s5, %s6796_s17 }
  0x10   : > { %v6824_v3 = vpack.i.bf16 %v7183_v1, %v7180_v0  ;;  %v7191_v4 = vld [vmem:[%s7177_s23 + $0x18] sm:$0xff]  ;;  %v7200_v6 = vld [vmem:[%s7177_s23 + $0x20] sm:$0xff]  ;;  %v7203_v7 = vld [vmem:[%s7177_s23 + $0x28] sm:$0xff] }
  0x11   : > { %v6829_v5 = vpack.i.bf16 %v7186_v2, %v7191_v4  ;;  %v6849_v8 = vpack.i.bf16 %v7203_v7, %v7200_v6  ;;  %v7210_v9 = vld [vmem:[%s7177_s23 + $0x30] sm:$0xff]  ;;  %v7213_v10 = vld [vmem:[%s7177_s23 + $0x38] sm:$0xff]  ;;  %v7222_v12 = vld [vmem:[%s7177_s23 + $0x40] sm:$0xff] }
  0x12   : > { %6825 = vrot.lane.b32.xlu1 %v6824_v3, %s7124_s24  ;;  %6815 = vrot.lane.b32.xlu0 %v6824_v3, %s7125_s25  ;;  %v6859_v11 = vpack.i.bf16 %v7213_v10, %v7210_v9  ;;  %v7225_v13 = vld [vmem:[%s7177_s23 + $0x48] sm:$0xff]  ;;  %v7232_v15 = vld [vmem:[%s7177_s23 + $0x50] sm:$0xff] }
  0x13   : > { %v6879_v14 = vpack.i.bf16 %v7225_v13, %v7222_v12  ;;  %v7235_v16 = vld [vmem:[%s7177_s23 + $0x58] sm:$0xff]  ;;  %v7246_v18 = vld [vmem:[%s7177_s23 + $0x60] sm:$0xff] }
  0x14   : > { %v6889_v17 = vpack.i.bf16 %v7235_v16, %v7232_v15 }
  0x16   : > { %6830 = vrot.lane.b32.xlu1 %v6829_v5, %s7124_s24  ;;  %6820 = vrot.lane.b32.xlu0 %v6829_v5, %s7125_s25 }
  0x1a   : > { %6840 = vrot.lane.b32.xlu1 %v6829_v5, %s7126_s26  ;;  %6835 = vrot.lane.b32.xlu0 %v6824_v3, %s7126_s26 }
  0x1e   : > { %6850 = vrot.lane.b32.xlu1 %v6849_v8, %s7124_s24  ;;  %6845 = vrot.lane.b32.xlu0 %v6849_v8, %s7125_s25 }
  0x22   : > { %6860 = vrot.lane.b32.xlu1 %v6859_v11, %s7124_s24  ;;  %6855 = vrot.lane.b32.xlu0 %v6859_v11, %s7125_s25 }
  0x26   : > { %6870 = vrot.lane.b32.xlu1 %v6859_v11, %s7126_s26  ;;  %6865 = vrot.lane.b32.xlu0 %v6849_v8, %s7126_s26 }
  0x2a   : > { %6880 = vrot.lane.b32.xlu1 %v6879_v14, %s7124_s24  ;;  %6875 = vrot.lane.b32.xlu0 %v6879_v14, %s7125_s25 }
  0x2e   : > { %6890 = vrot.lane.b32.xlu1 %v6889_v17, %s7124_s24  ;;  %6885 = vrot.lane.b32.xlu0 %v6889_v17, %s7125_s25 }
  0x32   : > { %6900 = vrot.lane.b32.xlu1 %v6889_v17, %s7126_s26  ;;  %6895 = vrot.lane.b32.xlu0 %v6879_v14, %s7126_s26 }
  0x36   : > { %1424 = vrot.lane.b32.xlu1 %v7246_v18, %s7124_s24  ;;  %1419 = vrot.lane.b32.xlu0 %v7246_v18, %s7125_s25 }
  0x3a   : > { %1414 = vrot.lane.b32.xlu0 %v7246_v18, %s7126_s26 }
  0x84   : > { %v6826_v19 = vpop.permute.xlu1 %6825  ;;  %v6816_v20 = vpop.permute.xlu0 %6815 }
  0x85   : > { %v6828_v33 = vunpack.i.h.bf16 %v6826_v19  ;;  %v6827_v34 = vunpack.i.l.bf16 %v6826_v19  ;;  %v6818_v35 = vunpack.i.h.bf16 %v6816_v20  ;;  %v6817_v36 = vunpack.i.l.bf16 %v6816_v20 }
  0x87   : > { %v393_v42 = vsel %vm391_vm0, %v6827_v34, %v6828_v33  ;;  %v345_v43 = vsel %vm343_vm1, %v6817_v36, %v6818_v35 }
  0x88   : > { %v7254_v21 = vpop.permute.xlu1 %6830  ;;  %v7256_v22 = vpop.permute.xlu0 %6820  ;;  %v7306_v52 = vpack.c.bf16 %v393_v42, %v345_v43  ;;  %v7128_v42 = vmov 0  }
  0x89   : > { %v6833_v41 = vunpack.i.h.bf16 %v7254_v21  ;;  %v6832_v44 = vunpack.i.l.bf16 %v7254_v21  ;;  %v6823_v48 = vunpack.i.h.bf16 %v7256_v22  ;;  %v6822_v49 = vunpack.i.l.bf16 %v7256_v22  ;;  %594 = vmatprep.mubr.bf16.mxu0 %v7128_v42  ;;  %635 = vmatprep.mubr.bf16.mxu1 %v7128_v42 }
  0x8a   : > { %6904 = vset.pattern.permute.xlu1 %v7128_v42  ;;  %6965 = vset.pattern.permute.xlu0 %v7128_v42 }
  0x8b   : > { %v392_v51 = vsel %vm391_vm0, %v6833_v41, %v6827_v34  ;;  %v394_v53 = vsel %vm391_vm0, %v6828_v33, %v6832_v44  ;;  %v344_v59 = vsel %vm343_vm1, %v6823_v48, %v6817_v36  ;;  %v346_v60 = vsel %vm343_vm1, %v6818_v35, %v6822_v49 }
  0x8c   : > { %v7258_v23 = vpop.permute.xlu1 %6840  ;;  %v6836_v24 = vpop.permute.xlu0 %6835  ;;  %v7338_v11 = vpack.c.bf16 %v392_v51, %v344_v59  ;;  %v7340_v14 = vpack.c.bf16 %v394_v53, %v346_v60 }
  0x8d   : > { %v6842_v54 = vunpack.i.l.bf16 %v7258_v23  ;;  %v6838_v55 = vunpack.i.h.bf16 %v6836_v24  ;;  %v6843_v3 = vunpack.i.h.bf16 %v7258_v23  ;;  %v6837_v5 = vunpack.i.l.bf16 %v6836_v24 }
  0x8f   : > { %v298_v8 = vsel %vm295_vm2, %v6838_v55, %v6842_v54  ;;  %v297_v17 = vsel %vm295_vm2, %v6837_v5, %v6838_v55  ;;  %v296_v21 = vsel %vm295_vm2, %v6843_v3, %v6837_v5 }
  0x90   : > { %v7260_v25 = vpop.permute.xlu1 %6850  ;;  %v7262_v26 = vpop.permute.xlu0 %6845  ;;  %v7351_v22 = vpack.c.bf16 %v298_v8, %v7183_v1  ;;  %v7356_v33 = vpack.c.bf16 %v297_v17, %v7180_v0  ;;  %v7369_v0 = vpack.c.bf16 %v296_v21, %v7186_v2 }
  0x91   : > { %v6852_v19 = vunpack.i.l.bf16 %v7260_v25  ;;  %v6847_v20 = vunpack.i.l.bf16 %v7262_v26  ;;  %v6853_v23 = vunpack.i.h.bf16 %v7260_v25  ;;  %v6848_v24 = vunpack.i.h.bf16 %v7262_v26 }
  0x93   : > { %v395_v34 = vsel %vm391_vm0, %v6832_v44, %v6852_v19  ;;  %v347_v35 = vsel %vm343_vm1, %v6822_v49, %v6847_v20  ;;  %v396_v1 = vsel %vm391_vm0, %v6852_v19, %v6853_v23  ;;  %v348_v25 = vsel %vm343_vm1, %v6847_v20, %v6848_v24 }
  0x94   : > { %v7264_v27 = vpop.permute.xlu1 %6860  ;;  %v7266_v28 = vpop.permute.xlu0 %6855  ;;  %v7376_v43 = vpack.c.bf16 %v395_v34, %v347_v35 }
  0x95   : > { %v6862_v36 = vunpack.i.l.bf16 %v7264_v27  ;;  %v6857_v41 = vunpack.i.l.bf16 %v7266_v28  ;;  %v6863_v26 = vunpack.i.h.bf16 %v7264_v27  ;;  %v6858_v48 = vunpack.i.h.bf16 %v7266_v28 }
  0x96   : > { %v7389_v27 = vpack.c.bf16 %v396_v1, %v348_v25 }
  0x97   : > { %v397_v44 = vsel %vm391_vm0, %v6853_v23, %v6862_v36  ;;  %v349_v49 = vsel %vm343_vm1, %v6848_v24, %v6857_v41  ;;  %v398_v51 = vsel %vm391_vm0, %v6862_v36, %v6863_v26  ;;  %v350_v55 = vsel %vm343_vm1, %v6857_v41, %v6858_v48 }
  0x98   : > { %v7268_v29 = vpop.permute.xlu1 %6870  ;;  %v7270_v30 = vpop.permute.xlu0 %6865  ;;  %v7387_v53 = vpack.c.bf16 %v397_v44, %v349_v49  ;;  %v7403_v8 = vpack.c.bf16 %v398_v51, %v350_v55 }
  0x99   : > { %v6867_v2 = vunpack.i.l.bf16 %v7270_v30  ;;  %v6872_v28 = vunpack.i.l.bf16 %v7268_v29  ;;  %v6868_v59 = vunpack.i.h.bf16 %v7270_v30  ;;  %v6873_v3 = vunpack.i.h.bf16 %v7268_v29 }
  0x9b   : > { %v299_v60 = vsel %vm295_vm2, %v6842_v54, %v6867_v2  ;;  %v301_v17 = vsel %vm295_vm2, %v6868_v59, %v6872_v28  ;;  %v300_v19 = vsel %vm295_vm2, %v6867_v2, %v6868_v59  ;;  %v302_v29 = vsel %vm295_vm2, %v6872_v28, %v6873_v3 }
  0x9c   : > { %v7272_v31 = vpop.permute.xlu1 %6880  ;;  %v7274_v32 = vpop.permute.xlu0 %6875  ;;  %v7401_v5 = vpack.c.bf16 %v299_v60, %v7191_v4  ;;  %v7417_v21 = vpack.c.bf16 %v301_v17, %v7203_v7  ;;  %v7420_v23 = vpack.c.bf16 %v300_v19, %v7200_v6  ;;  %v7434_v6 = vpack.c.bf16 %v302_v29, %v7210_v9 }
  0x9d   : > { %v6882_v30 = vunpack.i.l.bf16 %v7272_v31  ;;  %v6877_v54 = vunpack.i.l.bf16 %v7274_v32  ;;  %v6883_v4 = vunpack.i.h.bf16 %v7272_v31  ;;  %v6878_v20 = vunpack.i.h.bf16 %v7274_v32 }
  0x9f   : > { %v399_v24 = vsel %vm391_vm0, %v6863_v26, %v6882_v30  ;;  %v351_v34 = vsel %vm343_vm1, %v6858_v48, %v6877_v54  ;;  %v400_v7 = vsel %vm391_vm0, %v6882_v30, %v6883_v4  ;;  %v352_v32 = vsel %vm343_vm1, %v6877_v54, %v6878_v20 }
  0xa0   : > { %v7276_v37 = vpop.permute.xlu1 %6890  ;;  %v7278_v38 = vpop.permute.xlu0 %6885  ;;  %v7431_v31 = vpack.c.bf16 %v399_v24, %v351_v34  ;;  %v7448_v9 = vpack.c.bf16 %v400_v7, %v352_v32 }
  0xa1   : > { %v7281_v39 = vunpack.i.h.bf16 %v7276_v37  ;;  %v7284_v40 = vunpack.i.h.bf16 %v7278_v38  ;;  %v6892_v35 = vunpack.i.l.bf16 %v7276_v37  ;;  %v6887_v36 = vunpack.i.l.bf16 %v7278_v38 }
  0xa3   : > { %v7296_v47 = vpack.c.bf16 %v7281_v39, %v7284_v40  ;;  %v401_v41 = vsel %vm391_vm0, %v6883_v4, %v6892_v35  ;;  %v353_v37 = vsel %vm343_vm1, %v6878_v20, %v6887_v36  ;;  %v402_v1 = vsel %vm391_vm0, %v6892_v35, %v7281_v39  ;;  %v7584_v35 = vld [vmem:[%s9605_s2 + $0x4] sm:$0xf] }
  0xa4   : > { %v7290_v45 = vpop.permute.xlu1 %6900  ;;  %v7292_v46 = vpop.permute.xlu0 %6895  ;;  %v7446_v25 = vpack.c.bf16 %v401_v41, %v353_v37  ;;  %v354_v26 = vsel %vm343_vm1, %v6887_v36, %v7284_v40 }
  0xa5   : > { %v7301_v50 = vunpack.i.h.bf16 %v7290_v45  ;;  %509 = vrot.lane.b32.xlu0 %v7296_v47, %s7127_s27  ;;  %v6897_v38 = vunpack.i.l.bf16 %v7292_v46  ;;  %v6902_v44 = vunpack.i.l.bf16 %v7290_v45  ;;  %v6898_v48 = vunpack.i.h.bf16 %v7292_v46 }
  0xa6   : > { %v7463_v51 = vpack.c.bf16 %v402_v1, %v354_v26 }
  0xa7   : > { %v7316_v58 = vpack.c.bf16 %v7301_v50, %v7235_v16  ;;  %v303_v49 = vsel %vm295_vm2, %v6873_v3, %v6897_v38 }
  0xa8   : > { %v7310_v56 = vpop.permute.xlu1 %1424  ;;  %v7312_v57 = vpop.permute.xlu0 %1419  ;;  %v7461_v2 = vpack.c.bf16 %v303_v49, %v7213_v10  ;;  %v306_v10 = vsel %vm295_vm2, %v6902_v44, %v7301_v50 }
  0xa9   : > { %v7323_v61 = vsel %vm391_vm0, %v7281_v39, %v7310_v56  ;;  %v7328_v62 = vsel %vm343_vm1, %v7284_v40, %v7312_v57  ;;  %485 = vrot.lane.b32.xlu1 %v7316_v58, %s7127_s27  ;;  %489 = vrot.lane.b32.xlu0 %v7306_v52, %s7127_s27  ;;  %v304_v39 = vsel %vm295_vm2, %v6897_v38, %v6898_v48 }
  0xaa   : > { %v1431_v63 = vpack.c.bf16 %v7323_v61, %v7328_v62  ;;  %v305_v40 = vsel %vm295_vm2, %v6898_v48, %v6902_v44  ;;  %v7471_v45 = vpack.c.bf16 %v304_v39, %v7222_v12  ;;  %v7483_v55 = vpack.c.bf16 %v306_v10, %v7232_v15 }
  0xab   : > { %v7474_v46 = vpack.c.bf16 %v305_v40, %v7225_v13  ;;  %v1432_v32 = vpack.c.bf16 %v7310_v56, %v7312_v57 }
  0xac   : > { %v1415_v12 = vpop.permute.xlu0 %1414 }
  0xad   : > { %487 = vrot.lane.b32.xlu0 %v7338_v11, %s7127_s27  ;;  %491 = vrot.lane.b32.xlu1 %v7340_v14, %s7127_s27  ;;  %v1430_v26 = vpack.c.bf16 %v1415_v12, %v7246_v18  ;;  %v1416_v57 = vsel %vm295_vm2, %v7301_v50, %v1415_v12 }
  0xae   : > { %v1429_v40 = vpack.c.bf16 %v1416_v57, %v7235_v16  ;;  %v246_v16 = vld [vmem:[%s9607_s4] sm:$0xff] }
  0xb1   : > { %467 = vrot.lane.b32.xlu0 %v7351_v22, %s7127_s27  ;;  %465 = vrot.lane.b32.xlu1 %v7356_v33, %s7127_s27 }
  0xb5   : > { %493 = vrot.lane.b32.xlu0 %v7376_v43, %s7127_s27  ;;  %463 = vrot.lane.b32.xlu1 %v7369_v0, %s7127_s27 }
  0xb9   : > { %497 = vrot.lane.b32.xlu0 %v7387_v53, %s7127_s27  ;;  %495 = vrot.lane.b32.xlu1 %v7389_v27, %s7127_s27 }
  0xbd   : > { %469 = vrot.lane.b32.xlu0 %v7401_v5, %s7127_s27  ;;  %499 = vrot.lane.b32.xlu1 %v7403_v8, %s7127_s27 }
  0xc1   : > { %473 = vrot.lane.b32.xlu0 %v7417_v21, %s7127_s27  ;;  %471 = vrot.lane.b32.xlu1 %v7420_v23, %s7127_s27 }
  0xc5   : > { %501 = vrot.lane.b32.xlu0 %v7431_v31, %s7127_s27  ;;  %475 = vrot.lane.b32.xlu1 %v7434_v6, %s7127_s27 }
  0xc9   : > { %505 = vrot.lane.b32.xlu0 %v7446_v25, %s7127_s27  ;;  %503 = vrot.lane.b32.xlu1 %v7448_v9, %s7127_s27 }
  0xcd   : > { %477 = vrot.lane.b32.xlu0 %v7461_v2, %s7127_s27  ;;  %507 = vrot.lane.b32.xlu1 %v7463_v51, %s7127_s27 }
  0xd1   : > { %481 = vrot.lane.b32.xlu0 %v7474_v46, %s7127_s27  ;;  %479 = vrot.lane.b32.xlu1 %v7471_v45, %s7127_s27 }
  0xd5   : > { %1085 = vrot.lane.b32.xlu0 %v7340_v14, %s7129_s28  ;;  %483 = vrot.lane.b32.xlu1 %v7483_v55, %s7127_s27 }
  0xd9   : > { %1059 = vrot.lane.b32.xlu0 %v7356_v33, %s7129_s28  ;;  %1083 = vrot.lane.b32.xlu1 %v7306_v52, %s7129_s28 }
  0xdd   : > { %1057 = vrot.lane.b32.xlu0 %v7369_v0, %s7129_s28  ;;  %1081 = vrot.lane.b32.xlu1 %v7338_v11, %s7129_s28 }
  0xe1   : > { %1089 = vrot.lane.b32.xlu0 %v7389_v27, %s7129_s28  ;;  %1061 = vrot.lane.b32.xlu1 %v7351_v22, %s7129_s28 }
  0xe5   : > { %1093 = vrot.lane.b32.xlu0 %v7403_v8, %s7129_s28  ;;  %1087 = vrot.lane.b32.xlu1 %v7376_v43, %s7129_s28 }
  0xe9   : > { %1065 = vrot.lane.b32.xlu0 %v7420_v23, %s7129_s28  ;;  %1091 = vrot.lane.b32.xlu1 %v7387_v53, %s7129_s28 }
  0xed   : > { %1069 = vrot.lane.b32.xlu0 %v7434_v6, %s7129_s28  ;;  %1063 = vrot.lane.b32.xlu1 %v7401_v5, %s7129_s28 }
  0xf1   : > { %1097 = vrot.lane.b32.xlu0 %v7448_v9, %s7129_s28  ;;  %1067 = vrot.lane.b32.xlu1 %v7417_v21, %s7129_s28 }
  0xf5   : > { %1101 = vrot.lane.b32.xlu0 %v7463_v51, %s7129_s28  ;;  %1095 = vrot.lane.b32.xlu1 %v7431_v31, %s7129_s28 }
  0xf9   : > { %1073 = vrot.lane.b32.xlu0 %v7471_v45, %s7129_s28  ;;  %1099 = vrot.lane.b32.xlu1 %v7446_v25, %s7129_s28 }
  0xfd   : > { %1077 = vrot.lane.b32.xlu0 %v7483_v55, %s7129_s28  ;;  %1071 = vrot.lane.b32.xlu1 %v7461_v2, %s7129_s28 }
 0x101   : > { %1465 = vrot.lane.b32.xlu0 %v7306_v52, %s7130_s29  ;;  %1075 = vrot.lane.b32.xlu1 %v7474_v46, %s7129_s28 }
 0x105   : > { %1463 = vrot.lane.b32.xlu0 %v7338_v11, %s7130_s29  ;;  %1103 = vrot.lane.b32.xlu1 %v7296_v47, %s7129_s28 }
 0x109   : > { %1439 = vrot.lane.b32.xlu0 %v7356_v33, %s7130_s29  ;;  %1467 = vrot.lane.b32.xlu1 %v7340_v14, %s7130_s29 }
 0x10d   : > { %1437 = vrot.lane.b32.xlu0 %v7369_v0, %s7130_s29  ;;  %1079 = vrot.lane.b32.xlu1 %v7316_v58, %s7129_s28 }
 0x111   : > { %1471 = vrot.lane.b32.xlu0 %v7389_v27, %s7130_s29  ;;  %1441 = vrot.lane.b32.xlu1 %v7351_v22, %s7130_s29 }
 0x115   : > { %1475 = vrot.lane.b32.xlu0 %v7403_v8, %s7130_s29  ;;  %1469 = vrot.lane.b32.xlu1 %v7376_v43, %s7130_s29 }
 0x117   : > { %v7553_v13 = vpop.permute.xlu0 %509 }
 0x119   : > { %1445 = vrot.lane.b32.xlu0 %v7420_v23, %s7130_s29  ;;  %1473 = vrot.lane.b32.xlu1 %v7387_v53, %s7130_s29 }
 0x11b   : > { %v7559_v15 = vpop.permute.xlu1 %485  ;;  %v490_v28 = vpop.permute.xlu0 %489 }
 0x11d   : > { %1449 = vrot.lane.b32.xlu0 %v7434_v6, %s7130_s29  ;;  %1443 = vrot.lane.b32.xlu1 %v7401_v5, %s7130_s29 }
 0x11f   : > { %v488_v59 = vpop.permute.xlu0 %487  ;;  %v492_v60 = vpop.permute.xlu1 %491 }
 0x120   : > { %v524_v3 = vsel %vm511_vm3, %v490_v28, %v492_v60  ;;  %v523_v17 = vsel %vm511_vm3, %v488_v59, %v490_v28 }
 0x121   : > { %1479 = vrot.lane.b32.xlu0 %v7448_v9, %s7130_s29  ;;  %1447 = vrot.lane.b32.xlu1 %v7417_v21, %s7130_s29 }
 0x122   : > { %574 = vmatprep.subr.bf16.mxu0 %v524_v3 }
 0x123   : > { %575 = vmatpush1.bf16.msra.mxu0 %v523_v17  ;;  %v468_v19 = vpop.permute.xlu0 %467  ;;  %v466_v30 = vpop.permute.xlu1 %465 }
 0x124   : > { %v513_v54 = vsel %vm511_vm3, %v466_v30, %v468_v19 }
 0x125   : > { %1483 = vrot.lane.b32.xlu0 %v7463_v51, %s7130_s29  ;;  %1477 = vrot.lane.b32.xlu1 %v7431_v31, %s7130_s29 }
 0x126   : > { %576 = vmatprep.subr.bf16.mxu0 %v513_v54 }
 0x127   : > { %v494_v29 = vpop.permute.xlu0 %493  ;;  %v464_v4 = vpop.permute.xlu1 %463 }
 0x128   : > { %v512_v20 = vsel %vm511_vm3, %v464_v4, %v466_v30  ;;  %v525_v7 = vsel %vm511_vm3, %v492_v60, %v494_v29 }
 0x129   : > { %1453 = vrot.lane.b32.xlu0 %v7471_v45, %s7130_s29  ;;  %1481 = vrot.lane.b32.xlu1 %v7446_v25, %s7130_s29 }
 0x12a   : > { %577 = vmatpush1.bf16.msra.mxu0 %v512_v20 }
 0x12b   : > { %v498_v24 = vpop.permute.xlu0 %497  ;;  %v496_v34 = vpop.permute.xlu1 %495 }
 0x12c   : > { %v526_v36 = vsel %vm511_vm3, %v494_v29, %v496_v34  ;;  %v527_v1 = vsel %vm511_vm3, %v496_v34, %v498_v24 }
 0x12d   : > { %1457 = vrot.lane.b32.xlu0 %v7483_v55, %s7130_s29  ;;  %1451 = vrot.lane.b32.xlu1 %v7461_v2, %s7130_s29 }
 0x12e   : > { %615 = vmatprep.subr.bf16.mxu1 %v526_v36  ;;  %6500 = vmatmul.mubr.msk.bf16.vlgmr.msra.gmra.mxu0 %vm558_vm4, %v7584_v35 }
 0x12f   : > { %616 = vmatpush1.bf16.msra.mxu1 %v525_v7  ;;  %v470_v41 = vpop.permute.xlu0 %469  ;;  %v500_v37 = vpop.permute.xlu1 %499  ;;  %676 = vmatprep.mubr.bf16.mxu0 %v7128_v42 }
 0x130   : > { %v528_v38 = vsel %vm511_vm3, %v498_v24, %v500_v37  ;;  %v514_v49 = vsel %vm511_vm3, %v468_v19, %v470_v41 }
 0x131   : > { %1487 = vrot.lane.b32.xlu0 %v1432_v32, %s7130_s29  ;;  %1455 = vrot.lane.b32.xlu1 %v7474_v46, %s7130_s29 }
 0x132   : > { %656 = vmatprep.subr.bf16.mxu0 %v528_v38 }
 0x133   : > { %657 = vmatpush1.bf16.msra.mxu0 %v527_v1  ;;  %v474_v44 = vpop.permute.xlu0 %473  ;;  %v472_v56 = vpop.permute.xlu1 %471 }
 0x134   : > { %v515_v48 = vsel %vm511_vm3, %v470_v41, %v472_v56  ;;  %v516_v50 = vsel %vm511_vm3, %v472_v56, %v474_v44 }
 0x135   : > { %1461 = vrot.lane.b32.xlu0 %v1430_v26, %s7130_s29  ;;  %1485 = vrot.lane.b32.xlu1 %v1431_v63, %s7130_s29 }
 0x136   : > { %617 = vmatprep.subr.bf16.mxu1 %v515_v48 }
 0x137   : > { %618 = vmatpush1.bf16.msra.mxu1 %v514_v49  ;;  %v502_v18 = vpop.permute.xlu0 %501  ;;  %v476_v39 = vpop.permute.xlu1 %475 }
 0x138   : > { %v517_v10 = vsel %vm511_vm3, %v474_v44, %v476_v39  ;;  %v529_v12 = vsel %vm511_vm3, %v500_v37, %v502_v18 }
 0x139   : > { %1459 = vrot.lane.b32.xlu1 %v1429_v40, %s7130_s29  ;;  %658 = vmatprep.subr.bf16.mxu0 %v517_v10 }
 0x13a   : > { %659 = vmatpush1.bf16.msra.mxu0 %v516_v50  ;;  %6501 = vmatmul.mubr.msk.bf16.vlgmr.msra.gmra.mxu1 %vm558_vm4, %v7584_v35 }
 0x13b   : > { %v506_v61 = vpop.permute.xlu0 %505  ;;  %v504_v62 = vpop.permute.xlu1 %503  ;;  %717 = vmatprep.mubr.bf16.mxu1 %v7128_v42 }
 0x13c   : > { %v530_v63 = vsel %vm511_vm3, %v502_v18, %v504_v62  ;;  %v531_v3 = vsel %vm511_vm3, %v504_v62, %v506_v61 }
 0x13d   : > { %697 = vmatprep.subr.bf16.mxu1 %v530_v63  ;;  %6502 = vmatmul.mubr.msk.bf16.vlgmr.msra.gmra.mxu0 %vm558_vm4, %v7584_v35 }
 0x13e   : > { %698 = vmatpush1.bf16.msra.mxu1 %v529_v12  ;;  %758 = vmatprep.mubr.bf16.mxu0 %v7128_v42 }
 0x13f   : > { %v478_v28 = vpop.permute.xlu0 %477  ;;  %v508_v59 = vpop.permute.xlu1 %507  ;;  %1801 = vperm.xlu1 %6904, %v246_v16  }
 0x140   : > { %v532_v60 = vsel %vm511_vm3, %v506_v61, %v508_v59  ;;  %v518_v54 = vsel %vm511_vm3, %v476_v39, %v478_v28  ;;  %v533_v34 = vsel %vm511_vm3, %v508_v59, %v7553_v13 }
 0x141   : > { %738 = vmatprep.subr.bf16.mxu0 %v532_v60 }
 0x142   : > { %739 = vmatpush1.bf16.msra.mxu0 %v531_v3 }
 0x143   : > { %v482_v17 = vpop.permute.xlu0 %481  ;;  %v480_v19 = vpop.permute.xlu1 %479 }
 0x144   : > { %v519_v30 = vsel %vm511_vm3, %v478_v28, %v480_v19  ;;  %v520_v24 = vsel %vm511_vm3, %v480_v19, %v482_v17 }
 0x145   : > { %699 = vmatprep.subr.bf16.mxu1 %v519_v30 }
 0x146   : > { %700 = vmatpush1.bf16.msra.mxu1 %v518_v54 }
 0x147   : > { %v7631_v29 = vpop.permute.xlu0 %1085  ;;  %779 = vmatprep.subr.bf16.mxu1 %v7553_v13  ;;  %v484_v4 = vpop.permute.xlu1 %483 }
 0x148   : > { %v521_v20 = vsel %vm511_vm3, %v482_v17, %v484_v4  ;;  %v522_v32 = vsel %vm511_vm3, %v484_v4, %v7559_v15  ;;  %v7759_v4 = vld [vmem:[%s9605_s2 + $0xc] sm:$0xf] }
 0x149   : > { %6503 = vmatmul.mubr.msk.bf16.vlgmr.msra.gmra.mxu1 %vm558_vm4, %v7584_v35  ;;  %740 = vmatprep.subr.bf16.mxu0 %v521_v20 }
 0x14a   : > { %741 = vmatpush1.bf16.msra.mxu0 %v520_v24  ;;  %780 = vmatpush1.bf16.msra.mxu1 %v533_v34 }
 0x14b   : > { %v7640_v36 = vpop.permute.xlu0 %1059  ;;  %781 = vmatprep.subr.bf16.mxu1 %v7559_v15  ;;  %823 = vmatprep.subr.bf16.mxu0 %v7306_v52  ;;  %v1084_v7 = vpop.permute.xlu1 %1083  ;;  %v239_v52 = vld [vmem:[%s9605_s2] sm:$0xf] }
 0x14c   : > { %799 = vmatprep.mubr.bf16.mxu1 %v7128_v42 }
 0x14d   : > { %6504 = vmatmul.mubr.msk.bf16.vlgmr.msra.gmra.mxu0 %vm558_vm4, %v7584_v35 }
 0x14e   : > { %782 = vmatpush1.bf16.msra.mxu1 %v522_v32  ;;  %824 = vmatpush1.bf16.msra.mxu0 %v7338_v11 }
 0x14f   : > { %v1058_v13 = vpop.permute.xlu0 %1057  ;;  %825 = vmatprep.subr.bf16.mxu0 %v7356_v33  ;;  %864 = vmatprep.subr.bf16.mxu1 %v7376_v43  ;;  %v1082_v41 = vpop.permute.xlu1 %1081 }
 0x150   : > { %843 = vmatprep.mubr.bf16.mxu0 %v7128_v42 }
 0x151   : > { %6505 = vmatmul.mubr.msk.bf16.vlgmr.msra.gmra.mxu1 %vm558_vm4, %v7584_v35 }
 0x152   : > { %826 = vmatpush1.bf16.msra.mxu0 %v7369_v0  ;;  %865 = vmatpush1.bf16.msra.mxu1 %v7340_v14 }
 0x153   : > { %v7660_v11 = vpop.permute.xlu0 %1089  ;;  %866 = vmatprep.subr.bf16.mxu1 %v7401_v5  ;;  %905 = vmatprep.subr.bf16.mxu0 %v7387_v53  ;;  %v1062_v33 = vpop.permute.xlu1 %1061  ;;  %v1118_v5 = vsel %vm1105_vm5, %v1084_v7, %v7631_v29 }
 0x154   : > { %884 = vmatprep.mubr.bf16.mxu1 %v7128_v42 }
 0x155   : > { %6506 = vmatmul.mubr.msk.bf16.vlgmr.msra.gmra.mxu0 %vm558_vm4, %v239_v52 }
 0x156   : > { %867 = vmatpush1.bf16.msra.mxu1 %v7351_v22  ;;  %906 = vmatpush1.bf16.msra.mxu0 %v7389_v27 }
 0x157   : > { %v7668_v14 = vpop.permute.xlu0 %1093  ;;  %907 = vmatprep.subr.bf16.mxu0 %v7417_v21  ;;  %946 = vmatprep.subr.bf16.mxu1 %v7431_v31  ;;  %v1088_v0 = vpop.permute.xlu1 %1087 }
 0x158   : > { %925 = vmatprep.mubr.bf16.mxu0 %v7128_v42  ;;  %v1120_v31 = vsel %vm1105_vm5, %v1088_v0, %v7660_v11 }
 0x159   : > { %6507 = vmatmul.mubr.msk.bf16.vlgmr.msra.gmra.mxu1 %vm558_vm4, %v239_v52 }
 0x15a   : > { %908 = vmatpush1.bf16.msra.mxu0 %v7420_v23  ;;  %947 = vmatpush1.bf16.msra.mxu1 %v7403_v8  ;;  %v1107_v23 = vsel %vm1105_vm5, %v7640_v36, %v1062_v33 }
 0x15b   : > { %v1066_v43 = vpop.permute.xlu0 %1065  ;;  %948 = vmatprep.subr.bf16.mxu1 %v7461_v2  ;;  %987 = vmatprep.subr.bf16.mxu0 %v7446_v25  ;;  %v1092_v22 = vpop.permute.xlu1 %1091  ;;  %v1106_v25 = vsel %vm1105_vm5, %v1058_v13, %v7640_v36 }
 0x15c   : > { %966 = vmatprep.mubr.bf16.mxu1 %v7128_v42  ;;  %v1121_v35 = vsel %vm1105_vm5, %v7660_v11, %v1092_v22 }
 0x15d   : > { %6508 = vmatmul.mubr.msk.bf16.vlgmr.msra.gmra.mxu0 %vm558_vm4, %v239_v52 }
 0x15e   : > { %949 = vmatpush1.bf16.msra.mxu1 %v7434_v6  ;;  %988 = vmatpush1.bf16.msra.mxu0 %v7448_v9  ;;  %v1119_v9 = vsel %vm1105_vm5, %v7631_v29, %v1088_v0 }
 0x15f   : > { %v7682_v53 = vpop.permute.xlu0 %1069  ;;  %989 = vmatprep.subr.bf16.mxu0 %v7474_v46  ;;  %1028 = vmatprep.subr.bf16.mxu1 %v7296_v47  ;;  %v1064_v27 = vpop.permute.xlu1 %1063  ;;  %v1117_v47 = vsel %vm1105_vm5, %v1082_v41, %v1084_v7 }
 0x160   : > { %1007 = vmatprep.mubr.bf16.mxu0 %v7128_v42  ;;  %v1109_v2 = vsel %vm1105_vm5, %v1064_v27, %v1066_v43  ;;  %v1108_v15 = vsel %vm1105_vm5, %v1062_v33, %v1064_v27 }
 0x161   : > { %6509 = vmatmul.mubr.msk.bf16.vlgmr.msra.gmra.mxu1 %vm558_vm4, %v239_v52 }
 0x162   : > { %990 = vmatpush1.bf16.msra.mxu0 %v7471_v45  ;;  %1029 = vmatpush1.bf16.msra.mxu1 %v7463_v51  ;;  %v1122_v51 = vsel %vm1105_vm5, %v1092_v22, %v7668_v14  ;;  %v7713_v45 = vld [vmem:[%s9605_s2 + $0x8] sm:$0xf] }
 0x163   : > { %v1098_v8 = vpop.permute.xlu0 %1097  ;;  %1030 = vmatprep.subr.bf16.mxu1 %v7316_v58  ;;  %1167 = vmatprep.subr.bf16.mxu0 %v1118_v5  ;;  %v1068_v21 = vpop.permute.xlu1 %1067 }
 0x164   : > { %1048 = vmatprep.mubr.bf16.mxu1 %v7128_v42  ;;  %v1111_v37 = vsel %vm1105_vm5, %v1068_v21, %v7682_v53  ;;  %v1110_v44 = vsel %vm1105_vm5, %v1066_v43, %v1068_v21 }
 0x165   : > { %6510 = vmatmul.mubr.msk.bf16.vlgmr.msra.gmra.mxu0 %vm558_vm4, %v239_v52 }
 0x166   : > { %1031 = vmatpush1.bf16.msra.mxu1 %v7483_v55  ;;  %1168 = vmatpush1.bf16.msra.mxu0 %v1117_v47 }
 0x167   : > { %v1102_v6 = vpop.permute.xlu0 %1101  ;;  %1169 = vmatprep.subr.bf16.mxu0 %v1107_v23  ;;  %1208 = vmatprep.subr.bf16.mxu1 %v1120_v31  ;;  %v1096_v58 = vpop.permute.xlu1 %1095 }
 0x168   : > { %1187 = vmatprep.mubr.bf16.mxu0 %v7128_v42  ;;  %v1124_v38 = vsel %vm1105_vm5, %v1096_v58, %v1098_v8  ;;  %v1123_v56 = vsel %vm1105_vm5, %v7668_v14, %v1096_v58 }
 0x169   : > { %6511 = vmatmul.mubr.msk.bf16.vlgmr.msra.gmra.mxu1 %vm558_vm4, %v239_v52 }
 0x16a   : > { %1170 = vmatpush1.bf16.msra.mxu0 %v1106_v25  ;;  %1209 = vmatpush1.bf16.msra.mxu1 %v1119_v9 }
 0x16b   : > { %v1074_v46 = vpop.permute.xlu0 %1073  ;;  %1210 = vmatprep.subr.bf16.mxu1 %v1109_v2  ;;  %1249 = vmatprep.subr.bf16.mxu0 %v1122_v51  ;;  %v1100_v55 = vpop.permute.xlu1 %1099 }
 0x16c   : > { %1228 = vmatprep.mubr.bf16.mxu1 %v7128_v42  ;;  %v1126_v48 = vsel %vm1105_vm5, %v1100_v55, %v1102_v6  ;;  %v1125_v40 = vsel %vm1105_vm5, %v1098_v8, %v1100_v55 }
 0x16d   : > { %6512 = vmatmul.mubr.msk.bf16.vlgmr.msra.gmra.mxu0 %vm558_vm4, %v7713_v45 }
 0x16e   : > { %1211 = vmatpush1.bf16.msra.mxu1 %v1108_v15  ;;  %1250 = vmatpush1.bf16.msra.mxu0 %v1121_v35 }
 0x16f   : > { %v1078_v1 = vpop.permute.xlu0 %1077  ;;  %1251 = vmatprep.subr.bf16.mxu0 %v1111_v37  ;;  %1290 = vmatprep.subr.bf16.mxu1 %v1124_v38  ;;  %v1072_v26 = vpop.permute.xlu1 %1071 }
 0x170   : > { %1269 = vmatprep.mubr.bf16.mxu0 %v7128_v42  ;;  %v1113_v57 = vsel %vm1105_vm5, %v1072_v26, %v1074_v46  ;;  %v1112_v39 = vsel %vm1105_vm5, %v7682_v53, %v1072_v26 }
 0x171   : > { %6513 = vmatmul.mubr.msk.bf16.vlgmr.msra.gmra.mxu1 %vm558_vm4, %v7713_v45 }
 0x172   : > { %1252 = vmatpush1.bf16.msra.mxu0 %v1110_v44  ;;  %1291 = vmatpush1.bf16.msra.mxu1 %v1123_v56 }
 0x173   : > { %v1466_v49 = vpop.permute.xlu0 %1465  ;;  %1292 = vmatprep.subr.bf16.mxu1 %v1113_v57  ;;  %1331 = vmatprep.subr.bf16.mxu0 %v1126_v48  ;;  %v1076_v18 = vpop.permute.xlu1 %1075 }
 0x174   : > { %1310 = vmatprep.mubr.bf16.mxu1 %v7128_v42  ;;  %v1115_v10 = vsel %vm1105_vm5, %v1076_v18, %v1078_v1  ;;  %v1114_v63 = vsel %vm1105_vm5, %v1074_v46, %v1076_v18 }
 0x175   : > { %6514 = vmatmul.mubr.msk.bf16.vlgmr.msra.gmra.mxu0 %vm558_vm4, %v7713_v45 }
 0x176   : > { %1293 = vmatpush1.bf16.msra.mxu1 %v1112_v39  ;;  %1332 = vmatpush1.bf16.msra.mxu0 %v1125_v40 }
 0x177   : > { %v1464_v50 = vpop.permute.xlu0 %1463  ;;  %1333 = vmatprep.subr.bf16.mxu0 %v1115_v10  ;;  %v1104_v61 = vpop.permute.xlu1 %1103  ;;  %1351 = vmatprep.mubr.bf16.mxu0 %v7128_v42 }
 0x178   : > { %1372 = vmatprep.subr.bf16.mxu1 %v1104_v61  ;;  %v1127_v62 = vsel %vm1105_vm5, %v1102_v6, %v1104_v61  ;;  %v1502_v59 = vsel %vm1489_vm6, %v1464_v50, %v1466_v49 }
 0x179   : > { %6515 = vmatmul.mubr.msk.bf16.vlgmr.msra.gmra.mxu1 %vm558_vm4, %v7713_v45 }
 0x17a   : > { %1334 = vmatpush1.bf16.msra.mxu0 %v1114_v63  ;;  %1373 = vmatpush1.bf16.msra.mxu1 %v1127_v62 }
 0x17b   : > { %v1440_v16 = vpop.permute.xlu0 %1439  ;;  %v1468_v12 = vpop.permute.xlu1 %1467  ;;  %1392 = vmatprep.mubr.bf16.mxu1 %v7128_v42 }
 0x17c   : > { %v1503_v28 = vsel %vm1489_vm6, %v1466_v49, %v1468_v12 }
 0x17d   : > { %6516 = vmatmul.mubr.msk.bf16.vlgmr.msra.gmra.mxu0 %vm558_vm4, %v7713_v45  ;;  %1553 = vmatprep.subr.bf16.mxu0 %v1503_v28 }
 0x17e   : > { %1554 = vmatpush1.bf16.msra.mxu0 %v1502_v59  ;;  %1573 = vmatprep.mubr.bf16.mxu0 %v7128_v42 }
 0x17f   : > { %v1438_v60 = vpop.permute.xlu0 %1437  ;;  %v1080_v3 = vpop.permute.xlu1 %1079 }
 0x180   : > { %1374 = vmatprep.subr.bf16.mxu1 %v1080_v3  ;;  %v1116_v17 = vsel %vm1105_vm5, %v1078_v1, %v1080_v3  ;;  %v1490_v29 = vsel %vm1489_vm6, %v1438_v60, %v1440_v16 }
 0x181   : > { %1375 = vmatpush1.bf16.msra.mxu1 %v1116_v17 }
 0x183   : > { %v1472_v19 = vpop.permute.xlu0 %1471  ;;  %v1442_v30 = vpop.permute.xlu1 %1441 }
 0x184   : > { %6517 = vmatmul.mubr.msk.bf16.vlgmr.msra.gmra.mxu1 %vm558_vm4, %v7713_v45  ;;  %v1491_v54 = vsel %vm1489_vm6, %v1440_v16, %v1442_v30 }
 0x185   : > { %1555 = vmatprep.subr.bf16.mxu0 %v1491_v54  ;;  %1614 = vmatprep.mubr.bf16.mxu1 %v7128_v42 }
 0x186   : > { %1556 = vmatpush1.bf16.msra.mxu0 %v1490_v29 }
 0x187   : > { %v1476_v20 = vpop.permute.xlu0 %1475  ;;  %v1470_v24 = vpop.permute.xlu1 %1469 }
 0x188   : > { %v1505_v34 = vsel %vm1489_vm6, %v1470_v24, %v1472_v19  ;;  %v1504_v36 = vsel %vm1489_vm6, %v1468_v12, %v1470_v24 }
 0x189   : > { %6518 = vmatmul.mubr.msk.bf16.vlgmr.msra.gmra.mxu0 %vm558_vm4, %v7759_v4  ;;  %1594 = vmatprep.subr.bf16.mxu1 %v1505_v34 }
 0x18a   : > { %1595 = vmatpush1.bf16.msra.mxu1 %v1504_v36  ;;  %1655 = vmatprep.mubr.bf16.mxu0 %v7128_v42 }
 0x18b   : > { %v1446_v7 = vpop.permute.xlu0 %1445  ;;  %v1474_v32 = vpop.permute.xlu1 %1473 }
 0x18c   : > { %v1507_v13 = vsel %vm1489_vm6, %v1474_v32, %v1476_v20  ;;  %v1506_v41 = vsel %vm1489_vm6, %v1472_v19, %v1474_v32 }
 0x18d   : > { %1635 = vmatprep.subr.bf16.mxu0 %v1507_v13 }
 0x18e   : > { %1636 = vmatpush1.bf16.msra.mxu0 %v1506_v41 }
 0x18f   : > { %v1450_v52 = vpop.permute.xlu0 %1449  ;;  %v1444_v11 = vpop.permute.xlu1 %1443 }
 0x190   : > { %v1493_v33 = vsel %vm1489_vm6, %v1444_v11, %v1446_v7  ;;  %v1492_v14 = vsel %vm1489_vm6, %v1442_v30, %v1444_v11 }
 0x191   : > { %1596 = vmatprep.subr.bf16.mxu1 %v1493_v33 }
 0x192   : > { %1597 = vmatpush1.bf16.msra.mxu1 %v1492_v14 }
 0x193   : > { %v1480_v0 = vpop.permute.xlu0 %1479  ;;  %v1448_v43 = vpop.permute.xlu1 %1447 }
 0x194   : > { %v1495_v22 = vsel %vm1489_vm6, %v1448_v43, %v1450_v52  ;;  %v1494_v53 = vsel %vm1489_vm6, %v1446_v7, %v1448_v43 }
 0x195   : > { %6519 = vmatmul.mubr.msk.bf16.vlgmr.msra.gmra.mxu1 %vm558_vm4, %v7759_v4  ;;  %1637 = vmatprep.subr.bf16.mxu0 %v1495_v22 }
 0x196   : > { %1638 = vmatpush1.bf16.msra.mxu0 %v1494_v53  ;;  %1696 = vmatprep.mubr.bf16.mxu1 %v7128_v42 }
 0x197   : > { %v1484_v27 = vpop.permute.xlu0 %1483  ;;  %v1478_v5 = vpop.permute.xlu1 %1477 }
 0x198   : > { %v1509_v8 = vsel %vm1489_vm6, %v1478_v5, %v1480_v0  ;;  %v1508_v21 = vsel %vm1489_vm6, %v1476_v20, %v1478_v5 }
 0x199   : > { %6520 = vmatmul.mubr.msk.bf16.vlgmr.msra.gmra.mxu0 %vm558_vm4, %v7759_v4  ;;  %1676 = vmatprep.subr.bf16.mxu1 %v1509_v8 }
 0x19a   : > { %1677 = vmatpush1.bf16.msra.mxu1 %v1508_v21  ;;  %1737 = vmatprep.mubr.bf16.mxu0 %v7128_v42 }
 0x19b   : > { %v1454_v47 = vpop.permute.xlu0 %1453  ;;  %v1482_v23 = vpop.permute.xlu1 %1481 }
 0x19c   : > { %v1511_v31 = vsel %vm1489_vm6, %v1482_v23, %v1484_v27  ;;  %v1510_v6 = vsel %vm1489_vm6, %v1480_v0, %v1482_v23 }
 0x19d   : > { %1717 = vmatprep.subr.bf16.mxu0 %v1511_v31 }
 0x19e   : > { %1718 = vmatpush1.bf16.msra.mxu0 %v1510_v6 }
 0x19f   : > { %v1458_v58 = vpop.permute.xlu0 %1457  ;;  %v1452_v25 = vpop.permute.xlu1 %1451 }
 0x1a0   : > { %v1497_v9 = vsel %vm1489_vm6, %v1452_v25, %v1454_v47  ;;  %v1496_v2 = vsel %vm1489_vm6, %v1450_v52, %v1452_v25 }
 0x1a1   : > { %1678 = vmatprep.subr.bf16.mxu1 %v1497_v9 }
 0x1a2   : > { %1679 = vmatpush1.bf16.msra.mxu1 %v1496_v2 }
 0x1a3   : > { %v1456_v51 = vpop.permute.xlu1 %1455  ;;  %v1488_v55 = vpop.permute.xlu0 %1487 }
 0x1a4   : > { %v1499_v45 = vsel %vm1489_vm6, %v1456_v51, %v1458_v58  ;;  %v1498_v46 = vsel %vm1489_vm6, %v1454_v47, %v1456_v51 }
 0x1a5   : > { %6521 = vmatmul.mubr.msk.bf16.vlgmr.msra.gmra.mxu1 %vm558_vm4, %v7759_v4  ;;  %1719 = vmatprep.subr.bf16.mxu0 %v1499_v45 }
 0x1a6   : > { %1720 = vmatpush1.bf16.msra.mxu0 %v1498_v46  ;;  %1778 = vmatprep.mubr.bf16.mxu1 %v7128_v42 }
 0x1a7   : > { %v1486_v15 = vpop.permute.xlu1 %1485  ;;  %v1462_v38 = vpop.permute.xlu0 %1461 }
 0x1a8   : > { %v1513_v35 = vsel %vm1489_vm6, %v1486_v15, %v1488_v55  ;;  %v1512_v37 = vsel %vm1489_vm6, %v1484_v27, %v1486_v15 }
 0x1a9   : > { %6522 = vmatmul.mubr.msk.bf16.vlgmr.msra.gmra.mxu0 %vm558_vm4, %v7759_v4  ;;  %1758 = vmatprep.subr.bf16.mxu1 %v1513_v35 }
 0x1aa   : > { %1759 = vmatpush1.bf16.msra.mxu1 %v1512_v37  ;;  %2192 = vmatprep.mubr.bf16.mxu0 %v7128_v42 }
 0x1ab   : > { %v1460_v1 = vpop.permute.xlu1 %1459 }
 0x1ac   : > { %v1501_v26 = vsel %vm1489_vm6, %v1460_v1, %v1462_v38  ;;  %v1500_v44 = vsel %vm1489_vm6, %v1458_v58, %v1460_v1 }
 0x1ad   : > { %1760 = vmatprep.subr.bf16.mxu1 %v1501_v26 }
 0x1ae   : > { %1761 = vmatpush1.bf16.msra.mxu1 %v1500_v44 }
 0x1b1   : > { %6523 = vmatmul.mubr.msk.bf16.vlgmr.msra.gmra.mxu1 %vm558_vm4, %v7759_v4 }
 0x1b2   : > { %2233 = vmatprep.mubr.bf16.mxu1 %v7128_v42 }
 0x1ee   : > { %v7799_v56 = vpop.f32.mrf.mxu0 }
 0x1f0   : > { %v7801_v57 = vpop.f32.mrf.mxu0 }
 0x1f2   : > { %v600_v48 = vpop.f32.mrf.mxu0 }
 0x1f4   : > { %v601_v49 = vpop.f32.mrf.mxu0 }
 0x1fa   : > { %v7803_v18 = vpop.f32.mrf.mxu1 }
 0x1fc   : > { %v7805_v39 = vpop.f32.mrf.mxu1 }
 0x1fd   : > { %v7807_v40 = vpop.f32.mrf.mxu0 }
 0x1fe   : > { %v641_v10 = vpop.f32.mrf.mxu1 }
 0x1ff   : > { %v7809_v50 = vpop.f32.mrf.mxu0 }
 0x200   : > { %v642_v61 = vpop.f32.mrf.mxu1 }
 0x201   : > { %v682_v62 = vpop.f32.mrf.mxu0 }
 0x203   : > { %v683_v63 = vpop.f32.mrf.mxu0 }
 0x209   : > { %v719_v16 = vpop.f32.mrf.mxu1 }
 0x20b   : > { %v721_v12 = vpop.f32.mrf.mxu1 }
 0x20d   : > { %v723_v28 = vpop.f32.mrf.mxu1  ;;  %v760_v59 = vpop.f32.mrf.mxu0 }
 0x20f   : > { %v724_v60 = vpop.f32.mrf.mxu1  ;;  %v762_v3 = vpop.f32.mrf.mxu0 }
 0x211   : > { %v764_v17 = vpop.f32.mrf.mxu0  ;;  %v801_v19 = vpop.f32.mrf.mxu1 }
 0x213   : > { %v765_v30 = vpop.f32.mrf.mxu0  ;;  %v803_v54 = vpop.f32.mrf.mxu1 }
 0x215   : > { %v805_v29 = vpop.f32.mrf.mxu1  ;;  %v845_v4 = vpop.f32.mrf.mxu0 }
 0x216   : > { %v846_v17 = vadd.f32 %v845_v4, %v7799_v56 }
 0x217   : > { %v806_v20 = vpop.f32.mrf.mxu1  ;;  %v847_v24 = vpop.f32.mrf.mxu0 }
 0x218   : > { %v848_v30 = vadd.f32 %v847_v24, %v7801_v57  ;;  %v247_v57 = vld [vmem:[%s9604_s1] sm:$0xff]  ;;  %v248_v24 = vld [vmem:[%s9604_s1 + $0x8] sm:$0xff] }
 0x219   : > { %v849_v34 = vpop.f32.mrf.mxu0  ;;  %v7811_v36 = vpop.f32.mrf.mxu1 }
 0x21a   : > { %v7845_v34 = vpop.permute.xlu1 %1801 }
 0x21b   : > { %v850_v7 = vpop.f32.mrf.mxu0  ;;  %v7813_v32 = vpop.f32.mrf.mxu1 }
 0x21d   : > { %v890_v13 = vpop.f32.mrf.mxu1  ;;  %v7815_v41 = vpop.f32.mrf.mxu0 }
 0x21f   : > { %v891_v52 = vpop.f32.mrf.mxu1  ;;  %v7817_v11 = vpop.f32.mrf.mxu0 }
 0x221   : > { %v931_v33 = vpop.f32.mrf.mxu0  ;;  %v968_v14 = vpop.f32.mrf.mxu1 }
 0x222   : > { %v7819_v0 = vadd.f32 %v968_v14, %v719_v16 }
 0x223   : > { %v932_v43 = vpop.f32.mrf.mxu0  ;;  %v970_v22 = vpop.f32.mrf.mxu1 }
 0x224   : > { %v7821_v53 = vadd.f32 %v970_v22, %v721_v12 }
 0x225   : > { %v972_v27 = vpop.f32.mrf.mxu1  ;;  %v1009_v5 = vpop.f32.mrf.mxu0 }
 0x226   : > { %v7823_v8 = vadd.f32 %v1009_v5, %v760_v59 }
 0x227   : > { %v973_v21 = vpop.f32.mrf.mxu1  ;;  %v1011_v47 = vpop.f32.mrf.mxu0 }
 0x228   : > { %v7825_v23 = vadd.f32 %v1011_v47, %v762_v3  ;;  %v887_v47 = vadd.f32 %v7811_v36, %v7803_v18 }
 0x229   : > { %v1013_v31 = vpop.f32.mrf.mxu0  ;;  %v1050_v6 = vpop.f32.mrf.mxu1 }
 0x22a   : > { %v7827_v58 = vadd.f32 %v1050_v6, %v801_v19 }
 0x22b   : > { %v1014_v25 = vpop.f32.mrf.mxu0  ;;  %v1052_v9 = vpop.f32.mrf.mxu1 }
 0x22c   : > { %v7829_v2 = vadd.f32 %v1052_v9, %v803_v54  ;;  %v889_v9 = vadd.f32 %v7813_v32, %v7805_v39  ;;  %v930_v39 = vadd.f32 %v7817_v11, %v7809_v50 }
 0x22d   : > { %v1054_v51 = vpop.f32.mrf.mxu1  ;;  %v1189_v45 = vpop.f32.mrf.mxu0 }
 0x22e   : > { %v1401_v54 = vadd.f32 %v1189_v45, %v846_v17 }
 0x22f   : > { %v1055_v46 = vpop.f32.mrf.mxu1  ;;  %v1191_v55 = vpop.f32.mrf.mxu0 }
 0x230   : > { %v1402_v7 = vadd.f32 %v1191_v55, %v848_v30  ;;  %v928_v55 = vadd.f32 %v7815_v41, %v7807_v40 }
 0x231   : > { %v1193_v15 = vpop.f32.mrf.mxu0  ;;  %v1230_v35 = vpop.f32.mrf.mxu1 }
 0x232   : > { %v1403_v51 = vadd.f32 %v1230_v35, %v887_v47 }
 0x233   : > { %v1194_v37 = vpop.f32.mrf.mxu0  ;;  %v1232_v38 = vpop.f32.mrf.mxu1 }
 0x234   : > { %v1404_v15 = vadd.f32 %v1232_v38, %v889_v9 }
 0x235   : > { %v1234_v1 = vpop.f32.mrf.mxu1  ;;  %v1271_v26 = vpop.f32.mrf.mxu0 }
 0x236   : > { %v1405_v18 = vadd.f32 %v1271_v26, %v928_v55  ;;  %v249_v26 = vld [vmem:[%s9604_s1 + $0x10] sm:$0xff] }
 0x237   : > { %v1235_v44 = vpop.f32.mrf.mxu1  ;;  %v1273_v48 = vpop.f32.mrf.mxu0 }
 0x238   : > { %v1406_v40 = vadd.f32 %v1273_v48, %v930_v39 }
 0x239   : > { %v1275_v49 = vpop.f32.mrf.mxu0  ;;  %v7831_v10 = vpop.f32.mrf.mxu1 }
 0x23b   : > { %v1276_v61 = vpop.f32.mrf.mxu0  ;;  %v7833_v62 = vpop.f32.mrf.mxu1 }
 0x23d   : > { %v7835_v63 = vpop.f32.mrf.mxu0  ;;  %v1316_v16 = vpop.f32.mrf.mxu1 }
 0x23f   : > { %v7837_v12 = vpop.f32.mrf.mxu0  ;;  %v1317_v28 = vpop.f32.mrf.mxu1 }
 0x241   : > { %v1357_v59 = vpop.f32.mrf.mxu0 }
 0x242   : > { %v250_v59 = vld [vmem:[%s9604_s1 + $0x18] sm:$0xff] }
 0x243   : > { %v1358_v60 = vpop.f32.mrf.mxu0 }
 0x244   : > { %v7839_v3 = vpop.f32.mrf.mxu1 }
 0x246   : > { %v7842_v19 = vpop.f32.mrf.mxu1 }
 0x248   : > { %v1398_v29 = vpop.f32.mrf.mxu1 }
 0x249   : > { %v1575_v20 = vpop.f32.mrf.mxu0 }
 0x24a   : > { %v1787_v13 = vadd.f32 %v1575_v20, %v1401_v54  ;;  %v1399_v52 = vpop.f32.mrf.mxu1 }
 0x24b   : > { %v1577_v33 = vpop.f32.mrf.mxu0 }
 0x24c   : > { %v1788_v14 = vadd.f32 %v1577_v33, %v1402_v7  ;;  %v1804_v43 = vadd.f32 %v7845_v34, %v1787_v13  ;;  %v251_v13 = vld [vmem:[%s9604_s1 + $0x20] sm:$0xff]  ;;  %v252_v33 = vld [vmem:[%s9604_s1 + $0x28] sm:$0xff] }
 0x24d   : > { %v1579_v22 = vpop.f32.mrf.mxu0 }
 0x24e   : > { %v1805_v27 = vadd.f32 %v7845_v34, %v1788_v14  ;;  %vm1816_vm7 = vcmp.ge.f32.partialorder %v1804_v43, 0.0  ;;  %v1828_v56 = vmul.f32 0.02, %v1804_v43 }
 0x24f   : > { %v1580_v4 = vpop.f32.mrf.mxu0 }
 0x250   : > { %vm1817_vm8 = vcmp.ge.f32.partialorder %v1805_v27, 0.0  ;;  %v1829_v5 = vmul.f32 0.02, %v1805_v27  ;;  %v1840_v21 = vsel %vm1816_vm7, %v1804_v43, %v1828_v56  ;;  %vm2126_vm7 = vcmask 1043456  }
 0x251   : > { %v7857_v6 = vmul.f32 %v1840_v21, %v247_v57 }
 0x252   : > { %v1841_v31 = vsel %vm1817_vm8, %v1805_v27, %v1829_v5  ;;  %v1407_v27 = vadd.f32 %v7831_v10, %v7819_v0  ;;  %v1408_v5 = vadd.f32 %v7833_v62, %v7821_v53  ;;  %v1409_v0 = vadd.f32 %v7835_v63, %v7823_v8  ;;  %v253_v63 = vld [vmem:[%s9604_s1 + $0x30] sm:$0xff] }
 0x253   : > { %v7859_v25 = vmul.f32 %v1841_v31, %v248_v24  ;;  %vm2122_vm8 = vcmask 195584  }
 0x255   : > { %v1616_v45 = vpop.f32.mrf.mxu1  ;;  %v6905_v46 = vpack.i.bf16 %v7859_v25, %v7857_v6 }
 0x256   : > { %v1789_v37 = vadd.f32 %v1616_v45, %v1403_v51 }
 0x257   : > { %v1618_v1 = vpop.f32.mrf.mxu1  ;;  %6906 = vrot.lane.b32.xlu0 %v6905_v46, %s7125_s25 }
 0x258   : > { %v1806_v36 = vadd.f32 %v7845_v34, %v1789_v37  ;;  %v1790_v44 = vadd.f32 %v1618_v1, %v1404_v15  ;;  %v1410_v15 = vadd.f32 %v7837_v12, %v7825_v23 }
 0x259   : > { %v1620_v32 = vpop.f32.mrf.mxu1  ;;  %v1657_v35 = vpop.f32.mrf.mxu0 }
 0x25a   : > { %vm1818_vm9 = vcmp.ge.f32.partialorder %v1806_v36, 0.0  ;;  %v1830_v49 = vmul.f32 0.02, %v1806_v36  ;;  %v1807_v61 = vadd.f32 %v7845_v34, %v1790_v44  ;;  %v1791_v16 = vadd.f32 %v1657_v35, %v1405_v18  ;;  %v254_v18 = vld [vmem:[%s9604_s1 + $0x38] sm:$0xff] }
 0x25b   : > { %v1621_v41 = vpop.f32.mrf.mxu1  ;;  %v1659_v38 = vpop.f32.mrf.mxu0 }
 0x25c   : > { %v1842_v28 = vsel %vm1818_vm9, %v1806_v36, %v1830_v49  ;;  %vm1819_vm10 = vcmp.ge.f32.partialorder %v1807_v61, 0.0  ;;  %v1831_v50 = vmul.f32 0.02, %v1807_v61  ;;  %v1808_v11 = vadd.f32 %v7845_v34, %v1791_v16  ;;  %v255_v41 = vld [vmem:[%s9604_s1 + $0x40] sm:$0xff] }
 0x25d   : > { %v1792_v60 = vadd.f32 %v1659_v38, %v1406_v40  ;;  %v1661_v17 = vpop.f32.mrf.mxu0  ;;  %v7879_v54 = vmul.f32 %v1842_v28, %v249_v26  ;;  %v1411_v40 = vadd.f32 %v7839_v3, %v7827_v58  ;;  %v256_v26 = vld [vmem:[%s9604_s1 + $0x48] sm:$0xff]  ;;  %vm7132_vm9 = vmmov 0  }
 0x25e   : > { %v1843_v30 = vsel %vm1819_vm10, %v1807_v61, %v1831_v50  ;;  %vm1820_vm11 = vcmp.ge.f32.partialorder %v1808_v11, 0.0  ;;  %v1832_v48 = vmul.f32 0.02, %v1808_v11 }
 0x25f   : > { %v7881_v29 = vmul.f32 %v1843_v30, %v250_v59  ;;  %v1809_v20 = vadd.f32 %v7845_v34, %v1792_v60  ;;  %v1662_v7 = vpop.f32.mrf.mxu0  ;;  %v6915_v24 = vpack.i.bf16 %v7879_v54, %v7859_v25 }
 0x260   : > { %v1844_v52 = vsel %vm1820_vm11, %v1808_v11, %v1832_v48  ;;  %v1412_v11 = vadd.f32 %v7842_v19, %v7829_v2 }
 0x261   : > { %vm1821_vm12 = vcmp.ge.f32.partialorder %v1809_v20, 0.0  ;;  %v1833_v14 = vmul.f32 0.02, %v1809_v20  ;;  %v6910_v43 = vpack.i.bf16 %v7881_v29, %v7879_v54  ;;  %v7895_v56 = vmul.f32 %v1844_v52, %v251_v13 }
 0x262   : > { %v6925_v53 = vpack.i.bf16 %v7857_v6, %v7881_v29 }
 0x263   : > { %v1845_v22 = vsel %vm1821_vm12, %v1809_v20, %v1833_v14  ;;  %6911 = vrot.lane.b32.xlu1 %v6910_v43, %s7125_s25  ;;  %v258_v43 = vld [vmem:[%s9604_s1 + $0x58] sm:$0xff] }
 0x264   : > { %v7897_v4 = vmul.f32 %v1845_v22, %v252_v33  ;;  %v257_v33 = vld [vmem:[%s9604_s1 + $0x50] sm:$0xff] }
 0x265   : > { %v1698_v57 = vpop.f32.mrf.mxu1 }
 0x266   : > { %v1793_v21 = vadd.f32 %v1698_v57, %v1407_v27  ;;  %v6920_v47 = vpack.i.bf16 %v7897_v4, %v7895_v56 }
 0x267   : > { %v1700_v31 = vpop.f32.mrf.mxu1  ;;  %6916 = vrot.lane.b32.xlu1 %v6915_v24, %s7126_s26 }
 0x268   : > { %v1810_v10 = vadd.f32 %v7845_v34, %v1793_v21  ;;  %v1794_v9 = vadd.f32 %v1700_v31, %v1408_v5  ;;  %6921 = vrot.lane.b32.xlu0 %v6920_v47, %s7125_s25 }
 0x269   : > { %v1702_v51 = vpop.f32.mrf.mxu1  ;;  %v1739_v45 = vpop.f32.mrf.mxu0 }
 0x26a   : > { %vm1822_vm13 = vcmp.ge.f32.partialorder %v1810_v10, 0.0  ;;  %v1834_v62 = vmul.f32 0.02, %v1810_v10  ;;  %v1811_v46 = vadd.f32 %v7845_v34, %v1794_v9  ;;  %v1795_v55 = vadd.f32 %v1739_v45, %v1409_v0 }
 0x26b   : > { %v1703_v37 = vpop.f32.mrf.mxu1  ;;  %v1741_v8 = vpop.f32.mrf.mxu0  ;;  %6931 = vrot.lane.b32.xlu1 %v6920_v47, %s7126_s26 }
 0x26c   : > { %v1846_v1 = vsel %vm1822_vm13, %v1810_v10, %v1834_v62  ;;  %vm1823_vm14 = vcmp.ge.f32.partialorder %v1811_v46, 0.0  ;;  %v1835_v36 = vmul.f32 0.02, %v1811_v46  ;;  %v1812_v44 = vadd.f32 %v7845_v34, %v1795_v55  ;;  %6926 = vrot.lane.b32.xlu0 %v6925_v53, %s7126_s26 }
 0x26d   : > { %v1796_v23 = vadd.f32 %v1741_v8, %v1410_v15  ;;  %v1743_v12 = vpop.f32.mrf.mxu0  ;;  %v7924_v35 = vmul.f32 %v1846_v1, %v253_v63 }
 0x26e   : > { %v1847_v39 = vsel %vm1823_vm14, %v1811_v46, %v1835_v36  ;;  %vm1824_vm15 = vcmp.ge.f32.partialorder %v1812_v44, 0.0  ;;  %v1836_v32 = vmul.f32 0.02, %v1812_v44 }
 0x26f   : > { %v7926_v49 = vmul.f32 %v1847_v39, %v254_v18  ;;  %v1813_v61 = vadd.f32 %v7845_v34, %v1796_v23  ;;  %v1744_v16 = vpop.f32.mrf.mxu0 }
 0x270   : > { %v1848_v38 = vsel %vm1824_vm15, %v1812_v44, %v1836_v32 }
 0x271   : > { %vm1825_vm0 = vcmp.ge.f32.partialorder %v1813_v61, 0.0  ;;  %v1837_v28 = vmul.f32 0.02, %v1813_v61  ;;  %v1780_v59 = vpop.f32.mrf.mxu1  ;;  %v6935_v50 = vpack.i.bf16 %v7926_v49, %v7924_v35  ;;  %v7942_v17 = vmul.f32 %v1848_v38, %v255_v41 }
 0x272   : > { %v1797_v60 = vadd.f32 %v1780_v59, %v1411_v40 }
 0x273   : > { %v1849_v58 = vsel %vm1825_vm0, %v1813_v61, %v1837_v28  ;;  %v1782_v3 = vpop.f32.mrf.mxu1  ;;  %6936 = vrot.lane.b32.xlu0 %v6935_v50, %s7125_s25 }
 0x274   : > { %v7944_v30 = vmul.f32 %v1849_v58, %v256_v26  ;;  %v1814_v48 = vadd.f32 %v7845_v34, %v1797_v60  ;;  %v1798_v20 = vadd.f32 %v1782_v3, %v1412_v11 }
 0x275   : > { %v1784_v7 = vpop.f32.mrf.mxu1 }
 0x276   : > { %vm1826_vm4 = vcmp.ge.f32.partialorder %v1814_v48, 0.0  ;;  %v1838_v13 = vmul.f32 0.02, %v1814_v48  ;;  %v1815_v52 = vadd.f32 %v7845_v34, %v1798_v20  ;;  %v6945_v2 = vpack.i.bf16 %v7944_v30, %v7942_v17 }
 0x277   : > { %6941 = vrot.lane.b32.xlu0 %v6935_v50, %s7126_s26  ;;  %v1785_v19 = vpop.f32.mrf.mxu1 }
 0x278   : > { %v1850_v14 = vsel %vm1826_vm4, %v1814_v48, %v1838_v13  ;;  %vm1827_vm6 = vcmp.ge.f32.partialorder %v1815_v52, 0.0  ;;  %v1839_v22 = vmul.f32 0.02, %v1815_v52  ;;  %6946 = vrot.lane.b32.xlu1 %v6945_v2, %s7125_s25 }
 0x279   : > { %v7958_v27 = vmul.f32 %v1850_v14, %v257_v33 }
 0x27a   : > { %v1851_v34 = vsel %vm1827_vm6, %v1815_v52, %v1839_v22 }
 0x27b   : > { %v7960_v57 = vmul.f32 %v1851_v34, %v258_v43 }
 0x27c   : > { %6951 = vrot.lane.b32.xlu1 %v6945_v2, %s7126_s26 }
 0x27d   : > { %v6960_v24 = vpack.i.bf16 %v7960_v57, %v7958_v27 }
 0x27f   : > { %6956 = vrot.lane.b32.xlu0 %v6960_v24, %s7125_s25 }
 0x280   : > { %6961 = vrot.lane.b32.xlu1 %v6960_v24, %s7126_s26 }
 0x2c9   : > { %v6907_v5 = vpop.permute.xlu0 %6906 }
 0x2ca   : > { %v6909_v21 = vunpack.i.h.bf16 %v6907_v5  ;;  %v6908_v47 = vunpack.i.l.bf16 %v6907_v5 }
 0x2cc   : > { %v1959_v31 = vsel %vm343_vm1, %v6908_v47, %v6909_v21 }
 0x2cd   : > { %v7968_v0 = vpack.c.bf16 %v1959_v31, %v1959_v31 }
 0x2cf   : > { %2065 = vrot.lane.b32.xlu0 %v7968_v0, %s7127_s27 }
 0x2d5   : > { %v6912_v10 = vpop.permute.xlu1 %6911 }
 0x2d6   : > { %v6914_v9 = vunpack.i.h.bf16 %v6912_v10  ;;  %v6913_v51 = vunpack.i.l.bf16 %v6912_v10 }
 0x2d8   : > { %v1960_v45 = vsel %vm343_vm1, %v6909_v21, %v6913_v51  ;;  %v1961_v53 = vsel %vm343_vm1, %v6913_v51, %v6914_v9 }
 0x2d9   : > { %v6917_v62 = vpop.permute.xlu1 %6916  ;;  %v7974_v46 = vpack.c.bf16 %v1960_v45, %v1960_v45  ;;  %v7976_v55 = vpack.c.bf16 %v1961_v53, %v1961_v53 }
 0x2da   : > { %v6919_v15 = vunpack.i.h.bf16 %v6917_v62  ;;  %v6918_v37 = vunpack.i.l.bf16 %v6917_v62  ;;  %v6922_v8 = vpop.permute.xlu0 %6921 }
 0x2db   : > { %2067 = vrot.lane.b32.xlu1 %v7974_v46, %s7127_s27  ;;  %2069 = vrot.lane.b32.xlu0 %v7976_v55, %s7127_s27  ;;  %v6923_v44 = vunpack.i.l.bf16 %v6922_v8 }
 0x2dc   : > { %v1917_v63 = vsel %vm295_vm2, %v6918_v37, %v6919_v15 }
 0x2dd   : > { %v6932_v1 = vpop.permute.xlu1 %6931  ;;  %v7984_v18 = vpack.c.bf16 %v1917_v63, %v7859_v25  ;;  %v6924_v25 = vunpack.i.h.bf16 %v6922_v8  ;;  %v1962_v26 = vsel %vm343_vm1, %v6914_v9, %v6923_v44 }
 0x2de   : > { %v6927_v36 = vpop.permute.xlu0 %6926  ;;  %v6933_v23 = vunpack.i.l.bf16 %v6932_v1  ;;  %v6934_v41 = vunpack.i.h.bf16 %v6932_v1  ;;  %v8002_v59 = vpack.c.bf16 %v1962_v26, %v1962_v26 }
 0x2df   : > { %v6929_v12 = vunpack.i.h.bf16 %v6927_v36  ;;  %v6928_v39 = vunpack.i.l.bf16 %v6927_v36  ;;  %2043 = vrot.lane.b32.xlu1 %v7984_v18, %s7127_s27  ;;  %v1963_v60 = vsel %vm343_vm1, %v6923_v44, %v6924_v25 }
 0x2e0   : > { %v8016_v20 = vpack.c.bf16 %v1963_v60, %v1963_v60 }
 0x2e1   : > { %v1916_v32 = vsel %vm295_vm2, %v6929_v12, %v6918_v37  ;;  %v1918_v61 = vsel %vm295_vm2, %v6919_v15, %v6928_v39  ;;  %v1919_v38 = vsel %vm295_vm2, %v6928_v39, %v6933_v23 }
 0x2e2   : > { %v7991_v16 = vpack.c.bf16 %v1916_v32, %v7857_v6  ;;  %v7994_v40 = vpack.c.bf16 %v1918_v61, %v7879_v54  ;;  %v8005_v6 = vpack.c.bf16 %v1919_v38, %v7881_v29  ;;  %v1920_v54 = vsel %vm295_vm2, %v6933_v23, %v6934_v41 }
 0x2e3   : > { %v8014_v48 = vpack.c.bf16 %v1920_v54, %v7895_v56 }
 0x2e4   : > { %2041 = vrot.lane.b32.xlu1 %v7991_v16, %s7127_s27  ;;  %2045 = vrot.lane.b32.xlu0 %v7994_v40, %s7127_s27 }
 0x2e5   : > { %v6937_v28 = vpop.permute.xlu0 %6936 }
 0x2e6   : > { %v6939_v50 = vunpack.i.h.bf16 %v6937_v28  ;;  %v6938_v11 = vunpack.i.l.bf16 %v6937_v28 }
 0x2e8   : > { %2071 = vrot.lane.b32.xlu1 %v8002_v59, %s7127_s27  ;;  %2047 = vrot.lane.b32.xlu0 %v8005_v6, %s7127_s27  ;;  %v1965_v13 = vsel %vm343_vm1, %v6938_v11, %v6939_v50  ;;  %v1964_v52 = vsel %vm343_vm1, %v6924_v25, %v6938_v11 }
 0x2e9   : > { %v6942_v58 = vpop.permute.xlu0 %6941  ;;  %v8024_v2 = vpack.c.bf16 %v1965_v13, %v1965_v13  ;;  %v8026_v19 = vpack.c.bf16 %v1964_v52, %v1964_v52 }
 0x2ea   : > { %v6947_v3 = vpop.permute.xlu1 %6946  ;;  %v6944_v29 = vunpack.i.h.bf16 %v6942_v58  ;;  %v6943_v7 = vunpack.i.l.bf16 %v6942_v58 }
 0x2eb   : > { %v6949_v56 = vunpack.i.h.bf16 %v6947_v3  ;;  %v6948_v33 = vunpack.i.l.bf16 %v6947_v3  ;;  %v8149_v3 = vld [vmem:[%s9606_s3 + $0x4] sm:$0xf] }
 0x2ec   : > { %2049 = vrot.lane.b32.xlu1 %v8014_v48, %s7127_s27  ;;  %2073 = vrot.lane.b32.xlu0 %v8016_v20, %s7127_s27  ;;  %v1921_v14 = vsel %vm295_vm2, %v6934_v41, %v6943_v7  ;;  %v1922_v43 = vsel %vm295_vm2, %v6943_v7, %v6944_v29 }
 0x2ed   : > { %v8035_v34 = vpack.c.bf16 %v1922_v43, %v7924_v35  ;;  %v8038_v24 = vpack.c.bf16 %v1921_v14, %v7897_v4  ;;  %v1967_v47 = vsel %vm343_vm1, %v6948_v33, %v6949_v56  ;;  %v1966_v31 = vsel %vm343_vm1, %v6939_v50, %v6948_v33 }
 0x2ee   : > { %v6952_v22 = vpop.permute.xlu1 %6951  ;;  %v8046_v9 = vpack.c.bf16 %v1967_v47, %v1967_v47  ;;  %v8048_v35 = vpack.c.bf16 %v1966_v31, %v1966_v31 }
 0x2ef   : > { %v6954_v5 = vunpack.i.h.bf16 %v6952_v22  ;;  %v6953_v21 = vunpack.i.l.bf16 %v6952_v22 }
 0x2f0   : > { %2077 = vrot.lane.b32.xlu1 %v8024_v2, %s7127_s27  ;;  %2075 = vrot.lane.b32.xlu0 %v8026_v19, %s7127_s27 }
 0x2f1   : > { %v6957_v10 = vpop.permute.xlu0 %6956  ;;  %v1923_v4 = vsel %vm295_vm2, %v6944_v29, %v6953_v21  ;;  %v1924_v51 = vsel %vm295_vm2, %v6953_v21, %v6954_v5 }
 0x2f2   : > { %v6959_v45 = vunpack.i.h.bf16 %v6957_v10  ;;  %v8052_v53 = vunpack.i.l.bf16 %v6957_v10  ;;  %v6962_v62 = vpop.permute.xlu1 %6961  ;;  %v8059_v15 = vpack.c.bf16 %v1924_v51, %v7942_v17  ;;  %v8062_v37 = vpack.c.bf16 %v1923_v4, %v7926_v49 }
 0x2f3   : > { %v8064_v8 = vunpack.i.l.bf16 %v6962_v62  ;;  %v6964_v44 = vunpack.i.h.bf16 %v6962_v62 }
 0x2f4   : > { %2053 = vrot.lane.b32.xlu1 %v8035_v34, %s7127_s27  ;;  %2051 = vrot.lane.b32.xlu0 %v8038_v24, %s7127_s27  ;;  %v2010_v63 = vsel %vm343_vm1, %v8052_v53, %v6959_v45  ;;  %v2016_v1 = vpack.c.bf16 %v6959_v45, %v6959_v45  ;;  %v1968_v49 = vsel %vm343_vm1, %v6949_v56, %v8052_v53 }
 0x2f5   : > { %v2015_v36 = vpack.c.bf16 %v2010_v63, %v2010_v63  ;;  %v1925_v17 = vsel %vm295_vm2, %v6954_v5, %v8064_v8  ;;  %v8081_v12 = vpack.c.bf16 %v1968_v49, %v1968_v49  ;;  %v2005_v39 = vsel %vm295_vm2, %v8064_v8, %v6964_v44 }
 0x2f6   : > { %v8079_v23 = vpack.c.bf16 %v1925_v17, %v7944_v30  ;;  %v2014_v32 = vpack.c.bf16 %v6964_v44, %v7960_v57  ;;  %v2013_v61 = vpack.c.bf16 %v2005_v39, %v7958_v27  ;;  %v6526_v30 = vld [vmem:[%s9607_s4 + $0x8] sm:$0xff] }
 0x2f8   : > { %2081 = vrot.lane.b32.xlu1 %v8046_v9, %s7127_s27  ;;  %2079 = vrot.lane.b32.xlu0 %v8048_v35, %s7127_s27 }
 0x2fc   : > { %2057 = vrot.lane.b32.xlu1 %v8059_v15, %s7127_s27  ;;  %2055 = vrot.lane.b32.xlu0 %v8062_v37, %s7127_s27 }
 0x300   : > { %2085 = vrot.lane.b32.xlu1 %v2015_v36, %s7127_s27  ;;  %2087 = vrot.lane.b32.xlu0 %v2016_v1, %s7127_s27 }
 0x304   : > { %2059 = vrot.lane.b32.xlu1 %v8079_v23, %s7127_s27  ;;  %2083 = vrot.lane.b32.xlu0 %v8081_v12, %s7127_s27 }
 0x308   : > { %2063 = vrot.lane.b32.xlu1 %v2014_v32, %s7127_s27  ;;  %2061 = vrot.lane.b32.xlu0 %v2013_v61, %s7127_s27 }
 0x30c   : > { %2712 = vrot.lane.b32.xlu1 %v7974_v46, %s7129_s28  ;;  %2710 = vrot.lane.b32.xlu0 %v7968_v0, %s7129_s28 }
 0x310   : > { %2716 = vrot.lane.b32.xlu1 %v8002_v59, %s7129_s28  ;;  %2714 = vrot.lane.b32.xlu0 %v7976_v55, %s7129_s28 }
 0x314   : > { %2688 = vrot.lane.b32.xlu1 %v7984_v18, %s7129_s28  ;;  %2718 = vrot.lane.b32.xlu0 %v8016_v20, %s7129_s28 }
 0x318   : > { %2686 = vrot.lane.b32.xlu1 %v7991_v16, %s7129_s28  ;;  %2690 = vrot.lane.b32.xlu0 %v7994_v40, %s7129_s28 }
 0x31c   : > { %2694 = vrot.lane.b32.xlu1 %v8014_v48, %s7129_s28  ;;  %2692 = vrot.lane.b32.xlu0 %v8005_v6, %s7129_s28 }
 0x320   : > { %2722 = vrot.lane.b32.xlu1 %v8024_v2, %s7129_s28  ;;  %2720 = vrot.lane.b32.xlu0 %v8026_v19, %s7129_s28 }
 0x324   : > { %2698 = vrot.lane.b32.xlu1 %v8035_v34, %s7129_s28  ;;  %2724 = vrot.lane.b32.xlu0 %v8048_v35, %s7129_s28 }
 0x328   : > { %2726 = vrot.lane.b32.xlu1 %v8046_v9, %s7129_s28  ;;  %2696 = vrot.lane.b32.xlu0 %v8038_v24, %s7129_s28 }
 0x32c   : > { %2702 = vrot.lane.b32.xlu1 %v8059_v15, %s7129_s28  ;;  %2700 = vrot.lane.b32.xlu0 %v8062_v37, %s7129_s28 }
 0x330   : > { %2730 = vrot.lane.b32.xlu1 %v2015_v36, %s7129_s28  ;;  %2732 = vrot.lane.b32.xlu0 %v2016_v1, %s7129_s28 }
 0x334   : > { %2704 = vrot.lane.b32.xlu1 %v8079_v23, %s7129_s28  ;;  %2728 = vrot.lane.b32.xlu0 %v8081_v12, %s7129_s28 }
 0x338   : > { %2708 = vrot.lane.b32.xlu1 %v2014_v32, %s7129_s28  ;;  %2706 = vrot.lane.b32.xlu0 %v2013_v61, %s7129_s28 }
 0x33c   : > { %3061 = vperm.xlu0 %6965, %v6526_v30  }
 0x341   : > { %v2066_v57 = vpop.permute.xlu0 %2065 }
 0x34d   : > { %v2068_v25 = vpop.permute.xlu1 %2067  ;;  %v2070_v41 = vpop.permute.xlu0 %2069 }
 0x34e   : > { %v2100_v38 = vsel %vm511_vm3, %v2066_v57, %v2068_v25  ;;  %v2101_v26 = vsel %vm511_vm3, %v2068_v25, %v2070_v41  ;;  %v7131_v25 = vmov 0.0  }
 0x34f   : > { %6538 = vmatprep.subr.msk.bf16.mxu0 %vm2126_vm7, %v2101_v26  ;;  %v2128_v28 = vsel %vm2126_vm7, %v2100_v38, 0 }
 0x350   : > { %2173 = vmatpush1.bf16.msra.mxu0 %v2128_v28 }
 0x351   : > { %v2044_v54 = vpop.permute.xlu1 %2043 }
 0x356   : > { %v2042_v50 = vpop.permute.xlu1 %2041  ;;  %v2046_v11 = vpop.permute.xlu0 %2045 }
 0x357   : > { %v2089_v60 = vsel %vm511_vm3, %v2042_v50, %v2044_v54  ;;  %v2090_v58 = vsel %vm511_vm3, %v2044_v54, %v2046_v11 }
 0x358   : > { %2174 = vmatprep.subr.bf16.mxu0 %v2090_v58 }
 0x359   : > { %2175 = vmatpush1.bf16.msra.mxu0 %v2089_v60 }
 0x35a   : > { %v2072_v29 = vpop.permute.xlu1 %2071  ;;  %v2048_v7 = vpop.permute.xlu0 %2047 }
 0x35b   : > { %v2102_v13 = vsel %vm511_vm3, %v2070_v41, %v2072_v29  ;;  %v2091_v31 = vsel %vm511_vm3, %v2046_v11, %v2048_v7 }
 0x35c   : > { %6539 = vmatmul.mubr.msk.bf16.vlgmr.msra.gmra.mxu0 %vm2122_vm8, %v8149_v3  ;;  %v2134_v14 = vsel %vm2126_vm7, %v2102_v13, 0 }
 0x35d   : > { %2274 = vmatprep.mubr.bf16.mxu0 %v7128_v42 }
 0x35e   : > { %v2050_v52 = vpop.permute.xlu1 %2049  ;;  %v2074_v56 = vpop.permute.xlu0 %2073 }
 0x35f   : > { %v2103_v33 = vsel %vm511_vm3, %v2072_v29, %v2074_v56  ;;  %v2092_v43 = vsel %vm511_vm3, %v2048_v7, %v2050_v52 }
 0x360   : > { %6540 = vmatprep.subr.msk.bf16.mxu1 %vm2126_vm7, %v2103_v33  ;;  %v2415_v33 = vsel %vm2126_vm7, %v7976_v55, 0 }
 0x361   : > { %2214 = vmatpush1.bf16.msra.mxu1 %v2134_v14  ;;  %v2409_v14 = vsel %vm2126_vm7, %v7968_v0, 0 }
 0x362   : > { %v2078_v22 = vpop.permute.xlu1 %2077  ;;  %2215 = vmatprep.subr.bf16.mxu1 %v2092_v43  ;;  %v2076_v5 = vpop.permute.xlu0 %2075 }
 0x363   : > { %v2104_v21 = vsel %vm511_vm3, %v2074_v56, %v2076_v5  ;;  %v2105_v47 = vsel %vm511_vm3, %v2076_v5, %v2078_v22 }
 0x364   : > { %6542 = vmatprep.subr.msk.bf16.mxu0 %vm2126_vm7, %v2105_v47  ;;  %v2140_v10 = vsel %vm2126_vm7, %v2104_v21, 0 }
 0x365   : > { %2216 = vmatpush1.bf16.msra.mxu1 %v2091_v31  ;;  %2255 = vmatpush1.bf16.msra.mxu0 %v2140_v10 }
 0x366   : > { %v2054_v4 = vpop.permute.xlu1 %2053  ;;  %v2052_v51 = vpop.permute.xlu0 %2051 }
 0x367   : > { %v2094_v45 = vsel %vm511_vm3, %v2052_v51, %v2054_v4  ;;  %v2093_v62 = vsel %vm511_vm3, %v2050_v52, %v2052_v51 }
 0x368   : > { %2256 = vmatprep.subr.bf16.mxu0 %v2094_v45  ;;  %6541 = vmatmul.mubr.msk.bf16.vlgmr.msra.gmra.mxu1 %vm2122_vm8, %v8149_v3  ;;  %v6525_v45 = vld [vmem:[%s9606_s3 + $0x8] sm:$0xf] }
 0x369   : > { %2257 = vmatpush1.bf16.msra.mxu0 %v2093_v62  ;;  %2315 = vmatprep.mubr.bf16.mxu1 %v7128_v42 }
 0x36a   : > { %v2082_v63 = vpop.permute.xlu1 %2081  ;;  %v2080_v1 = vpop.permute.xlu0 %2079 }
 0x36b   : > { %v2106_v36 = vsel %vm511_vm3, %v2078_v22, %v2080_v1  ;;  %v2107_v44 = vsel %vm511_vm3, %v2080_v1, %v2082_v63 }
 0x36c   : > { %6544 = vmatprep.subr.msk.bf16.mxu1 %vm2126_vm7, %v2107_v44  ;;  %v2146_v17 = vsel %vm2126_vm7, %v2106_v36, 0  ;;  %6543 = vmatmul.mubr.msk.bf16.vlgmr.msra.gmra.mxu0 %vm2122_vm8, %v8149_v3 }
 0x36d   : > { %2296 = vmatpush1.bf16.msra.mxu1 %v2146_v17  ;;  %2356 = vmatprep.mubr.bf16.mxu0 %v7128_v42 }
 0x36e   : > { %v2058_v49 = vpop.permute.xlu1 %2057  ;;  %v2056_v39 = vpop.permute.xlu0 %2055 }
 0x36f   : > { %v2096_v32 = vsel %vm511_vm3, %v2056_v39, %v2058_v49  ;;  %v2095_v61 = vsel %vm511_vm3, %v2054_v4, %v2056_v39 }
 0x370   : > { %2297 = vmatprep.subr.bf16.mxu1 %v2096_v32 }
 0x371   : > { %2298 = vmatpush1.bf16.msra.mxu1 %v2095_v61 }
 0x372   : > { %v2086_v30 = vpop.permute.xlu1 %2085  ;;  %v2088_v57 = vpop.permute.xlu0 %2087  ;;  %6723 = vmatprep.subr.bf16.mxu1 %v7131_v25 }
 0x373   : > { %v2110_v41 = vsel %vm511_vm3, %v2086_v30, %v2088_v57 }
 0x374   : > { %v2158_v38 = vsel %vm2126_vm7, %v2110_v41, 0  ;;  %6545 = vmatmul.mubr.msk.bf16.vlgmr.msra.gmra.mxu1 %vm2122_vm8, %v8149_v3 }
 0x375   : > { %6724 = vmatpush3.bf16.msra.mxu1 %v2158_v38  ;;  %6727 = vmatprep.mubr.msk.bf16.mxu1 %vm7132_vm9, %v7131_v25 }
 0x376   : > { %v2060_v26 = vpop.permute.xlu1 %2059  ;;  %v2084_v28 = vpop.permute.xlu0 %2083  ;;  %6725 = vmatprep.subr.bf16.mxu1 %v7131_v25 }
 0x377   : > { %v2108_v54 = vsel %vm511_vm3, %v2082_v63, %v2084_v28  ;;  %v2109_v50 = vsel %vm511_vm3, %v2084_v28, %v2086_v30  ;;  %v2097_v13 = vsel %vm511_vm3, %v2058_v49, %v2060_v26 }
 0x378   : > { %6546 = vmatprep.subr.msk.bf16.mxu0 %vm2126_vm7, %v2109_v50  ;;  %v2152_v11 = vsel %vm2126_vm7, %v2108_v54, 0 }
 0x379   : > { %2337 = vmatpush1.bf16.msra.mxu0 %v2152_v11 }
 0x37a   : > { %v2064_v60 = vpop.permute.xlu1 %2063  ;;  %v2062_v58 = vpop.permute.xlu0 %2061 }
 0x37b   : > { %v2098_v29 = vsel %vm511_vm3, %v2060_v26, %v2062_v58  ;;  %v2099_v7 = vsel %vm511_vm3, %v2062_v58, %v2064_v60 }
 0x37c   : > { %2338 = vmatprep.subr.bf16.mxu0 %v2098_v29  ;;  %6726 = vmatpush3.bf16.msra.mxu1 %v2099_v7 }
 0x37d   : > { %2339 = vmatpush1.bf16.msra.mxu0 %v2097_v13  ;;  %6551 = vmatprep.subr.msk.bf16.mxu1 %vm2126_vm7, %v8002_v59 }
 0x37e   : > { %v2713_v52 = vpop.permute.xlu1 %2712  ;;  %6549 = vmatprep.subr.msk.bf16.mxu0 %vm2126_vm7, %v7974_v46  ;;  %v2711_v56 = vpop.permute.xlu0 %2710  ;;  %v1864_v46 = vld [vmem:[%s9606_s3] sm:$0xf] }
 0x37f   : > { %6728 = vmatmul.mubr.msk.bf16.vlgmr.msra.gmra.mxu1 %vm2122_vm8, %v8149_v3 }
 0x380   : > { %6547 = vmatmul.mubr.msk.bf16.vlgmr.msra.gmra.mxu0 %vm2122_vm8, %v8149_v3  ;;  %2495 = vmatpush1.bf16.msra.mxu1 %v2415_v33 }
 0x381   : > { %2454 = vmatpush1.bf16.msra.mxu0 %v2409_v14  ;;  %2496 = vmatprep.subr.bf16.mxu1 %v8005_v6 }
 0x382   : > { %v2717_v59 = vpop.permute.xlu1 %2716  ;;  %v2715_v43 = vpop.permute.xlu0 %2714  ;;  %2455 = vmatprep.subr.bf16.mxu0 %v7984_v18  ;;  %2514 = vmatprep.mubr.bf16.mxu1 %v7128_v42  ;;  %v2427_v18 = vsel %vm2126_vm7, %v8024_v2, 0  ;;  %v2001_v2 = vpack.c.bf16 %v8052_v53, %v8052_v53  ;;  %v1990_v53 = vpack.c.bf16 %v8064_v8, %v7958_v27 }
 0x383   : > { %2473 = vmatprep.mubr.bf16.mxu0 %v7128_v42 }
 0x384   : > { %2497 = vmatpush1.bf16.msra.mxu1 %v7994_v40 }
 0x385   : > { %2456 = vmatpush1.bf16.msra.mxu0 %v7991_v16  ;;  %6555 = vmatprep.subr.msk.bf16.mxu1 %vm2126_vm7, %v8048_v35  ;;  %v2421_v16 = vsel %vm2126_vm7, %v8016_v20, 0 }
 0x386   : > { %v2689_v0 = vpop.permute.xlu1 %2688  ;;  %v8216_v55 = vpop.permute.xlu0 %2718  ;;  %6553 = vmatprep.subr.msk.bf16.mxu0 %vm2126_vm7, %v8026_v19 }
 0x387   : > { %6552 = vmatmul.mubr.msk.bf16.vlgmr.msra.gmra.mxu1 %vm2122_vm8, %v1864_v46 }
 0x388   : > { %6550 = vmatmul.mubr.msk.bf16.vlgmr.msra.gmra.mxu0 %vm2122_vm8, %v1864_v46  ;;  %2577 = vmatpush1.bf16.msra.mxu1 %v2427_v18 }
 0x389   : > { %2536 = vmatpush1.bf16.msra.mxu0 %v2421_v16  ;;  %2578 = vmatprep.subr.bf16.mxu1 %v8062_v37  ;;  %v2747_v37 = vsel %vm1105_vm5, %v2715_v43, %v2717_v59 }
 0x38a   : > { %v2687_v40 = vpop.permute.xlu1 %2686  ;;  %v2691_v6 = vpop.permute.xlu0 %2690  ;;  %2537 = vmatprep.subr.bf16.mxu0 %v8038_v24  ;;  %2596 = vmatprep.mubr.bf16.mxu1 %v7128_v42  ;;  %v2439_v24 = vsel %vm2126_vm7, %v2001_v2, 0  ;;  %v2777_v3 = vsel %vm2126_vm7, %v2747_v37, 0 }
 0x38b   : > { %2555 = vmatprep.mubr.bf16.mxu0 %v7128_v42  ;;  %v2735_v5 = vsel %vm1105_vm5, %v2689_v0, %v2691_v6  ;;  %v2734_v4 = vsel %vm1105_vm5, %v2687_v40, %v2689_v0 }
 0x38c   : > { %2579 = vmatpush1.bf16.msra.mxu1 %v8035_v34  ;;  %v2433_v34 = vsel %vm2126_vm7, %v8046_v9, 0  ;;  %v2748_v9 = vsel %vm1105_vm5, %v2717_v59, %v8216_v55 }
 0x38d   : > { %2538 = vmatpush1.bf16.msra.mxu0 %v8014_v48  ;;  %6731 = vmatprep.subr.bf16.mxu1 %v7131_v25 }
 0x38e   : > { %v8235_v20 = vpop.permute.xlu1 %2694  ;;  %v2693_v19 = vpop.permute.xlu0 %2692  ;;  %6557 = vmatprep.subr.msk.bf16.mxu0 %vm2126_vm7, %v8081_v12  ;;  %v2745_v12 = vsel %vm1105_vm5, %v2711_v56, %v2713_v52 }
 0x38f   : > { %6556 = vmatmul.mubr.msk.bf16.vlgmr.msra.gmra.mxu1 %vm2122_vm8, %v1864_v46  ;;  %v2771_v22 = vsel %vm2126_vm7, %v2745_v12, 0  ;;  %v2736_v31 = vsel %vm1105_vm5, %v2691_v6, %v2693_v19 }
 0x390   : > { %6554 = vmatmul.mubr.msk.bf16.vlgmr.msra.gmra.mxu0 %vm2122_vm8, %v1864_v46  ;;  %6732 = vmatpush3.bf16.msra.mxu1 %v2439_v24 }
 0x391   : > { %2618 = vmatpush1.bf16.msra.mxu0 %v2433_v34  ;;  %6733 = vmatprep.subr.bf16.mxu1 %v7131_v25 }
 0x392   : > { %v2723_v48 = vpop.permute.xlu1 %2722  ;;  %v2721_v35 = vpop.permute.xlu0 %2720  ;;  %2619 = vmatprep.subr.bf16.mxu0 %v8079_v23  ;;  %6735 = vmatprep.mubr.msk.bf16.mxu1 %vm7132_vm9, %v7131_v25  ;;  %v2746_v23 = vsel %vm1105_vm5, %v2713_v52, %v2715_v43 }
 0x393   : > { %2637 = vmatprep.mubr.bf16.mxu0 %v7128_v42  ;;  %v2749_v62 = vsel %vm1105_vm5, %v8216_v55, %v2721_v35  ;;  %v2750_v63 = vsel %vm1105_vm5, %v2721_v35, %v2723_v48 }
 0x394   : > { %6734 = vmatpush3.bf16.msra.mxu1 %v1990_v53  ;;  %v2783_v49 = vsel %vm2126_vm7, %v2749_v62, 0 }
 0x395   : > { %2620 = vmatpush1.bf16.msra.mxu0 %v8059_v15  ;;  %6562 = vmatprep.subr.msk.bf16.mxu1 %vm2126_vm7, %v2748_v9  ;;  %v2737_v15 = vsel %vm1105_vm5, %v2693_v19, %v8235_v20 }
 0x396   : > { %v2699_v27 = vpop.permute.xlu1 %2698  ;;  %v2725_v8 = vpop.permute.xlu0 %2724  ;;  %6560 = vmatprep.subr.msk.bf16.mxu0 %vm2126_vm7, %v2746_v23 }
 0x397   : > { %6736 = vmatmul.mubr.msk.bf16.vlgmr.msra.gmra.mxu1 %vm2122_vm8, %v1864_v46  ;;  %v2751_v51 = vsel %vm1105_vm5, %v2723_v48, %v2725_v8 }
 0x398   : > { %6558 = vmatmul.mubr.msk.bf16.vlgmr.msra.gmra.mxu0 %vm2122_vm8, %v1864_v46  ;;  %2857 = vmatpush1.bf16.msra.mxu1 %v2777_v3  ;;  %v2789_v44 = vsel %vm2126_vm7, %v2751_v51, 0 }
 0x399   : > { %2816 = vmatpush1.bf16.msra.mxu0 %v2771_v22  ;;  %2858 = vmatprep.subr.bf16.mxu1 %v2737_v15 }
 0x39a   : > { %v2727_v21 = vpop.permute.xlu1 %2726  ;;  %v2697_v47 = vpop.permute.xlu0 %2696  ;;  %2817 = vmatprep.subr.bf16.mxu0 %v2735_v5  ;;  %2876 = vmatprep.mubr.bf16.mxu1 %v7128_v42 }
 0x39b   : > { %v2752_v10 = vsel %vm1105_vm5, %v2725_v8, %v2727_v21  ;;  %2835 = vmatprep.mubr.bf16.mxu0 %v7128_v42  ;;  %v2739_v39 = vsel %vm1105_vm5, %v2697_v47, %v2699_v27  ;;  %v2738_v57 = vsel %vm1105_vm5, %v8235_v20, %v2697_v47 }
 0x39c   : > { %2859 = vmatpush1.bf16.msra.mxu1 %v2736_v31 }
 0x39d   : > { %2818 = vmatpush1.bf16.msra.mxu0 %v2734_v4  ;;  %6566 = vmatprep.subr.msk.bf16.mxu1 %vm2126_vm7, %v2752_v10 }
 0x39e   : > { %v2703_v1 = vpop.permute.xlu1 %2702  ;;  %v2701_v36 = vpop.permute.xlu0 %2700  ;;  %6564 = vmatprep.subr.msk.bf16.mxu0 %vm2126_vm7, %v2750_v63 }
 0x39f   : > { %6563 = vmatmul.mubr.msk.bf16.vlgmr.msra.gmra.mxu1 %vm2122_vm8, %v6525_v45  ;;  %v2741_v17 = vsel %vm1105_vm5, %v2701_v36, %v2703_v1  ;;  %v2740_v30 = vsel %vm1105_vm5, %v2699_v27, %v2701_v36 }
 0x3a0   : > { %6561 = vmatmul.mubr.msk.bf16.vlgmr.msra.gmra.mxu0 %vm2122_vm8, %v6525_v45  ;;  %2939 = vmatpush1.bf16.msra.mxu1 %v2789_v44 }
 0x3a1   : > { %2898 = vmatpush1.bf16.msra.mxu0 %v2783_v49  ;;  %2940 = vmatprep.subr.bf16.mxu1 %v2741_v17 }
 0x3a2   : > { %v2731_v32 = vpop.permute.xlu1 %2730  ;;  %v2733_v61 = vpop.permute.xlu0 %2732  ;;  %2899 = vmatprep.subr.bf16.mxu0 %v2739_v39  ;;  %2958 = vmatprep.mubr.bf16.mxu1 %v7128_v42 }
 0x3a3   : > { %2917 = vmatprep.mubr.bf16.mxu0 %v7128_v42  ;;  %v2755_v41 = vsel %vm1105_vm5, %v2731_v32, %v2733_v61 }
 0x3a4   : > { %2941 = vmatpush1.bf16.msra.mxu1 %v2740_v30  ;;  %v2801_v50 = vsel %vm2126_vm7, %v2755_v41, 0 }
 0x3a5   : > { %2900 = vmatpush1.bf16.msra.mxu0 %v2738_v57  ;;  %6739 = vmatprep.subr.bf16.mxu1 %v7131_v25 }
 0x3a6   : > { %v2705_v38 = vpop.permute.xlu1 %2704  ;;  %v2729_v26 = vpop.permute.xlu0 %2728 }
 0x3a7   : > { %v2753_v28 = vsel %vm1105_vm5, %v2727_v21, %v2729_v26  ;;  %6567 = vmatmul.mubr.msk.bf16.vlgmr.msra.gmra.mxu1 %vm2122_vm8, %v6525_v45  ;;  %v2754_v54 = vsel %vm1105_vm5, %v2729_v26, %v2731_v32  ;;  %v2742_v13 = vsel %vm1105_vm5, %v2703_v1, %v2705_v38 }
 0x3a8   : > { %6565 = vmatmul.mubr.msk.bf16.vlgmr.msra.gmra.mxu0 %vm2122_vm8, %v6525_v45  ;;  %6568 = vmatprep.subr.msk.bf16.mxu0 %vm2126_vm7, %v2754_v54  ;;  %v2795_v11 = vsel %vm2126_vm7, %v2753_v28, 0 }
 0x3a9   : > { %6740 = vmatpush3.bf16.msra.mxu1 %v2801_v50  ;;  %2980 = vmatpush1.bf16.msra.mxu0 %v2795_v11 }
 0x3aa   : > { %v2709_v60 = vpop.permute.xlu1 %2708  ;;  %v2707_v58 = vpop.permute.xlu0 %2706  ;;  %6741 = vmatprep.subr.bf16.mxu1 %v7131_v25  ;;  %6743 = vmatprep.mubr.msk.bf16.mxu1 %vm7132_vm9, %v7131_v25 }
 0x3ab   : > { %v2743_v29 = vsel %vm1105_vm5, %v2705_v38, %v2707_v58  ;;  %v2744_v7 = vsel %vm1105_vm5, %v2707_v58, %v2709_v60  ;;  %2999 = vmatprep.mubr.bf16.mxu0 %v7128_v42 }
 0x3ac   : > { %2981 = vmatprep.subr.bf16.mxu0 %v2743_v29 }
 0x3ad   : > { %6742 = vmatpush3.bf16.msra.mxu1 %v2744_v7  ;;  %2982 = vmatpush1.bf16.msra.mxu0 %v2742_v13 }
 0x3b0   : > { %6744 = vmatmul.mubr.msk.bf16.vlgmr.msra.gmra.mxu1 %vm2122_vm8, %v6525_v45  ;;  %6569 = vmatmul.mubr.msk.bf16.vlgmr.msra.gmra.mxu0 %vm2122_vm8, %v6525_v45 }
 0x3b1   : > { %3423 = vmatprep.mubr.bf16.mxu0 %v7128_v42  ;;  %3464 = vmatprep.mubr.bf16.mxu1 %v7128_v42 }
 0x3b7   : > { %v8329_v38 = vpop.permute.xlu0 %3061 }
 0x41c   : > { %v2194_v52 = vpop.f32.mrf.mxu0 }
 0x41e   : > { %v2196_v56 = vpop.f32.mrf.mxu0 }
 0x420   : > { %v2198_v33 = vpop.f32.mrf.mxu0 }
 0x422   : > { %v2199_v14 = vpop.f32.mrf.mxu0 }
 0x428   : > { %v2235_v59 = vpop.f32.mrf.mxu1 }
 0x42a   : > { %v2237_v43 = vpop.f32.mrf.mxu1 }
 0x42c   : > { %v2239_v46 = vpop.f32.mrf.mxu1  ;;  %v8311_v0 = vpop.f32.mrf.mxu0 }
 0x42e   : > { %v2240_v55 = vpop.f32.mrf.mxu1  ;;  %v8313_v18 = vpop.f32.mrf.mxu0 }
 0x430   : > { %v2280_v16 = vpop.f32.mrf.mxu0 }
 0x432   : > { %v2281_v40 = vpop.f32.mrf.mxu0 }
 0x434   : > { %v2317_v6 = vpop.f32.mrf.mxu1 }
 0x436   : > { %v8315_v2 = vpop.f32.mrf.mxu1 }
 0x438   : > { %v2321_v20 = vpop.f32.mrf.mxu1 }
 0x43a   : > { %v2322_v19 = vpop.f32.mrf.mxu1 }
 0x43f   : > { %v8317_v24 = vpop.f32.mrf.mxu1 }
 0x440   : > { %v8319_v34 = vpop.f32.mrf.mxu0 }
 0x441   : > { %v6729_v48 = vpop.f32.mrf.mxu1 }
 0x442   : > { %v8321_v35 = vpop.f32.mrf.mxu0  ;;  %v6528_v48 = vld [vmem:[%s9604_s1 + $0x68] sm:$0xff] }
 0x443   : > { %v2402_v53 = vpop.f32.mrf.mxu1 }
 0x444   : > { %v2362_v37 = vpop.f32.mrf.mxu0 }
 0x445   : > { %v6730_v9 = vpop.f32.mrf.mxu1 }
 0x446   : > { %v2363_v12 = vpop.f32.mrf.mxu0  ;;  %v6529_v9 = vld [vmem:[%s9604_s1 + $0x70] sm:$0xff] }
 0x447   : > { %v2516_v23 = vpop.f32.mrf.mxu1 }
 0x448   : > { %v2475_v27 = vpop.f32.mrf.mxu0  ;;  %v2517_v61 = vadd.f32 %v2516_v23, %v2235_v59 }
 0x449   : > { %v2518_v8 = vpop.f32.mrf.mxu1  ;;  %v2476_v57 = vadd.f32 %v2475_v27, %v2194_v52 }
 0x44a   : > { %v2477_v3 = vpop.f32.mrf.mxu0  ;;  %v2519_v26 = vadd.f32 %v2518_v8, %v2237_v43 }
 0x44b   : > { %v2520_v22 = vpop.f32.mrf.mxu1  ;;  %v2478_v50 = vadd.f32 %v2477_v3, %v2196_v56 }
 0x44c   : > { %v2479_v15 = vpop.f32.mrf.mxu0 }
 0x44d   : > { %v2521_v5 = vpop.f32.mrf.mxu1 }
 0x44e   : > { %v2480_v21 = vpop.f32.mrf.mxu0 }
 0x44f   : > { %v2598_v47 = vpop.f32.mrf.mxu1  ;;  %v6530_v21 = vld [vmem:[%s9604_s1 + $0x78] sm:$0xff] }
 0x450   : > { %v2557_v31 = vpop.f32.mrf.mxu0  ;;  %v2599_v16 = vadd.f32 %v2598_v47, %v2317_v6 }
 0x451   : > { %v2600_v10 = vpop.f32.mrf.mxu1  ;;  %v2558_v19 = vadd.f32 %v2557_v31, %v8311_v0  ;;  %v6527_v0 = vld [vmem:[%s9604_s1 + $0x60] sm:$0xff] }
 0x452   : > { %v2559_v4 = vpop.f32.mrf.mxu0  ;;  %v2601_v6 = vadd.f32 %v2600_v10, %v8315_v2 }
 0x453   : > { %v2602_v51 = vpop.f32.mrf.mxu1  ;;  %v2560_v3 = vadd.f32 %v2559_v4, %v8313_v18 }
 0x454   : > { %v2561_v45 = vpop.f32.mrf.mxu0 }
 0x455   : > { %v2603_v62 = vpop.f32.mrf.mxu1 }
 0x456   : > { %v2562_v63 = vpop.f32.mrf.mxu0 }
 0x457   : > { %v8323_v1 = vpop.f32.mrf.mxu1 }
 0x458   : > { %v8325_v36 = vpop.f32.mrf.mxu0 }
 0x459   : > { %v6737_v44 = vpop.f32.mrf.mxu1 }
 0x45a   : > { %v8327_v17 = vpop.f32.mrf.mxu0 }
 0x45b   : > { %v2683_v49 = vpop.f32.mrf.mxu1 }
 0x45c   : > { %v2643_v39 = vpop.f32.mrf.mxu0 }
 0x45d   : > { %v6738_v32 = vpop.f32.mrf.mxu1 }
 0x45e   : > { %v2644_v30 = vpop.f32.mrf.mxu0 }
 0x45f   : > { %v2878_v41 = vpop.f32.mrf.mxu1 }
 0x460   : > { %v3050_v28 = vadd.f32 %v2878_v41, %v2517_v61  ;;  %v2837_v54 = vpop.f32.mrf.mxu0 }
 0x461   : > { %v3048_v11 = vadd.f32 %v2837_v54, %v2476_v57  ;;  %v2880_v60 = vpop.f32.mrf.mxu1 }
 0x462   : > { %v3051_v58 = vadd.f32 %v2880_v60, %v2519_v26  ;;  %v2839_v29 = vpop.f32.mrf.mxu0  ;;  %v3066_v7 = vadd.f32 %v8329_v38, %v3050_v28  ;;  %v2640_v26 = vadd.f32 %v8325_v36, %v8319_v34  ;;  %v6532_v60 = vld [vmem:[%s9604_s1 + $0x88] sm:$0xff]  ;;  %v2681_v34 = vadd.f32 %v8323_v1, %v8317_v24 }
 0x463   : > { %v3049_v13 = vadd.f32 %v2839_v29, %v2478_v50  ;;  %v2882_v33 = vpop.f32.mrf.mxu1  ;;  %v3064_v14 = vadd.f32 %v8329_v38, %v3048_v11  ;;  %v6531_v50 = vld [vmem:[%s9604_s1 + $0x80] sm:$0xff]  ;;  %v2642_v36 = vadd.f32 %v8327_v17, %v8321_v35 }
 0x464   : > { %v2841_v59 = vpop.f32.mrf.mxu0  ;;  %vm3077_vm10 = vcmp.ge.f32.partialorder %v3066_v7, 0.0  ;;  %v3088_v52 = vmul.f32 0.02, %v3066_v7  ;;  %v3067_v46 = vadd.f32 %v8329_v38, %v3051_v58 }
 0x465   : > { %v3065_v43 = vadd.f32 %v8329_v38, %v3049_v13  ;;  %v2883_v55 = vpop.f32.mrf.mxu1  ;;  %vm3075_vm11 = vcmp.ge.f32.partialorder %v3064_v14, 0.0  ;;  %v3086_v56 = vmul.f32 0.02, %v3064_v14 }
 0x466   : > { %v2842_v40 = vpop.f32.mrf.mxu0  ;;  %vm3078_vm12 = vcmp.ge.f32.partialorder %v3067_v46, 0.0  ;;  %v3089_v20 = vmul.f32 0.02, %v3067_v46  ;;  %v3099_v12 = vsel %vm3077_vm10, %v3066_v7, %v3088_v52 }
 0x467   : > { %vm3076_vm13 = vcmp.ge.f32.partialorder %v3065_v43, 0.0  ;;  %v3087_v53 = vmul.f32 0.02, %v3065_v43  ;;  %v2960_v37 = vpop.f32.mrf.mxu1  ;;  %v3097_v8 = vsel %vm3075_vm11, %v3064_v14, %v3086_v56  ;;  %v8355_v51 = vmul.f32 %v6529_v9, %v3099_v12 }
 0x468   : > { %v3054_v23 = vadd.f32 %v2960_v37, %v2599_v16  ;;  %v2919_v27 = vpop.f32.mrf.mxu0  ;;  %v3100_v47 = vsel %vm3078_vm12, %v3067_v46, %v3089_v20  ;;  %v8358_v18 = vmul.f32 %v6527_v0, %v3097_v8  ;;  %v6534_v46 = vld [vmem:[%s9604_s1 + $0x98] sm:$0xff]  ;;  %v6533_v16 = vld [vmem:[%s9604_s1 + $0x90] sm:$0xff]  ;;  %v6535_v8 = vld [vmem:[%s9604_s1 + $0xa0] sm:$0xff] }
 0x469   : > { %v3098_v22 = vsel %vm3076_vm13, %v3065_v43, %v3087_v53  ;;  %v3052_v15 = vadd.f32 %v2919_v27, %v2558_v19  ;;  %v2962_v5 = vpop.f32.mrf.mxu1  ;;  %v8364_v32 = vmul.f32 %v6530_v21, %v3100_v47 }
 0x46a   : > { %v8353_v2 = vmul.f32 %v6528_v48, %v3098_v22  ;;  %v3055_v31 = vadd.f32 %v2962_v5, %v2601_v6  ;;  %v2921_v10 = vpop.f32.mrf.mxu0  ;;  %v3070_v4 = vadd.f32 %v8329_v38, %v3054_v23  ;;  %v6536_v22 = vld [vmem:[%s9604_s1 + $0xa8] sm:$0xff] }
 0x46b   : > { %v3068_v45 = vadd.f32 %v8329_v38, %v3052_v15  ;;  %v3053_v62 = vadd.f32 %v2921_v10, %v2560_v3  ;;  %v2964_v63 = vpop.f32.mrf.mxu1  ;;  %v6976_v59 = vpack.i.bf16 %v8364_v32, %v8355_v51  ;;  %v6981_v9 = vpack.i.bf16 %v8358_v18, %v8364_v32 }
 0x46c   : > { %v3071_v44 = vadd.f32 %v8329_v38, %v3055_v31  ;;  %v2923_v49 = vpop.f32.mrf.mxu0  ;;  %v6971_v39 = vpack.i.bf16 %v8355_v51, %v8353_v2  ;;  %v6966_v41 = vpack.i.bf16 %v8353_v2, %v8358_v18  ;;  %v3092_v29 = vmul.f32 0.02, %v3070_v4 }
 0x46d   : > { %vm3079_vm14 = vcmp.ge.f32.partialorder %v3068_v45, 0.0  ;;  %v3090_v61 = vmul.f32 0.02, %v3068_v45  ;;  %v3069_v30 = vadd.f32 %v8329_v38, %v3053_v62  ;;  %v2965_v57 = vpop.f32.mrf.mxu1  ;;  %vm3081_vm4 = vcmp.ge.f32.partialorder %v3070_v4, 0.0  ;;  %v6537_v62 = vld [vmem:[%s9604_s1 + $0xb0] sm:$0xff] }
 0x46e   : > { %v3093_v28 = vmul.f32 0.02, %v3071_v44  ;;  %v2924_v54 = vpop.f32.mrf.mxu0  ;;  %6972 = vrot.lane.b32.xlu0 %v6971_v39, %s7126_s26  ;;  %vm3082_vm15 = vcmp.ge.f32.partialorder %v3071_v44, 0.0  ;;  %6967 = vrot.lane.b32.xlu1 %v6966_v41, %s7125_s25  ;;  %v3103_v40 = vsel %vm3081_vm4, %v3070_v4, %v3092_v29 }
 0x46f   : > { %v3101_v11 = vsel %vm3079_vm14, %v3068_v45, %v3090_v61  ;;  %vm3080_vm0 = vcmp.ge.f32.partialorder %v3069_v30, 0.0  ;;  %v3091_v58 = vmul.f32 0.02, %v3069_v30  ;;  %v8407_v0 = vmul.f32 %v6533_v16, %v3103_v40 }
 0x470   : > { %v3042_v7 = vpop.f32.mrf.mxu1  ;;  %v3001_v13 = vpop.f32.mrf.mxu0  ;;  %v8385_v52 = vmul.f32 %v6531_v50, %v3101_v11  ;;  %v3104_v24 = vsel %vm3082_vm15, %v3071_v44, %v3093_v28 }
 0x471   : > { %v3102_v33 = vsel %vm3080_vm0, %v3069_v30, %v3091_v58  ;;  %v3056_v14 = vadd.f32 %v3001_v13, %v2640_v26  ;;  %v3058_v35 = vadd.f32 %v3042_v7, %v2681_v34  ;;  %v8400_v53 = vmul.f32 %v6534_v46, %v3104_v24 }
 0x472   : > { %v8391_v1 = vmul.f32 %v6532_v60, %v3102_v33  ;;  %v3003_v17 = vpop.f32.mrf.mxu0  ;;  %v6745_v43 = vpop.f32.mrf.mxu1  ;;  %6977 = vrot.lane.b32.xlu1 %v6976_v59, %s7125_s25 }
 0x473   : > { %v3072_v55 = vadd.f32 %v8329_v38, %v3056_v14  ;;  %v3057_v56 = vadd.f32 %v3003_v17, %v2642_v36  ;;  %v3074_v12 = vadd.f32 %v8329_v38, %v3058_v35 }
 0x474   : > { %v6986_v20 = vpack.i.bf16 %v8391_v1, %v8385_v52  ;;  %v3005_v19 = vpop.f32.mrf.mxu0  ;;  %v3045_v48 = vpop.f32.mrf.mxu1 }
 0x475   : > { %vm3083_vm6 = vcmp.ge.f32.partialorder %v3072_v55, 0.0  ;;  %v3094_v37 = vmul.f32 0.02, %v3072_v55  ;;  %v3073_v6 = vadd.f32 %v8329_v38, %v3057_v56  ;;  %v6996_v38 = vpack.i.bf16 %v8400_v53, %v8407_v0 }
 0x476   : > { %6987 = vrot.lane.b32.xlu0 %v6986_v20, %s7125_s25  ;;  %v3006_v23 = vpop.f32.mrf.mxu0  ;;  %v6746_v27 = vpop.f32.mrf.mxu1  ;;  %6982 = vrot.lane.b32.xlu1 %v6981_v9, %s7126_s26  ;;  %v3096_v5 = vmul.f32 0.02, %v3074_v12  ;;  %vm3085_vm11 = vcmp.ge.f32.partialorder %v3074_v12, 0.0 }
 0x477   : > { %v3105_v3 = vsel %vm3083_vm6, %v3072_v55, %v3094_v37  ;;  %vm3084_vm10 = vcmp.ge.f32.partialorder %v3073_v6, 0.0  ;;  %v3095_v15 = vmul.f32 0.02, %v3073_v6 }
 0x478   : > { %v8419_v47 = vmul.f32 %v6535_v8, %v3105_v3  ;;  %v3107_v45 = vsel %vm3085_vm11, %v3074_v12, %v3096_v5 }
 0x479   : > { %v3106_v21 = vsel %vm3084_vm10, %v3073_v6, %v3095_v15  ;;  %v8431_v63 = vmul.f32 %v6537_v62, %v3107_v45 }
 0x47a   : > { %6992 = vrot.lane.b32.xlu0 %v6986_v20, %s7126_s26  ;;  %v8421_v31 = vmul.f32 %v6536_v22, %v3106_v21  ;;  %6997 = vrot.lane.b32.xlu1 %v6996_v38, %s7125_s25 }
 0x47c   : > { %v7006_v10 = vpack.i.bf16 %v8421_v31, %v8419_v47 }
 0x47e   : > { %7007 = vrot.lane.b32.xlu0 %v7006_v10, %s7125_s25  ;;  %7002 = vrot.lane.b32.xlu1 %v6996_v38, %s7126_s26 }
 0x482   : > { %7012 = vrot.lane.b32.xlu0 %v7006_v10, %s7126_s26  ;;  %3213 = vrot.lane.b32.xlu1 %v8431_v63, %s7125_s25 }
 0x486   : > { %3170 = vrot.lane.b32.xlu1 %v8431_v63, %s7126_s26 }
 0x4e0   : > { %v6968_v4 = vpop.permute.xlu1 %6967  ;;  %v6973_v39 = vpop.permute.xlu0 %6972 }
 0x4e1   : > { %v6970_v44 = vunpack.i.h.bf16 %v6968_v4  ;;  %v6969_v49 = vunpack.i.l.bf16 %v6968_v4  ;;  %v6975_v50 = vunpack.i.h.bf16 %v6973_v39  ;;  %v6974_v58 = vunpack.i.l.bf16 %v6973_v39 }
 0x4e3   : > { %v3215_v61 = vsel %vm343_vm1, %v6969_v49, %v6970_v44 }
 0x4e4   : > { %v6978_v30 = vpop.permute.xlu1 %6977  ;;  %v8439_v57 = vpack.c.bf16 %v3215_v61, %v3215_v61 }
 0x4e5   : > { %v6980_v41 = vunpack.i.h.bf16 %v6978_v30  ;;  %v6979_v26 = vunpack.i.l.bf16 %v6978_v30 }
 0x4e6   : > { %3302 = vrot.lane.b32.xlu0 %v8439_v57, %s7127_s27 }
 0x4e7   : > { %v3217_v54 = vsel %vm343_vm1, %v6979_v26, %v6980_v41  ;;  %v3216_v35 = vsel %vm343_vm1, %v6970_v44, %v6979_v26 }
 0x4e8   : > { %v6988_v28 = vpop.permute.xlu0 %6987  ;;  %v6983_v11 = vpop.permute.xlu1 %6982  ;;  %v8444_v60 = vpack.c.bf16 %v3217_v54, %v3217_v54  ;;  %v8462_v43 = vpack.c.bf16 %v3216_v35, %v3216_v35 }
 0x4e9   : > { %v6989_v34 = vunpack.i.l.bf16 %v6988_v28  ;;  %v6985_v36 = vunpack.i.h.bf16 %v6983_v11  ;;  %v6984_v29 = vunpack.i.l.bf16 %v6983_v11  ;;  %v6990_v56 = vunpack.i.h.bf16 %v6988_v28 }
 0x4ea   : > { %3306 = vrot.lane.b32.xlu0 %v8444_v60, %s7127_s27 }
 0x4eb   : > { %v3172_v7 = vsel %vm295_vm2, %v6985_v36, %v6974_v58  ;;  %v3174_v13 = vsel %vm295_vm2, %v6975_v50, %v6984_v29  ;;  %v3218_v17 = vsel %vm343_vm1, %v6980_v41, %v6989_v34  ;;  %v3219_v12 = vsel %vm343_vm1, %v6989_v34, %v6990_v56 }
 0x4ec   : > { %v6993_v33 = vpop.permute.xlu0 %6992  ;;  %v6998_v14 = vpop.permute.xlu1 %6997  ;;  %v8451_v59 = vpack.c.bf16 %v3172_v7, %v8358_v18  ;;  %v8454_v46 = vpack.c.bf16 %v3174_v13, %v8355_v51  ;;  %v8464_v55 = vpack.c.bf16 %v3218_v17, %v3218_v17  ;;  %v3173_v18 = vsel %vm295_vm2, %v6974_v58, %v6975_v50 }
 0x4ed   : > { %v6994_v24 = vunpack.i.l.bf16 %v6993_v33  ;;  %v6999_v16 = vunpack.i.l.bf16 %v6998_v14  ;;  %v8473_v19 = vpack.c.bf16 %v3173_v18, %v8353_v2  ;;  %v6995_v37 = vunpack.i.h.bf16 %v6993_v33 }
 0x4ee   : > { %3280 = vrot.lane.b32.xlu1 %v8451_v59, %s7127_s27  ;;  %3284 = vrot.lane.b32.xlu0 %v8454_v46, %s7127_s27  ;;  %v8484_v23 = vpack.c.bf16 %v3219_v12, %v3219_v12 }
 0x4ef   : > { %v3175_v51 = vsel %vm295_vm2, %v6984_v29, %v6994_v24  ;;  %v3220_v6 = vsel %vm343_vm1, %v6990_v56, %v6999_v16  ;;  %v3176_v2 = vsel %vm295_vm2, %v6994_v24, %v6995_v37 }
 0x4f0   : > { %v7003_v40 = vpop.permute.xlu1 %7002  ;;  %v7008_v20 = vpop.permute.xlu0 %7007  ;;  %v8476_v48 = vpack.c.bf16 %v3175_v51, %v8364_v32  ;;  %v8486_v27 = vpack.c.bf16 %v3220_v6, %v3220_v6  ;;  %v7000_v32 = vunpack.i.h.bf16 %v6998_v14  ;;  %v8495_v15 = vpack.c.bf16 %v3176_v2, %v8385_v52 }
 0x4f1   : > { %v7004_v9 = vunpack.i.l.bf16 %v7003_v40  ;;  %v7009_v8 = vunpack.i.l.bf16 %v7008_v20  ;;  %v7005_v5 = vunpack.i.h.bf16 %v7003_v40  ;;  %v7010_v44 = vunpack.i.h.bf16 %v7008_v20  ;;  %v8614_v40 = vld [vmem:[%s9606_s3 + $0x10] sm:$0xf] }
 0x4f2   : > { %3304 = vrot.lane.b32.xlu1 %v8462_v43, %s7127_s27  ;;  %3308 = vrot.lane.b32.xlu0 %v8464_v55, %s7127_s27  ;;  %v3221_v10 = vsel %vm343_vm1, %v6999_v16, %v7000_v32 }
 0x4f3   : > { %v3177_v3 = vsel %vm295_vm2, %v6995_v37, %v7004_v9  ;;  %v3222_v45 = vsel %vm343_vm1, %v7000_v32, %v7009_v8  ;;  %v8506_v4 = vpack.c.bf16 %v3221_v10, %v3221_v10  ;;  %v3223_v26 = vsel %vm343_vm1, %v7009_v8, %v7010_v44 }
 0x4f4   : > { %v7013_v22 = vpop.permute.xlu0 %7012  ;;  %v8498_v38 = vpack.c.bf16 %v3177_v3, %v8391_v1  ;;  %v3214_v62 = vpop.permute.xlu1 %3213  ;;  %v8508_v52 = vpack.c.bf16 %v3222_v45, %v3222_v45  ;;  %v3178_v1 = vsel %vm295_vm2, %v7004_v9, %v7005_v5  ;;  %v8530_v50 = vpack.c.bf16 %v3223_v26, %v3223_v26 }
 0x4f5   : > { %v7014_v21 = vunpack.i.l.bf16 %v7013_v22  ;;  %v8517_v39 = vpack.c.bf16 %v3178_v1, %v8407_v0  ;;  %v7015_v30 = vunpack.i.h.bf16 %v7013_v22  ;;  %v3224_v41 = vsel %vm343_vm1, %v7010_v44, %v3214_v62 }
 0x4f6   : > { %3282 = vrot.lane.b32.xlu1 %v8473_v19, %s7127_s27  ;;  %3286 = vrot.lane.b32.xlu0 %v8476_v48, %s7127_s27  ;;  %v8528_v54 = vpack.c.bf16 %v3224_v41, %v3224_v41  ;;  %v8548_v34 = vpack.c.bf16 %v3214_v62, %v3214_v62 }
 0x4f7   : > { %v3179_v49 = vsel %vm295_vm2, %v7005_v5, %v7014_v21  ;;  %v3180_v0 = vsel %vm295_vm2, %v7014_v21, %v7015_v30 }
 0x4f8   : > { %v8520_v61 = vpack.c.bf16 %v3179_v49, %v8400_v53  ;;  %v3171_v28 = vpop.permute.xlu1 %3170  ;;  %v8542_v58 = vpack.c.bf16 %v3180_v0, %v8419_v47  ;;  %v6574_v47 = vld [vmem:[%s9607_s4 + $0x10] sm:$0xff] }
 0x4f9   : > { %v3181_v53 = vsel %vm295_vm2, %v7015_v30, %v3171_v28 }
 0x4fa   : > { %3310 = vrot.lane.b32.xlu1 %v8484_v23, %s7127_s27  ;;  %3312 = vrot.lane.b32.xlu0 %v8486_v27, %s7127_s27  ;;  %v8539_v11 = vpack.c.bf16 %v3181_v53, %v8421_v31  ;;  %v8555_v31 = vpack.c.bf16 %v3171_v28, %v8431_v63 }
 0x4fe   : > { %3288 = vrot.lane.b32.xlu1 %v8495_v15, %s7127_s27  ;;  %3290 = vrot.lane.b32.xlu0 %v8498_v38, %s7127_s27 }
 0x502   : > { %3314 = vrot.lane.b32.xlu1 %v8506_v4, %s7127_s27  ;;  %3316 = vrot.lane.b32.xlu0 %v8508_v52, %s7127_s27 }
 0x506   : > { %3292 = vrot.lane.b32.xlu1 %v8517_v39, %s7127_s27  ;;  %3294 = vrot.lane.b32.xlu0 %v8520_v61, %s7127_s27 }
 0x50a   : > { %3318 = vrot.lane.b32.xlu1 %v8530_v50, %s7127_s27  ;;  %3320 = vrot.lane.b32.xlu0 %v8528_v54, %s7127_s27 }
 0x50e   : > { %3296 = vrot.lane.b32.xlu1 %v8542_v58, %s7127_s27  ;;  %3298 = vrot.lane.b32.xlu0 %v8539_v11, %s7127_s27 }
 0x512   : > { %3322 = vrot.lane.b32.xlu1 %v8548_v34, %s7127_s27  ;;  %3939 = vrot.lane.b32.xlu0 %v8439_v57, %s7129_s28 }
 0x516   : > { %3300 = vrot.lane.b32.xlu1 %v8555_v31, %s7127_s27  ;;  %3943 = vrot.lane.b32.xlu0 %v8444_v60, %s7129_s28 }
 0x51a   : > { %3941 = vrot.lane.b32.xlu1 %v8462_v43, %s7129_s28  ;;  %3921 = vrot.lane.b32.xlu0 %v8454_v46, %s7129_s28 }
 0x51e   : > { %3919 = vrot.lane.b32.xlu1 %v8473_v19, %s7129_s28  ;;  %3945 = vrot.lane.b32.xlu0 %v8464_v55, %s7129_s28 }
 0x522   : > { %3917 = vrot.lane.b32.xlu1 %v8451_v59, %s7129_s28  ;;  %3949 = vrot.lane.b32.xlu0 %v8486_v27, %s7129_s28 }
 0x526   : > { %3947 = vrot.lane.b32.xlu1 %v8484_v23, %s7129_s28  ;;  %3923 = vrot.lane.b32.xlu0 %v8476_v48, %s7129_s28 }
 0x52a   : > { %3951 = vrot.lane.b32.xlu1 %v8506_v4, %s7129_s28  ;;  %3927 = vrot.lane.b32.xlu0 %v8498_v38, %s7129_s28 }
 0x52e   : > { %3925 = vrot.lane.b32.xlu1 %v8495_v15, %s7129_s28  ;;  %3953 = vrot.lane.b32.xlu0 %v8508_v52, %s7129_s28 }
 0x532   : > { %3929 = vrot.lane.b32.xlu1 %v8517_v39, %s7129_s28  ;;  %3931 = vrot.lane.b32.xlu0 %v8520_v61, %s7129_s28 }
 0x536   : > { %3955 = vrot.lane.b32.xlu1 %v8530_v50, %s7129_s28  ;;  %3957 = vrot.lane.b32.xlu0 %v8528_v54, %s7129_s28 }
 0x53a   : > { %3959 = vrot.lane.b32.xlu1 %v8548_v34, %s7129_s28  ;;  %3935 = vrot.lane.b32.xlu0 %v8539_v11, %s7129_s28 }
 0x53e   : > { %3933 = vrot.lane.b32.xlu1 %v8542_v58, %s7129_s28  ;;  %4286 = vperm.xlu0 %6965, %v6574_v47  }
 0x542   : > { %3937 = vrot.lane.b32.xlu1 %v8555_v31, %s7129_s28 }
 0x558   : > { %v3303_v63 = vpop.permute.xlu0 %3302 }
 0x55c   : > { %v3307_v36 = vpop.permute.xlu0 %3306 }
 0x560   : > { %v3281_v29 = vpop.permute.xlu1 %3280  ;;  %v3285_v7 = vpop.permute.xlu0 %3284 }
 0x564   : > { %v3305_v13 = vpop.permute.xlu1 %3304  ;;  %v3309_v33 = vpop.permute.xlu0 %3308 }
 0x565   : > { %v3334_v14 = vsel %vm511_vm3, %v3303_v63, %v3305_v13  ;;  %v3335_v24 = vsel %vm511_vm3, %v3305_v13, %v3307_v36  ;;  %v3336_v16 = vsel %vm511_vm3, %v3307_v36, %v3309_v33 }
 0x566   : > { %6586 = vmatprep.subr.msk.bf16.mxu0 %vm2126_vm7, %v3335_v24  ;;  %v3359_v35 = vsel %vm2126_vm7, %v3334_v14, 0  ;;  %v3365_v12 = vsel %vm2126_vm7, %v3336_v16, 0  ;;  %v3640_v16 = vsel %vm2126_vm7, %v8439_v57, 0  ;;  %v6571_v57 = vld [vmem:[%s9606_s3 + $0xc] sm:$0xf] }
 0x567   : > { %3404 = vmatpush1.bf16.msra.mxu0 %v3359_v35 }
 0x568   : > { %v3283_v17 = vpop.permute.xlu1 %3282  ;;  %v3287_v18 = vpop.permute.xlu0 %3286 }
 0x569   : > { %v3325_v56 = vsel %vm511_vm3, %v3283_v17, %v3285_v7  ;;  %v3324_v51 = vsel %vm511_vm3, %v3281_v29, %v3283_v17  ;;  %v3326_v8 = vsel %vm511_vm3, %v3285_v7, %v3287_v18 }
 0x56a   : > { %3405 = vmatprep.subr.bf16.mxu0 %v3325_v56 }
 0x56b   : > { %3406 = vmatpush1.bf16.msra.mxu0 %v3324_v51 }
 0x56c   : > { %v3311_v20 = vpop.permute.xlu1 %3310  ;;  %v3313_v37 = vpop.permute.xlu0 %3312 }
 0x56d   : > { %v3337_v9 = vsel %vm511_vm3, %v3309_v33, %v3311_v20  ;;  %v3338_v3 = vsel %vm511_vm3, %v3311_v20, %v3313_v37  ;;  %v3646_v20 = vsel %vm2126_vm7, %v8444_v60, 0 }
 0x56e   : > { %6588 = vmatprep.subr.msk.bf16.mxu1 %vm2126_vm7, %v3337_v9  ;;  %6587 = vmatmul.mubr.msk.bf16.vlgmr.msra.gmra.mxu0 %vm2122_vm8, %v8614_v40  ;;  %v3371_v10 = vsel %vm2126_vm7, %v3338_v3, 0 }
 0x56f   : > { %3445 = vmatpush1.bf16.msra.mxu1 %v3365_v12  ;;  %3505 = vmatprep.mubr.bf16.mxu0 %v7128_v42 }
 0x570   : > { %v3289_v6 = vpop.permute.xlu1 %3288  ;;  %v3291_v2 = vpop.permute.xlu0 %3290 }
 0x571   : > { %v3327_v32 = vsel %vm511_vm3, %v3287_v18, %v3289_v6  ;;  %v3328_v1 = vsel %vm511_vm3, %v3289_v6, %v3291_v2 }
 0x572   : > { %3446 = vmatprep.subr.bf16.mxu1 %v3327_v32 }
 0x573   : > { %3447 = vmatpush1.bf16.msra.mxu1 %v3326_v8 }
 0x574   : > { %v3315_v22 = vpop.permute.xlu1 %3314  ;;  %v3317_v5 = vpop.permute.xlu0 %3316 }
 0x575   : > { %v3339_v21 = vsel %vm511_vm3, %v3313_v37, %v3315_v22  ;;  %v3340_v49 = vsel %vm511_vm3, %v3315_v22, %v3317_v5 }
 0x576   : > { %6590 = vmatprep.subr.msk.bf16.mxu0 %vm2126_vm7, %v3339_v21  ;;  %6589 = vmatmul.mubr.msk.bf16.vlgmr.msra.gmra.mxu1 %vm2122_vm8, %v8614_v40  ;;  %v3377_v28 = vsel %vm2126_vm7, %v3340_v49, 0 }
 0x577   : > { %3486 = vmatpush1.bf16.msra.mxu0 %v3371_v10  ;;  %3546 = vmatprep.mubr.bf16.mxu1 %v7128_v42 }
 0x578   : > { %v3293_v45 = vpop.permute.xlu1 %3292  ;;  %v3295_v62 = vpop.permute.xlu0 %3294 }
 0x579   : > { %v3329_v44 = vsel %vm511_vm3, %v3291_v2, %v3293_v45  ;;  %v3330_v63 = vsel %vm511_vm3, %v3293_v45, %v3295_v62 }
 0x57a   : > { %3487 = vmatprep.subr.bf16.mxu0 %v3329_v44 }
 0x57b   : > { %3488 = vmatpush1.bf16.msra.mxu0 %v3328_v1 }
 0x57c   : > { %v3319_v30 = vpop.permute.xlu1 %3318  ;;  %v3321_v41 = vpop.permute.xlu0 %3320 }
 0x57d   : > { %v3341_v26 = vsel %vm511_vm3, %v3317_v5, %v3319_v30  ;;  %v3342_v36 = vsel %vm511_vm3, %v3319_v30, %v3321_v41  ;;  %v6573_v5 = vld [vmem:[%s9606_s3 + $0x14] sm:$0xf] }
 0x57e   : > { %6592 = vmatprep.subr.msk.bf16.mxu1 %vm2126_vm7, %v3341_v26  ;;  %6591 = vmatmul.mubr.msk.bf16.vlgmr.msra.gmra.mxu0 %vm2122_vm8, %v8614_v40  ;;  %v3383_v14 = vsel %vm2126_vm7, %v3342_v36, 0 }
 0x57f   : > { %3527 = vmatpush1.bf16.msra.mxu1 %v3377_v28  ;;  %3587 = vmatprep.mubr.bf16.mxu0 %v7128_v42 }
 0x580   : > { %v3297_v0 = vpop.permute.xlu1 %3296  ;;  %v3299_v53 = vpop.permute.xlu0 %3298 }
 0x581   : > { %v3331_v47 = vsel %vm511_vm3, %v3295_v62, %v3297_v0  ;;  %v3332_v18 = vsel %vm511_vm3, %v3297_v0, %v3299_v53 }
 0x582   : > { %3528 = vmatprep.subr.bf16.mxu1 %v3331_v47 }
 0x583   : > { %3529 = vmatpush1.bf16.msra.mxu1 %v3330_v63 }
 0x584   : > { %v3323_v29 = vpop.permute.xlu1 %3322  ;;  %v8643_v7 = vpop.permute.xlu0 %3939  ;;  %6747 = vmatprep.subr.bf16.mxu1 %v7131_v25 }
 0x585   : > { %v3343_v13 = vsel %vm511_vm3, %v3321_v41, %v3323_v29  ;;  %v3389_v33 = vsel %vm2126_vm7, %v3323_v29, 0 }
 0x586   : > { %6593 = vmatmul.mubr.msk.bf16.vlgmr.msra.gmra.mxu1 %vm2122_vm8, %v8614_v40  ;;  %6594 = vmatprep.subr.msk.bf16.mxu0 %vm2126_vm7, %v3343_v13 }
 0x587   : > { %3568 = vmatpush1.bf16.msra.mxu0 %v3383_v14  ;;  %6748 = vmatpush3.bf16.msra.mxu1 %v3389_v33 }
 0x588   : > { %v3301_v24 = vpop.permute.xlu1 %3300  ;;  %v8652_v35 = vpop.permute.xlu0 %3943  ;;  %6749 = vmatprep.subr.bf16.mxu1 %v7131_v25  ;;  %6751 = vmatprep.mubr.msk.bf16.mxu1 %vm7132_vm9, %v7131_v25 }
 0x589   : > { %v3333_v17 = vsel %vm511_vm3, %v3299_v53, %v3301_v24 }
 0x58a   : > { %3569 = vmatprep.subr.bf16.mxu0 %v3333_v17 }
 0x58b   : > { %3570 = vmatpush1.bf16.msra.mxu0 %v3332_v18  ;;  %6750 = vmatpush3.bf16.msra.mxu1 %v3301_v24 }
 0x58c   : > { %v3942_v56 = vpop.permute.xlu1 %3941  ;;  %6597 = vmatprep.subr.msk.bf16.mxu0 %vm2126_vm7, %v8462_v43  ;;  %6599 = vmatprep.subr.msk.bf16.mxu1 %vm2126_vm7, %v8464_v55  ;;  %v8663_v51 = vpop.permute.xlu0 %3921 }
 0x58e   : > { %6595 = vmatmul.mubr.msk.bf16.vlgmr.msra.gmra.mxu0 %vm2122_vm8, %v8614_v40  ;;  %6752 = vmatmul.mubr.msk.bf16.vlgmr.msra.gmra.mxu1 %vm2122_vm8, %v8614_v40 }
 0x58f   : > { %3685 = vmatpush1.bf16.msra.mxu0 %v3640_v16  ;;  %3726 = vmatpush1.bf16.msra.mxu1 %v3646_v20 }
 0x590   : > { %v8673_v43 = vpop.permute.xlu1 %3919  ;;  %3727 = vmatprep.subr.bf16.mxu1 %v8476_v48  ;;  %v3946_v55 = vpop.permute.xlu0 %3945  ;;  %3686 = vmatprep.subr.bf16.mxu0 %v8473_v19 }
 0x591   : > { %3704 = vmatprep.mubr.bf16.mxu0 %v7128_v42  ;;  %3745 = vmatprep.mubr.bf16.mxu1 %v7128_v42  ;;  %v3962_v37 = vsel %vm1105_vm5, %v8673_v43, %v8663_v51 }
 0x593   : > { %3687 = vmatpush1.bf16.msra.mxu0 %v8451_v59  ;;  %3728 = vmatpush1.bf16.msra.mxu1 %v8454_v46  ;;  %v3652_v59 = vsel %vm2126_vm7, %v8484_v23, 0  ;;  %v3658_v46 = vsel %vm2126_vm7, %v8506_v4, 0 }
 0x594   : > { %v3918_v60 = vpop.permute.xlu1 %3917  ;;  %6603 = vmatprep.subr.msk.bf16.mxu1 %vm2126_vm7, %v8508_v52  ;;  %v8686_v48 = vpop.permute.xlu0 %3949  ;;  %6601 = vmatprep.subr.msk.bf16.mxu0 %vm2126_vm7, %v8486_v27 }
 0x595   : > { %v3961_v12 = vsel %vm1105_vm5, %v3918_v60, %v8673_v43 }
 0x596   : > { %6598 = vmatmul.mubr.msk.bf16.vlgmr.msra.gmra.mxu0 %vm2122_vm8, %v6571_v57  ;;  %6600 = vmatmul.mubr.msk.bf16.vlgmr.msra.gmra.mxu1 %vm2122_vm8, %v6571_v57 }
 0x597   : > { %3767 = vmatpush1.bf16.msra.mxu0 %v3652_v59  ;;  %3808 = vmatpush1.bf16.msra.mxu1 %v3658_v46 }
 0x598   : > { %v3948_v19 = vpop.permute.xlu1 %3947  ;;  %3809 = vmatprep.subr.bf16.mxu1 %v8520_v61  ;;  %v3924_v52 = vpop.permute.xlu0 %3923  ;;  %3768 = vmatprep.subr.bf16.mxu0 %v8498_v38  ;;  %v3664_v38 = vsel %vm2126_vm7, %v8530_v50, 0  ;;  %v3973_v61 = vsel %vm1105_vm5, %v8652_v35, %v3946_v55  ;;  %v3972_v50 = vsel %vm1105_vm5, %v3942_v56, %v8652_v35 }
 0x599   : > { %3786 = vmatprep.mubr.bf16.mxu0 %v7128_v42  ;;  %3827 = vmatprep.mubr.bf16.mxu1 %v7128_v42  ;;  %v3975_v6 = vsel %vm1105_vm5, %v3948_v19, %v8686_v48  ;;  %v3963_v32 = vsel %vm1105_vm5, %v8663_v51, %v3924_v52 }
 0x59a   : > { %v4008_v10 = vsel %vm2126_vm7, %v3975_v6, 0 }
 0x59b   : > { %3769 = vmatpush1.bf16.msra.mxu0 %v8495_v15  ;;  %3810 = vmatpush1.bf16.msra.mxu1 %v8517_v39  ;;  %v3670_v15 = vsel %vm2126_vm7, %v8548_v34, 0  ;;  %v3971_v39 = vsel %vm1105_vm5, %v8643_v7, %v3942_v56 }
 0x59c   : > { %v3952_v23 = vpop.permute.xlu1 %3951  ;;  %6605 = vmatprep.subr.msk.bf16.mxu0 %vm2126_vm7, %v8528_v54  ;;  %6755 = vmatprep.subr.bf16.mxu1 %v7131_v25  ;;  %v8705_v27 = vpop.permute.xlu0 %3927  ;;  %v3974_v54 = vsel %vm1105_vm5, %v3946_v55, %v3948_v19  ;;  %v3996_v40 = vsel %vm2126_vm7, %v3971_v39, 0 }
 0x59d   : > { %v3976_v22 = vsel %vm1105_vm5, %v8686_v48, %v3952_v23 }
 0x59e   : > { %6602 = vmatmul.mubr.msk.bf16.vlgmr.msra.gmra.mxu0 %vm2122_vm8, %v6571_v57  ;;  %6604 = vmatmul.mubr.msk.bf16.vlgmr.msra.gmra.mxu1 %vm2122_vm8, %v6571_v57 }
 0x59f   : > { %3849 = vmatpush1.bf16.msra.mxu0 %v3664_v38  ;;  %6756 = vmatpush3.bf16.msra.mxu1 %v3670_v15 }
 0x5a0   : > { %v3926_v4 = vpop.permute.xlu1 %3925  ;;  %3850 = vmatprep.subr.bf16.mxu0 %v8539_v11  ;;  %6757 = vmatprep.subr.bf16.mxu1 %v7131_v25  ;;  %v3954_v11 = vpop.permute.xlu0 %3953 }
 0x5a1   : > { %3868 = vmatprep.mubr.bf16.mxu0 %v7128_v42  ;;  %6759 = vmatprep.mubr.msk.bf16.mxu1 %vm7132_vm9, %v7131_v25  ;;  %v3977_v8 = vsel %vm1105_vm5, %v3952_v23, %v3954_v11  ;;  %v3965_v30 = vsel %vm1105_vm5, %v3926_v4, %v8705_v27 }
 0x5a2   : > { %v4014_v45 = vsel %vm2126_vm7, %v3977_v8, 0 }
 0x5a3   : > { %3851 = vmatpush1.bf16.msra.mxu0 %v8542_v58  ;;  %6758 = vmatpush3.bf16.msra.mxu1 %v8555_v31  ;;  %v4002_v58 = vsel %vm2126_vm7, %v3973_v61, 0  ;;  %v3964_v31 = vsel %vm1105_vm5, %v3924_v52, %v3926_v4 }
 0x5a4   : > { %v3930_v34 = vpop.permute.xlu1 %3929  ;;  %6610 = vmatprep.subr.msk.bf16.mxu1 %vm2126_vm7, %v3974_v54  ;;  %6608 = vmatprep.subr.msk.bf16.mxu0 %vm2126_vm7, %v3972_v50  ;;  %v3932_v2 = vpop.permute.xlu0 %3931 }
 0x5a5   : > { %v3966_v62 = vsel %vm1105_vm5, %v8705_v27, %v3930_v34  ;;  %v3967_v41 = vsel %vm1105_vm5, %v3930_v34, %v3932_v2 }
 0x5a6   : > { %6606 = vmatmul.mubr.msk.bf16.vlgmr.msra.gmra.mxu0 %vm2122_vm8, %v6571_v57  ;;  %6760 = vmatmul.mubr.msk.bf16.vlgmr.msra.gmra.mxu1 %vm2122_vm8, %v6571_v57 }
 0x5a7   : > { %4041 = vmatpush1.bf16.msra.mxu0 %v3996_v40  ;;  %4082 = vmatpush1.bf16.msra.mxu1 %v4002_v58 }
 0x5a8   : > { %v3956_v9 = vpop.permute.xlu1 %3955  ;;  %4083 = vmatprep.subr.bf16.mxu1 %v3964_v31  ;;  %4042 = vmatprep.subr.bf16.mxu0 %v3962_v37  ;;  %v3958_v44 = vpop.permute.xlu0 %3957 }
 0x5a9   : > { %4060 = vmatprep.mubr.bf16.mxu0 %v7128_v42  ;;  %4101 = vmatprep.mubr.bf16.mxu1 %v7128_v42  ;;  %v3978_v3 = vsel %vm1105_vm5, %v3954_v11, %v3956_v9  ;;  %v3979_v26 = vsel %vm1105_vm5, %v3956_v9, %v3958_v44 }
 0x5aa   : > { %v4020_v47 = vsel %vm2126_vm7, %v3979_v26, 0 }
 0x5ab   : > { %4043 = vmatpush1.bf16.msra.mxu0 %v3961_v12  ;;  %4084 = vmatpush1.bf16.msra.mxu1 %v3963_v32 }
 0x5ac   : > { %v3960_v21 = vpop.permute.xlu1 %3959  ;;  %6614 = vmatprep.subr.msk.bf16.mxu1 %vm2126_vm7, %v3978_v3  ;;  %6612 = vmatprep.subr.msk.bf16.mxu0 %vm2126_vm7, %v3976_v22  ;;  %v3936_v53 = vpop.permute.xlu0 %3935 }
 0x5ad   : > { %v3980_v28 = vsel %vm1105_vm5, %v3958_v44, %v3960_v21  ;;  %v4026_v63 = vsel %vm2126_vm7, %v3960_v21, 0 }
 0x5ae   : > { %6609 = vmatmul.mubr.msk.bf16.vlgmr.msra.gmra.mxu0 %vm2122_vm8, %v6573_v5  ;;  %6611 = vmatmul.mubr.msk.bf16.vlgmr.msra.gmra.mxu1 %vm2122_vm8, %v6573_v5 }
 0x5af   : > { %4123 = vmatpush1.bf16.msra.mxu0 %v4008_v10  ;;  %4164 = vmatpush1.bf16.msra.mxu1 %v4014_v45 }
 0x5b0   : > { %v3934_v1 = vpop.permute.xlu1 %3933  ;;  %4124 = vmatprep.subr.bf16.mxu0 %v3966_v62  ;;  %4142 = vmatprep.mubr.bf16.mxu0 %v7128_v42 }
 0x5b1   : > { %v3968_v49 = vsel %vm1105_vm5, %v3932_v2, %v3934_v1  ;;  %4183 = vmatprep.mubr.bf16.mxu1 %v7128_v42  ;;  %v3969_v29 = vsel %vm1105_vm5, %v3934_v1, %v3936_v53 }
 0x5b2   : > { %4165 = vmatprep.subr.bf16.mxu1 %v3968_v49 }
 0x5b3   : > { %4125 = vmatpush1.bf16.msra.mxu0 %v3965_v30  ;;  %4166 = vmatpush1.bf16.msra.mxu1 %v3967_v41 }
 0x5b4   : > { %v3938_v0 = vpop.permute.xlu1 %3937  ;;  %6616 = vmatprep.subr.msk.bf16.mxu0 %vm2126_vm7, %v3980_v28  ;;  %6763 = vmatprep.subr.bf16.mxu1 %v7131_v25 }
 0x5b5   : > { %v3970_v36 = vsel %vm1105_vm5, %v3936_v53, %v3938_v0 }
 0x5b6   : > { %6613 = vmatmul.mubr.msk.bf16.vlgmr.msra.gmra.mxu0 %vm2122_vm8, %v6573_v5  ;;  %6615 = vmatmul.mubr.msk.bf16.vlgmr.msra.gmra.mxu1 %vm2122_vm8, %v6573_v5 }
 0x5b7   : > { %4205 = vmatpush1.bf16.msra.mxu0 %v4020_v47  ;;  %6764 = vmatpush3.bf16.msra.mxu1 %v4026_v63 }
 0x5b8   : > { %4206 = vmatprep.subr.bf16.mxu0 %v3970_v36  ;;  %6765 = vmatprep.subr.bf16.mxu1 %v7131_v25 }
 0x5b9   : > { %4224 = vmatprep.mubr.bf16.mxu0 %v7128_v42  ;;  %6767 = vmatprep.mubr.msk.bf16.mxu1 %vm7132_vm9, %v7131_v25  ;;  %v8804_v30 = vpop.permute.xlu0 %4286 }
 0x5bb   : > { %4207 = vmatpush1.bf16.msra.mxu0 %v3969_v29  ;;  %6766 = vmatpush3.bf16.msra.mxu1 %v3938_v0 }
 0x5be   : > { %6617 = vmatmul.mubr.msk.bf16.vlgmr.msra.gmra.mxu0 %vm2122_vm8, %v6573_v5  ;;  %6768 = vmatmul.mubr.msk.bf16.vlgmr.msra.gmra.mxu1 %vm2122_vm8, %v6573_v5 }
 0x5bf   : > { %4624 = vmatprep.mubr.bf16.mxu0 %v7128_v42  ;;  %4665 = vmatprep.mubr.bf16.mxu1 %v7128_v42 }
 0x62e   : > { %v3425_v7 = vpop.f32.mrf.mxu0 }
 0x630   : > { %v3427_v13 = vpop.f32.mrf.mxu0 }
 0x632   : > { %v3429_v33 = vpop.f32.mrf.mxu0 }
 0x634   : > { %v3430_v14 = vpop.f32.mrf.mxu0 }
 0x636   : > { %v3466_v24 = vpop.f32.mrf.mxu1 }
 0x638   : > { %v3468_v35 = vpop.f32.mrf.mxu1 }
 0x63a   : > { %v3470_v17 = vpop.f32.mrf.mxu1 }
 0x63c   : > { %v3471_v18 = vpop.f32.mrf.mxu1 }
 0x63e   : > { %v8784_v56 = vpop.f32.mrf.mxu0 }
 0x640   : > { %v8786_v51 = vpop.f32.mrf.mxu0 }
 0x642   : > { %v3511_v16 = vpop.f32.mrf.mxu0 }
 0x644   : > { %v3512_v20 = vpop.f32.mrf.mxu0 }
 0x646   : > { %v8788_v43 = vpop.f32.mrf.mxu1 }
 0x648   : > { %v8790_v55 = vpop.f32.mrf.mxu1 }
 0x64a   : > { %v3552_v57 = vpop.f32.mrf.mxu1 }
 0x64b   : > { %v6575_v57 = vld [vmem:[%s9604_s1 + $0xc0] sm:$0xff] }
 0x64c   : > { %v3553_v60 = vpop.f32.mrf.mxu1 }
 0x64e   : > { %v8792_v48 = vpop.f32.mrf.mxu0  ;;  %v8794_v59 = vpop.f32.mrf.mxu1 }
 0x650   : > { %v8796_v46 = vpop.f32.mrf.mxu0  ;;  %v6753_v19 = vpop.f32.mrf.mxu1 }
 0x651   : > { %v6576_v19 = vld [vmem:[%s9604_s1 + $0xc8] sm:$0xff] }
 0x652   : > { %v3593_v52 = vpop.f32.mrf.mxu0  ;;  %v3633_v23 = vpop.f32.mrf.mxu1 }
 0x654   : > { %v3594_v27 = vpop.f32.mrf.mxu0  ;;  %v6754_v38 = vpop.f32.mrf.mxu1 }
 0x655   : > { %v6577_v38 = vld [vmem:[%s9604_s1 + $0xd0] sm:$0xff] }
 0x656   : > { %v3706_v15 = vpop.f32.mrf.mxu0  ;;  %v3747_v4 = vpop.f32.mrf.mxu1 }
 0x657   : > { %v3707_v62 = vadd.f32 %v3706_v15, %v3425_v7  ;;  %v3748_v44 = vadd.f32 %v3747_v4, %v3466_v24 }
 0x658   : > { %v3708_v39 = vpop.f32.mrf.mxu0  ;;  %v3749_v61 = vpop.f32.mrf.mxu1 }
 0x659   : > { %v3709_v41 = vadd.f32 %v3708_v39, %v3427_v13  ;;  %v3750_v26 = vadd.f32 %v3749_v61, %v3468_v35 }
 0x65a   : > { %v3710_v54 = vpop.f32.mrf.mxu0  ;;  %v3751_v50 = vpop.f32.mrf.mxu1 }
 0x65c   : > { %v3711_v11 = vpop.f32.mrf.mxu0  ;;  %v3752_v34 = vpop.f32.mrf.mxu1 }
 0x65e   : > { %v3788_v40 = vpop.f32.mrf.mxu0  ;;  %v3829_v58 = vpop.f32.mrf.mxu1 }
 0x65f   : > { %v3789_v20 = vadd.f32 %v3788_v40, %v8784_v56  ;;  %v6578_v56 = vld [vmem:[%s9604_s1 + $0xd8] sm:$0xff]  ;;  %v3830_v61 = vadd.f32 %v3829_v58, %v8788_v43 }
 0x660   : > { %v3790_v31 = vpop.f32.mrf.mxu0  ;;  %v3831_v37 = vpop.f32.mrf.mxu1 }
 0x661   : > { %v3791_v54 = vadd.f32 %v3790_v31, %v8786_v51  ;;  %v3832_v50 = vadd.f32 %v3831_v37, %v8790_v55 }
 0x662   : > { %v3792_v9 = vpop.f32.mrf.mxu0  ;;  %v3833_v12 = vpop.f32.mrf.mxu1 }
 0x664   : > { %v3793_v6 = vpop.f32.mrf.mxu0  ;;  %v3834_v2 = vpop.f32.mrf.mxu1 }
 0x666   : > { %v8798_v32 = vpop.f32.mrf.mxu0  ;;  %v8800_v8 = vpop.f32.mrf.mxu1 }
 0x668   : > { %v8802_v3 = vpop.f32.mrf.mxu0  ;;  %v6761_v22 = vpop.f32.mrf.mxu1 }
 0x66a   : > { %v3874_v5 = vpop.f32.mrf.mxu0  ;;  %v3914_v21 = vpop.f32.mrf.mxu1 }
 0x66c   : > { %v3875_v10 = vpop.f32.mrf.mxu0  ;;  %v6762_v45 = vpop.f32.mrf.mxu1 }
 0x66e   : > { %v4062_v1 = vpop.f32.mrf.mxu0  ;;  %v4103_v49 = vpop.f32.mrf.mxu1 }
 0x66f   : > { %v4273_v28 = vadd.f32 %v4062_v1, %v3707_v62  ;;  %v4275_v0 = vadd.f32 %v4103_v49, %v3748_v44  ;;  %v3871_v1 = vadd.f32 %v8798_v32, %v8792_v48 }
 0x670   : > { %v4064_v53 = vpop.f32.mrf.mxu0  ;;  %v4105_v47 = vpop.f32.mrf.mxu1 }
 0x671   : > { %v4289_v63 = vadd.f32 %v8804_v30, %v4273_v28  ;;  %v4291_v36 = vadd.f32 %v8804_v30, %v4275_v0  ;;  %v4274_v29 = vadd.f32 %v4064_v53, %v3709_v41  ;;  %v4276_v33 = vadd.f32 %v4105_v47, %v3750_v26  ;;  %v6580_v41 = vld [vmem:[%s9604_s1 + $0xe8] sm:$0xff]  ;;  %v6579_v53 = vld [vmem:[%s9604_s1 + $0xe0] sm:$0xff] }
 0x672   : > { %v4066_v14 = vpop.f32.mrf.mxu0  ;;  %v4107_v17 = vpop.f32.mrf.mxu1 }
 0x673   : > { %vm4300_vm12 = vcmp.ge.f32.partialorder %v4289_v63, 0.0  ;;  %v4311_v7 = vmul.f32 0.02, %v4289_v63  ;;  %v4313_v24 = vmul.f32 0.02, %v4291_v36  ;;  %vm4302_vm13 = vcmp.ge.f32.partialorder %v4291_v36, 0.0 }
 0x674   : > { %v4290_v18 = vadd.f32 %v8804_v30, %v4274_v29  ;;  %v4292_v13 = vadd.f32 %v8804_v30, %v4276_v33  ;;  %v4067_v35 = vpop.f32.mrf.mxu0  ;;  %v4108_v16 = vpop.f32.mrf.mxu1 }
 0x675   : > { %v4322_v60 = vsel %vm4300_vm12, %v4289_v63, %v4311_v7  ;;  %v4324_v15 = vsel %vm4302_vm13, %v4291_v36, %v4313_v24  ;;  %v3873_v63 = vadd.f32 %v8802_v3, %v8796_v46 }
 0x676   : > { %vm4301_vm14 = vcmp.ge.f32.partialorder %v4290_v18, 0.0  ;;  %v4312_v52 = vmul.f32 0.02, %v4290_v18  ;;  %v4144_v23 = vpop.f32.mrf.mxu0  ;;  %v4185_v27 = vpop.f32.mrf.mxu1  ;;  %vm4303_vm15 = vcmp.ge.f32.partialorder %v4292_v13, 0.0  ;;  %v4314_v4 = vmul.f32 0.02, %v4292_v13 }
 0x677   : > { %v4277_v39 = vadd.f32 %v4144_v23, %v3789_v20  ;;  %v8826_v9 = vmul.f32 %v6575_v57, %v4322_v60  ;;  %v8831_v22 = vmul.f32 %v6577_v38, %v4324_v15  ;;  %v4279_v55 = vadd.f32 %v4185_v27, %v3830_v61  ;;  %v6583_v27 = vld [vmem:[%s9604_s1 + $0x100] sm:$0xff]  ;;  %v6584_v15 = vld [vmem:[%s9604_s1 + $0x108] sm:$0xff] }
 0x678   : > { %v4323_v11 = vsel %vm4301_vm14, %v4290_v18, %v4312_v52  ;;  %v4146_v34 = vpop.f32.mrf.mxu0  ;;  %v4187_v40 = vpop.f32.mrf.mxu1  ;;  %v4325_v6 = vsel %vm4303_vm15, %v4292_v13, %v4314_v4  ;;  %v3912_v18 = vadd.f32 %v8800_v8, %v8794_v59  ;;  %v6582_v8 = vld [vmem:[%s9604_s1 + $0xf8] sm:$0xff]  ;;  %v6581_v4 = vld [vmem:[%s9604_s1 + $0xf0] sm:$0xff] }
 0x679   : > { %v8828_v12 = vmul.f32 %v6576_v19, %v4323_v11  ;;  %v4293_v2 = vadd.f32 %v8804_v30, %v4277_v39  ;;  %v8833_v5 = vmul.f32 %v6578_v56, %v4325_v6  ;;  %v4278_v21 = vadd.f32 %v4146_v34, %v3791_v54 }
 0x67a   : > { %v4280_v43 = vadd.f32 %v4187_v40, %v3832_v50  ;;  %v4148_v58 = vpop.f32.mrf.mxu0  ;;  %v4189_v51 = vpop.f32.mrf.mxu1  ;;  %v4295_v32 = vadd.f32 %v8804_v30, %v4279_v55 }
 0x67b   : > { %v4315_v31 = vmul.f32 0.02, %v4293_v2  ;;  %vm4304_vm0 = vcmp.ge.f32.partialorder %v4293_v2, 0.0  ;;  %v4294_v37 = vadd.f32 %v8804_v30, %v4278_v21  ;;  %v7021_v45 = vpack.i.bf16 %v8833_v5, %v8831_v22  ;;  %v6585_v58 = vld [vmem:[%s9604_s1 + $0x110] sm:$0xff] }
 0x67c   : > { %v4190_v10 = vpop.f32.mrf.mxu1  ;;  %v4149_v62 = vpop.f32.mrf.mxu0  ;;  %v7016_v44 = vpack.i.bf16 %v8828_v12, %v8826_v9  ;;  %v4296_v49 = vadd.f32 %v8804_v30, %v4280_v43  ;;  %v7026_v33 = vpack.i.bf16 %v8831_v22, %v8828_v12  ;;  %vm4306_vm10 = vcmp.ge.f32.partialorder %v4295_v32, 0.0 }
 0x67d   : > { %vm4305_vm4 = vcmp.ge.f32.partialorder %v4294_v37, 0.0  ;;  %v4316_v26 = vmul.f32 0.02, %v4294_v37  ;;  %7022 = vrot.lane.b32.xlu0 %v7021_v45, %s7125_s25  ;;  %v4326_v48 = vsel %vm4304_vm0, %v4293_v2, %v4315_v31  ;;  %v4317_v16 = vmul.f32 0.02, %v4295_v32 }
 0x67e   : > { %7017 = vrot.lane.b32.xlu1 %v7016_v44, %s7125_s25  ;;  %v4226_v28 = vpop.f32.mrf.mxu0  ;;  %v4267_v0 = vpop.f32.mrf.mxu1  ;;  %v4318_v7 = vmul.f32 0.02, %v4296_v49  ;;  %v8862_v13 = vmul.f32 %v6579_v53, %v4326_v48  ;;  %vm4307_vm6 = vcmp.ge.f32.partialorder %v4296_v49, 0.0  ;;  %v7036_v11 = vpack.i.bf16 %v8826_v9, %v8833_v5 }
 0x67f   : > { %v4281_v47 = vadd.f32 %v4226_v28, %v3871_v1  ;;  %v4327_v36 = vsel %vm4305_vm4, %v4294_v37, %v4316_v26  ;;  %v4283_v57 = vadd.f32 %v4267_v0, %v3912_v18  ;;  %v4328_v39 = vsel %vm4306_vm10, %v4295_v32, %v4317_v16 }
 0x680   : > { %v4228_v29 = vpop.f32.mrf.mxu0  ;;  %v6769_v14 = vpop.f32.mrf.mxu1  ;;  %v8857_v17 = vmul.f32 %v6580_v41, %v4327_v36  ;;  %v4329_v23 = vsel %vm4307_vm6, %v4296_v49, %v4318_v7  ;;  %v8892_v6 = vmul.f32 %v6581_v4, %v4328_v39 }
 0x681   : > { %v4297_v24 = vadd.f32 %v8804_v30, %v4281_v47  ;;  %v4282_v35 = vadd.f32 %v4228_v29, %v3873_v63  ;;  %7027 = vrot.lane.b32.xlu0 %v7026_v33, %s7126_s26  ;;  %v8883_v61 = vmul.f32 %v6582_v8, %v4329_v23  ;;  %v4299_v54 = vadd.f32 %v8804_v30, %v4283_v57 }
 0x682   : > { %v4230_v46 = vpop.f32.mrf.mxu0  ;;  %v4270_v3 = vpop.f32.mrf.mxu1  ;;  %v7041_v19 = vpack.i.bf16 %v8857_v17, %v8862_v13 }
 0x683   : > { %vm4308_vm11 = vcmp.ge.f32.partialorder %v4297_v24, 0.0  ;;  %v4319_v20 = vmul.f32 0.02, %v4297_v24  ;;  %v4298_v60 = vadd.f32 %v8804_v30, %v4282_v35  ;;  %v4321_v21 = vmul.f32 0.02, %v4299_v54 }
 0x684   : > { %v4231_v52 = vpop.f32.mrf.mxu0  ;;  %v6770_v59 = vpop.f32.mrf.mxu1  ;;  %7032 = vrot.lane.b32.xlu1 %v7041_v19, %s7125_s25  ;;  %v7046_v43 = vpack.i.bf16 %v8883_v61, %v8892_v6  ;;  %vm4310_vm13 = vcmp.ge.f32.partialorder %v4299_v54, 0.0 }
 0x685   : > { %v4330_v38 = vsel %vm4308_vm11, %v4297_v24, %v4319_v20  ;;  %vm4309_vm12 = vcmp.ge.f32.partialorder %v4298_v60, 0.0  ;;  %v4320_v56 = vmul.f32 0.02, %v4298_v60  ;;  %7042 = vrot.lane.b32.xlu0 %v7041_v19, %s7126_s26  ;;  %v4332_v30 = vsel %vm4310_vm13, %v4299_v54, %v4321_v21 }
 0x686   : > { %v8888_v34 = vmul.f32 %v6583_v27, %v4330_v38  ;;  %v8906_v51 = vmul.f32 %v6585_v58, %v4332_v30 }
 0x687   : > { %v4331_v50 = vsel %vm4309_vm12, %v4298_v60, %v4320_v56 }
 0x688   : > { %v8890_v40 = vmul.f32 %v6584_v15, %v4331_v50  ;;  %7037 = vrot.lane.b32.xlu1 %v7036_v11, %s7126_s26 }
 0x68a   : > { %v7056_v2 = vpack.i.bf16 %v8890_v40, %v8888_v34 }
 0x68c   : > { %7057 = vrot.lane.b32.xlu0 %v7056_v2, %s7125_s25  ;;  %7047 = vrot.lane.b32.xlu1 %v7046_v43, %s7125_s25 }
 0x690   : > { %7062 = vrot.lane.b32.xlu0 %v7056_v2, %s7126_s26  ;;  %7052 = vrot.lane.b32.xlu1 %v7046_v43, %s7126_s26 }
 0x694   : > { %5036 = vrot.lane.b32.xlu0 %v8906_v51, %s7126_s26  ;;  %5041 = vrot.lane.b32.xlu1 %v8906_v51, %s7125_s25 }
 0x6ef   : > { %v7023_v31 = vpop.permute.xlu0 %7022 }
 0x6f0   : > { %v7018_v55 = vpop.permute.xlu1 %7017  ;;  %v7025_v37 = vunpack.i.h.bf16 %v7023_v31  ;;  %v7024_v10 = vunpack.i.l.bf16 %v7023_v31 }
 0x6f1   : > { %v7020_v45 = vunpack.i.h.bf16 %v7018_v55  ;;  %v7019_v62 = vunpack.i.l.bf16 %v7018_v55 }
 0x6f2   : > { %v4434_v53 = vsel %vm343_vm1, %v7024_v10, %v7025_v37 }
 0x6f3   : > { %v4433_v44 = vsel %vm343_vm1, %v7020_v45, %v7024_v10  ;;  %v4432_v1 = vsel %vm343_vm1, %v7019_v62, %v7020_v45  ;;  %v7028_v49 = vpop.permute.xlu0 %7027  ;;  %v8927_v63 = vpack.c.bf16 %v4434_v53, %v4434_v53 }
 0x6f4   : > { %v8914_v41 = vpack.c.bf16 %v4433_v44, %v4433_v44  ;;  %v8916_v26 = vpack.c.bf16 %v4432_v1, %v4432_v1  ;;  %v7030_v28 = vunpack.i.h.bf16 %v7028_v49  ;;  %v7029_v0 = vunpack.i.l.bf16 %v7028_v49 }
 0x6f6   : > { %4513 = vrot.lane.b32.xlu0 %v8914_v41, %s7127_s27  ;;  %4511 = vrot.lane.b32.xlu1 %v8916_v26, %s7127_s27  ;;  %v4394_v48 = vsel %vm295_vm2, %v7029_v0, %v7030_v28  ;;  %v7033_v32 = vpop.permute.xlu1 %7032 }
 0x6f7   : > { %v8925_v47 = vpack.c.bf16 %v4394_v48, %v8828_v12  ;;  %v7043_v36 = vpop.permute.xlu0 %7042  ;;  %v7034_v33 = vunpack.i.l.bf16 %v7033_v32  ;;  %v7035_v20 = vunpack.i.h.bf16 %v7033_v32 }
 0x6f8   : > { %v7044_v24 = vunpack.i.l.bf16 %v7043_v36  ;;  %v7045_v16 = vunpack.i.h.bf16 %v7043_v36 }
 0x6f9   : > { %v4435_v60 = vsel %vm343_vm1, %v7025_v37, %v7034_v33  ;;  %v4436_v8 = vsel %vm343_vm1, %v7034_v33, %v7035_v20  ;;  %v6622_v33 = vld [vmem:[%s9607_s4 + $0x18] sm:$0xff] }
 0x6fa   : > { %4493 = vrot.lane.b32.xlu0 %v8925_v47, %s7127_s27  ;;  %4515 = vrot.lane.b32.xlu1 %v8927_v63, %s7127_s27  ;;  %v7038_v29 = vpop.permute.xlu1 %7037  ;;  %v8947_v19 = vpack.c.bf16 %v4435_v60, %v4435_v60  ;;  %v8961_v15 = vpack.c.bf16 %v4436_v8, %v4436_v8  ;;  %v9076_v60 = vld [vmem:[%s9606_s3 + $0x1c] sm:$0xf] }
 0x6fb   : > { %v7040_v14 = vunpack.i.h.bf16 %v7038_v29  ;;  %v7039_v7 = vunpack.i.l.bf16 %v7038_v29 }
 0x6fd   : > { %v4393_v18 = vsel %vm295_vm2, %v7040_v14, %v7029_v0  ;;  %v4395_v35 = vsel %vm295_vm2, %v7030_v28, %v7039_v7  ;;  %v4396_v57 = vsel %vm295_vm2, %v7039_v7, %v7044_v24 }
 0x6fe   : > { %v7048_v12 = vpop.permute.xlu1 %7047  ;;  %v8936_v46 = vpack.c.bf16 %v4393_v18, %v8826_v9  ;;  %v8939_v3 = vpack.c.bf16 %v4395_v35, %v8831_v22  ;;  %v8950_v9 = vpack.c.bf16 %v4396_v57, %v8833_v5  ;;  %v4397_v22 = vsel %vm295_vm2, %v7044_v24, %v7045_v16  ;;  %v7058_v27 = vpop.permute.xlu0 %7057 }
 0x6ff   : > { %v7050_v52 = vunpack.i.h.bf16 %v7048_v12  ;;  %v7049_v59 = vunpack.i.l.bf16 %v7048_v12  ;;  %v8959_v38 = vpack.c.bf16 %v4397_v22, %v8862_v13  ;;  %v7060_v13 = vunpack.i.h.bf16 %v7058_v27 }
 0x700   : > { %4491 = vrot.lane.b32.xlu0 %v8936_v46, %s7127_s27  ;;  %4495 = vrot.lane.b32.xlu1 %v8939_v3, %s7127_s27  ;;  %v7059_v11 = vunpack.i.l.bf16 %v7058_v27 }
 0x701   : > { %v4438_v4 = vsel %vm343_vm1, %v7049_v59, %v7050_v52  ;;  %v4437_v39 = vsel %vm343_vm1, %v7035_v20, %v7049_v59  ;;  %v9014_v28 = vpack.c.bf16 %v7060_v13, %v7060_v13 }
 0x702   : > { %v7053_v23 = vpop.permute.xlu1 %7052  ;;  %v8969_v54 = vpack.c.bf16 %v4438_v4, %v4438_v4  ;;  %v8971_v50 = vpack.c.bf16 %v4437_v39, %v4437_v39  ;;  %v7063_v43 = vpop.permute.xlu0 %7062  ;;  %v4440_v37 = vsel %vm343_vm1, %v7059_v11, %v7060_v13  ;;  %v4439_v10 = vsel %vm343_vm1, %v7050_v52, %v7059_v11 }
 0x703   : > { %v7055_v5 = vunpack.i.h.bf16 %v7053_v23  ;;  %v7054_v56 = vunpack.i.l.bf16 %v7053_v23  ;;  %v7065_v31 = vunpack.i.h.bf16 %v7063_v43  ;;  %v7064_v55 = vunpack.i.l.bf16 %v7063_v43 }
 0x704   : > { %4517 = vrot.lane.b32.xlu0 %v8947_v19, %s7127_s27  ;;  %4497 = vrot.lane.b32.xlu1 %v8950_v9, %s7127_s27  ;;  %v8991_v45 = vpack.c.bf16 %v4440_v37, %v4440_v37  ;;  %v8993_v62 = vpack.c.bf16 %v4439_v10, %v4439_v10 }
 0x705   : > { %v4398_v2 = vsel %vm295_vm2, %v7045_v16, %v7054_v56  ;;  %v4399_v21 = vsel %vm295_vm2, %v7054_v56, %v7055_v5  ;;  %v9012_v49 = vpack.c.bf16 %v7065_v31, %v8890_v40 }
 0x706   : > { %v8980_v30 = vpack.c.bf16 %v4398_v2, %v8857_v17  ;;  %v8983_v58 = vpack.c.bf16 %v4399_v21, %v8892_v6  ;;  %v4401_v17 = vsel %vm295_vm2, %v7064_v55, %v7065_v31  ;;  %v4400_v6 = vsel %vm295_vm2, %v7055_v5, %v7064_v55  ;;  %v5037_v0 = vpop.permute.xlu0 %5036 }
 0x707   : > { %v9002_v44 = vpack.c.bf16 %v4401_v17, %v8888_v34  ;;  %v9005_v1 = vpack.c.bf16 %v4400_v6, %v8883_v61  ;;  %v5042_v61 = vpop.permute.xlu1 %5041  ;;  %v5038_v32 = vsel %vm295_vm2, %v7065_v31, %v5037_v0  ;;  %v5047_v29 = vpack.c.bf16 %v5037_v0, %v8906_v51 }
 0x708   : > { %4499 = vrot.lane.b32.xlu0 %v8959_v38, %s7127_s27  ;;  %4519 = vrot.lane.b32.xlu1 %v8961_v15, %s7127_s27  ;;  %v5043_v34 = vsel %vm343_vm1, %v7060_v13, %v5042_v61  ;;  %v5049_v48 = vpack.c.bf16 %v5042_v61, %v5042_v61  ;;  %v5046_v36 = vpack.c.bf16 %v5038_v32, %v8890_v40 }
 0x709   : > { %v5048_v53 = vpack.c.bf16 %v5043_v34, %v5043_v34 }
 0x70c   : > { %4523 = vrot.lane.b32.xlu0 %v8969_v54, %s7127_s27  ;;  %4521 = vrot.lane.b32.xlu1 %v8971_v50, %s7127_s27 }
 0x710   : > { %4503 = vrot.lane.b32.xlu0 %v8983_v58, %s7127_s27  ;;  %4501 = vrot.lane.b32.xlu1 %v8980_v30, %s7127_s27 }
 0x714   : > { %4527 = vrot.lane.b32.xlu0 %v8991_v45, %s7127_s27  ;;  %4525 = vrot.lane.b32.xlu1 %v8993_v62, %s7127_s27 }
 0x718   : > { %4507 = vrot.lane.b32.xlu0 %v9002_v44, %s7127_s27  ;;  %4505 = vrot.lane.b32.xlu1 %v9005_v1, %s7127_s27 }
 0x71c   : > { %4509 = vrot.lane.b32.xlu0 %v9012_v49, %s7127_s27  ;;  %4529 = vrot.lane.b32.xlu1 %v9014_v28, %s7127_s27 }
 0x720   : > { %5078 = vrot.lane.b32.xlu0 %v8914_v41, %s7129_s28  ;;  %5076 = vrot.lane.b32.xlu1 %v8916_v26, %s7129_s28 }
 0x724   : > { %5082 = vrot.lane.b32.xlu0 %v8947_v19, %s7129_s28  ;;  %5080 = vrot.lane.b32.xlu1 %v8927_v63, %s7129_s28 }
 0x728   : > { %5056 = vrot.lane.b32.xlu0 %v8925_v47, %s7129_s28  ;;  %5084 = vrot.lane.b32.xlu1 %v8961_v15, %s7129_s28 }
 0x72c   : > { %5054 = vrot.lane.b32.xlu0 %v8936_v46, %s7129_s28  ;;  %5058 = vrot.lane.b32.xlu1 %v8939_v3, %s7129_s28 }
 0x730   : > { %5062 = vrot.lane.b32.xlu0 %v8959_v38, %s7129_s28  ;;  %5060 = vrot.lane.b32.xlu1 %v8950_v9, %s7129_s28 }
 0x734   : > { %5088 = vrot.lane.b32.xlu0 %v8969_v54, %s7129_s28  ;;  %5086 = vrot.lane.b32.xlu1 %v8971_v50, %s7129_s28 }
 0x738   : > { %5066 = vrot.lane.b32.xlu0 %v8983_v58, %s7129_s28  ;;  %5090 = vrot.lane.b32.xlu1 %v8993_v62, %s7129_s28 }
 0x73c   : > { %5092 = vrot.lane.b32.xlu0 %v8991_v45, %s7129_s28  ;;  %5064 = vrot.lane.b32.xlu1 %v8980_v30, %s7129_s28 }
 0x740   : > { %5070 = vrot.lane.b32.xlu0 %v9002_v44, %s7129_s28  ;;  %5068 = vrot.lane.b32.xlu1 %v9005_v1, %s7129_s28 }
 0x744   : > { %5096 = vrot.lane.b32.xlu0 %v5049_v48, %s7129_s28  ;;  %5094 = vrot.lane.b32.xlu1 %v5048_v53, %s7129_s28 }
 0x748   : > { %5074 = vrot.lane.b32.xlu0 %v5047_v29, %s7129_s28  ;;  %5072 = vrot.lane.b32.xlu1 %v5046_v36, %s7129_s28 }
 0x74c   : > { %5378 = vperm.xlu1 %6904, %v6622_v33  }
 0x768   : > { %v4514_v14 = vpop.permute.xlu0 %4513  ;;  %v4512_v7 = vpop.permute.xlu1 %4511 }
 0x769   : > { %v4540_v24 = vsel %vm511_vm3, %v4512_v7, %v4514_v14  ;;  %v4801_v7 = vsel %vm2126_vm7, %v8916_v26, 0 }
 0x76a   : > { %v4563_v40 = vsel %vm2126_vm7, %v4540_v24, 0 }
 0x76c   : > { %v4516_v18 = vpop.permute.xlu1 %4515  ;;  %v4494_v51 = vpop.permute.xlu0 %4493 }
 0x76d   : > { %v4541_v35 = vsel %vm511_vm3, %v4514_v14, %v4516_v18 }
 0x76e   : > { %6633 = vmatprep.subr.msk.bf16.mxu0 %vm2126_vm7, %v4541_v35  ;;  %v6619_v35 = vld [vmem:[%s9606_s3 + $0x18] sm:$0xf] }
 0x76f   : > { %4605 = vmatpush1.bf16.msra.mxu0 %v4563_v40 }
 0x772   : > { %v4492_v12 = vpop.permute.xlu0 %4491  ;;  %v4496_v16 = vpop.permute.xlu1 %4495 }
 0x773   : > { %v4531_v20 = vsel %vm511_vm3, %v4492_v12, %v4494_v51  ;;  %v4532_v57 = vsel %vm511_vm3, %v4494_v51, %v4496_v16 }
 0x774   : > { %4606 = vmatprep.subr.bf16.mxu0 %v4532_v57 }
 0x775   : > { %4607 = vmatpush1.bf16.msra.mxu0 %v4531_v20 }
 0x776   : > { %v4518_v22 = vpop.permute.xlu0 %4517  ;;  %v4498_v52 = vpop.permute.xlu1 %4497 }
 0x777   : > { %v4542_v59 = vsel %vm511_vm3, %v4516_v18, %v4518_v22  ;;  %v4533_v2 = vsel %vm511_vm3, %v4496_v16, %v4498_v52 }
 0x778   : > { %6634 = vmatmul.mubr.msk.bf16.vlgmr.msra.gmra.mxu0 %vm2122_vm8, %v9076_v60  ;;  %v4569_v5 = vsel %vm2126_vm7, %v4542_v59, 0  ;;  %v6621_v59 = vld [vmem:[%s9606_s3 + $0x20] sm:$0xf] }
 0x779   : > { %4706 = vmatprep.mubr.bf16.mxu0 %v7128_v42 }
 0x77a   : > { %v4500_v8 = vpop.permute.xlu0 %4499  ;;  %v4520_v23 = vpop.permute.xlu1 %4519 }
 0x77b   : > { %v4543_v27 = vsel %vm511_vm3, %v4518_v22, %v4520_v23  ;;  %v4534_v56 = vsel %vm511_vm3, %v4498_v52, %v4500_v8 }
 0x77c   : > { %6635 = vmatprep.subr.msk.bf16.mxu1 %vm2126_vm7, %v4543_v27 }
 0x77d   : > { %4646 = vmatpush1.bf16.msra.mxu1 %v4569_v5 }
 0x77e   : > { %v4524_v4 = vpop.permute.xlu0 %4523  ;;  %4647 = vmatprep.subr.bf16.mxu1 %v4534_v56  ;;  %v4522_v39 = vpop.permute.xlu1 %4521 }
 0x77f   : > { %v4544_v13 = vsel %vm511_vm3, %v4520_v23, %v4522_v39  ;;  %v4545_v11 = vsel %vm511_vm3, %v4522_v39, %v4524_v4 }
 0x780   : > { %v4575_v21 = vsel %vm2126_vm7, %v4544_v13, 0  ;;  %6637 = vmatprep.subr.msk.bf16.mxu0 %vm2126_vm7, %v4545_v11 }
 0x781   : > { %4648 = vmatpush1.bf16.msra.mxu1 %v4533_v2  ;;  %4687 = vmatpush1.bf16.msra.mxu0 %v4575_v21 }
 0x782   : > { %v4504_v43 = vpop.permute.xlu0 %4503  ;;  %v4502_v31 = vpop.permute.xlu1 %4501 }
 0x783   : > { %v4535_v55 = vsel %vm511_vm3, %v4500_v8, %v4502_v31  ;;  %v4536_v37 = vsel %vm511_vm3, %v4502_v31, %v4504_v43 }
 0x784   : > { %6636 = vmatmul.mubr.msk.bf16.vlgmr.msra.gmra.mxu1 %vm2122_vm8, %v9076_v60  ;;  %4688 = vmatprep.subr.bf16.mxu0 %v4536_v37 }
 0x785   : > { %4689 = vmatpush1.bf16.msra.mxu0 %v4535_v55  ;;  %4747 = vmatprep.mubr.bf16.mxu1 %v7128_v42 }
 0x786   : > { %v4528_v10 = vpop.permute.xlu0 %4527  ;;  %v4526_v17 = vpop.permute.xlu1 %4525 }
 0x787   : > { %v4546_v6 = vsel %vm511_vm3, %v4524_v4, %v4526_v17  ;;  %v4547_v61 = vsel %vm511_vm3, %v4526_v17, %v4528_v10 }
 0x788   : > { %v4581_v34 = vsel %vm2126_vm7, %v4546_v6, 0  ;;  %6639 = vmatprep.subr.msk.bf16.mxu1 %vm2126_vm7, %v4547_v61  ;;  %6638 = vmatmul.mubr.msk.bf16.vlgmr.msra.gmra.mxu0 %vm2122_vm8, %v9076_v60 }
 0x789   : > { %4728 = vmatpush1.bf16.msra.mxu1 %v4581_v34  ;;  %4788 = vmatprep.mubr.bf16.mxu0 %v7128_v42 }
 0x78a   : > { %v4508_v0 = vpop.permute.xlu0 %4507  ;;  %v4506_v53 = vpop.permute.xlu1 %4505 }
 0x78b   : > { %v4537_v48 = vsel %vm511_vm3, %v4504_v43, %v4506_v53  ;;  %v4538_v32 = vsel %vm511_vm3, %v4506_v53, %v4508_v0 }
 0x78c   : > { %4729 = vmatprep.subr.bf16.mxu1 %v4538_v32 }
 0x78d   : > { %4730 = vmatpush1.bf16.msra.mxu1 %v4537_v48 }
 0x78e   : > { %v4510_v36 = vpop.permute.xlu0 %4509  ;;  %6643 = vmatprep.subr.msk.bf16.mxu1 %vm2126_vm7, %v8914_v41  ;;  %v4530_v29 = vpop.permute.xlu1 %4529 }
 0x78f   : > { %v4548_v33 = vsel %vm511_vm3, %v4528_v10, %v4530_v29  ;;  %6641 = vmatprep.subr.msk.bf16.mxu0 %vm2126_vm7, %v4530_v29  ;;  %v4539_v41 = vsel %vm511_vm3, %v4508_v0, %v4510_v36 }
 0x790   : > { %v4587_v14 = vsel %vm2126_vm7, %v4548_v33, 0  ;;  %6640 = vmatmul.mubr.msk.bf16.vlgmr.msra.gmra.mxu1 %vm2122_vm8, %v9076_v60 }
 0x791   : > { %4769 = vmatpush1.bf16.msra.mxu0 %v4587_v14  ;;  %4843 = vmatpush1.bf16.msra.mxu1 %v4801_v7 }
 0x792   : > { %v5079_v24 = vpop.permute.xlu0 %5078  ;;  %4770 = vmatprep.subr.bf16.mxu0 %v4510_v36  ;;  %v5077_v18 = vpop.permute.xlu1 %5076  ;;  %4844 = vmatprep.subr.bf16.mxu1 %v8925_v47  ;;  %v4807_v47 = vsel %vm2126_vm7, %v8927_v63, 0 }
 0x793   : > { %4862 = vmatprep.mubr.bf16.mxu1 %v7128_v42 }
 0x795   : > { %4771 = vmatpush1.bf16.msra.mxu0 %v4539_v41  ;;  %4845 = vmatpush1.bf16.msra.mxu1 %v8936_v46  ;;  %v4813_v46 = vsel %vm2126_vm7, %v8961_v15, 0 }
 0x796   : > { %v5083_v40 = vpop.permute.xlu0 %5082  ;;  %6645 = vmatprep.subr.msk.bf16.mxu0 %vm2126_vm7, %v8947_v19  ;;  %v5081_v26 = vpop.permute.xlu1 %5080  ;;  %6647 = vmatprep.subr.msk.bf16.mxu1 %vm2126_vm7, %v8971_v50 }
 0x798   : > { %6642 = vmatmul.mubr.msk.bf16.vlgmr.msra.gmra.mxu0 %vm2122_vm8, %v9076_v60  ;;  %6644 = vmatmul.mubr.msk.bf16.vlgmr.msra.gmra.mxu1 %vm2122_vm8, %v6619_v35 }
 0x799   : > { %4884 = vmatpush1.bf16.msra.mxu0 %v4807_v47  ;;  %4925 = vmatpush1.bf16.msra.mxu1 %v4813_v46 }
 0x79a   : > { %v5057_v51 = vpop.permute.xlu0 %5056  ;;  %4885 = vmatprep.subr.bf16.mxu0 %v8950_v9  ;;  %v5085_v19 = vpop.permute.xlu1 %5084  ;;  %4926 = vmatprep.subr.bf16.mxu1 %v8980_v30  ;;  %v4819_v9 = vsel %vm2126_vm7, %v8969_v54, 0  ;;  %v5108_v30 = vsel %vm1105_vm5, %v5077_v18, %v5079_v24  ;;  %v5110_v54 = vsel %vm1105_vm5, %v5081_v26, %v5083_v40 }
 0x79b   : > { %4903 = vmatprep.mubr.bf16.mxu0 %v7128_v42  ;;  %4944 = vmatprep.mubr.bf16.mxu1 %v7128_v42  ;;  %v5138_v12 = vsel %vm2126_vm7, %v5110_v54, 0 }
 0x79d   : > { %4886 = vmatpush1.bf16.msra.mxu0 %v8939_v3  ;;  %4927 = vmatpush1.bf16.msra.mxu1 %v8959_v38  ;;  %v4825_v3 = vsel %vm2126_vm7, %v8991_v45, 0  ;;  %v5111_v45 = vsel %vm1105_vm5, %v5083_v40, %v5085_v19 }
 0x79e   : > { %v5055_v63 = vpop.permute.xlu0 %5054  ;;  %6649 = vmatprep.subr.msk.bf16.mxu0 %vm2126_vm7, %v8993_v62  ;;  %v5059_v15 = vpop.permute.xlu1 %5058  ;;  %6651 = vmatprep.subr.msk.bf16.mxu1 %vm2126_vm7, %v9014_v28  ;;  %v5109_v62 = vsel %vm1105_vm5, %v5079_v24, %v5081_v26  ;;  %v5132_v28 = vsel %vm2126_vm7, %v5108_v30, 0 }
 0x79f   : > { %v5098_v57 = vsel %vm1105_vm5, %v5055_v63, %v5057_v51 }
 0x7a0   : > { %6646 = vmatmul.mubr.msk.bf16.vlgmr.msra.gmra.mxu0 %vm2122_vm8, %v6619_v35  ;;  %6648 = vmatmul.mubr.msk.bf16.vlgmr.msra.gmra.mxu1 %vm2122_vm8, %v6619_v35 }
 0x7a1   : > { %4966 = vmatpush1.bf16.msra.mxu0 %v4819_v9  ;;  %5007 = vmatpush1.bf16.msra.mxu1 %v4825_v3 }
 0x7a2   : > { %v5063_v38 = vpop.permute.xlu0 %5062  ;;  %4967 = vmatprep.subr.bf16.mxu0 %v9005_v1  ;;  %v5061_v50 = vpop.permute.xlu1 %5060  ;;  %5008 = vmatprep.subr.bf16.mxu1 %v9012_v49 }
 0x7a3   : > { %4985 = vmatprep.mubr.bf16.mxu0 %v7128_v42  ;;  %5026 = vmatprep.mubr.bf16.mxu1 %v7128_v42  ;;  %v5100_v60 = vsel %vm1105_vm5, %v5059_v15, %v5061_v50 }
 0x7a5   : > { %4968 = vmatpush1.bf16.msra.mxu0 %v8983_v58  ;;  %5009 = vmatpush1.bf16.msra.mxu1 %v9002_v44  ;;  %v5099_v58 = vsel %vm1105_vm5, %v5057_v51, %v5059_v15  ;;  %v5101_v44 = vsel %vm1105_vm5, %v5061_v50, %v5063_v38 }
 0x7a6   : > { %v5089_v1 = vpop.permute.xlu0 %5088  ;;  %6653 = vmatprep.subr.msk.bf16.mxu0 %vm2126_vm7, %v5109_v62  ;;  %v5087_v49 = vpop.permute.xlu1 %5086  ;;  %6655 = vmatprep.subr.msk.bf16.mxu1 %vm2126_vm7, %v5111_v45 }
 0x7a7   : > { %v5112_v22 = vsel %vm1105_vm5, %v5085_v19, %v5087_v49  ;;  %v5113_v52 = vsel %vm1105_vm5, %v5087_v49, %v5089_v1 }
 0x7a8   : > { %6650 = vmatmul.mubr.msk.bf16.vlgmr.msra.gmra.mxu0 %vm2122_vm8, %v6619_v35  ;;  %6652 = vmatmul.mubr.msk.bf16.vlgmr.msra.gmra.mxu1 %vm2122_vm8, %v6619_v35  ;;  %v5144_v56 = vsel %vm2126_vm7, %v5112_v22, 0 }
 0x7a9   : > { %5174 = vmatpush1.bf16.msra.mxu0 %v5132_v28  ;;  %5215 = vmatpush1.bf16.msra.mxu1 %v5138_v12 }
 0x7aa   : > { %v5067_v16 = vpop.permute.xlu0 %5066  ;;  %5175 = vmatprep.subr.bf16.mxu0 %v5099_v58  ;;  %v5091_v20 = vpop.permute.xlu1 %5090  ;;  %5216 = vmatprep.subr.bf16.mxu1 %v5101_v44 }
 0x7ab   : > { %5193 = vmatprep.mubr.bf16.mxu0 %v7128_v42  ;;  %5234 = vmatprep.mubr.bf16.mxu1 %v7128_v42  ;;  %v5114_v8 = vsel %vm1105_vm5, %v5089_v1, %v5091_v20 }
 0x7ac   : > { %v5150_v4 = vsel %vm2126_vm7, %v5114_v8, 0 }
 0x7ad   : > { %5176 = vmatpush1.bf16.msra.mxu0 %v5098_v57  ;;  %5217 = vmatpush1.bf16.msra.mxu1 %v5100_v60 }
 0x7ae   : > { %v5093_v23 = vpop.permute.xlu0 %5092  ;;  %6657 = vmatprep.subr.msk.bf16.mxu0 %vm2126_vm7, %v5113_v52  ;;  %v5065_v27 = vpop.permute.xlu1 %5064 }
 0x7af   : > { %v5115_v5 = vsel %vm1105_vm5, %v5091_v20, %v5093_v23  ;;  %v5103_v39 = vsel %vm1105_vm5, %v5065_v27, %v5067_v16  ;;  %v5102_v43 = vsel %vm1105_vm5, %v5063_v38, %v5065_v27 }
 0x7b0   : > { %6654 = vmatmul.mubr.msk.bf16.vlgmr.msra.gmra.mxu0 %vm2122_vm8, %v6621_v59  ;;  %6656 = vmatmul.mubr.msk.bf16.vlgmr.msra.gmra.mxu1 %vm2122_vm8, %v6621_v59 }
 0x7b1   : > { %6659 = vmatprep.subr.msk.bf16.mxu1 %vm2126_vm7, %v5115_v5  ;;  %5256 = vmatpush1.bf16.msra.mxu0 %v5144_v56 }
 0x7b2   : > { %5297 = vmatpush1.bf16.msra.mxu1 %v5150_v4  ;;  %v5071_v13 = vpop.permute.xlu0 %5070  ;;  %5257 = vmatprep.subr.bf16.mxu0 %v5103_v39  ;;  %v5069_v11 = vpop.permute.xlu1 %5068 }
 0x7b3   : > { %v5104_v2 = vsel %vm1105_vm5, %v5067_v16, %v5069_v11  ;;  %v5105_v21 = vsel %vm1105_vm5, %v5069_v11, %v5071_v13  ;;  %5275 = vmatprep.mubr.bf16.mxu0 %v7128_v42  ;;  %5316 = vmatprep.mubr.bf16.mxu1 %v7128_v42 }
 0x7b4   : > { %5298 = vmatprep.subr.bf16.mxu1 %v5105_v21 }
 0x7b5   : > { %5258 = vmatpush1.bf16.msra.mxu0 %v5102_v43 }
 0x7b6   : > { %5299 = vmatpush1.bf16.msra.mxu1 %v5104_v2  ;;  %v5097_v31 = vpop.permute.xlu0 %5096  ;;  %v5095_v55 = vpop.permute.xlu1 %5094 }
 0x7b7   : > { %v5116_v37 = vsel %vm1105_vm5, %v5093_v23, %v5095_v55  ;;  %v5117_v10 = vsel %vm1105_vm5, %v5095_v55, %v5097_v31 }
 0x7b8   : > { %v5156_v17 = vsel %vm2126_vm7, %v5116_v37, 0  ;;  %6658 = vmatmul.mubr.msk.bf16.vlgmr.msra.gmra.mxu0 %vm2122_vm8, %v6621_v59  ;;  %6661 = vmatprep.subr.msk.bf16.mxu0 %vm2126_vm7, %v5117_v10 }
 0x7b9   : > { %6660 = vmatmul.mubr.msk.bf16.vlgmr.msra.gmra.mxu1 %vm2122_vm8, %v6621_v59  ;;  %5338 = vmatpush1.bf16.msra.mxu0 %v5156_v17 }
 0x7ba   : > { %v5075_v6 = vpop.permute.xlu0 %5074  ;;  %v5073_v61 = vpop.permute.xlu1 %5072  ;;  %5357 = vmatprep.mubr.bf16.mxu0 %v7128_v42  ;;  %5696 = vmatprep.mubr.bf16.mxu1 %v7128_v42 }
 0x7bb   : > { %v5106_v34 = vsel %vm1105_vm5, %v5071_v13, %v5073_v61  ;;  %v5107_v0 = vsel %vm1105_vm5, %v5073_v61, %v5075_v6 }
 0x7bc   : > { %5339 = vmatprep.subr.bf16.mxu0 %v5107_v0 }
 0x7bd   : > { %5340 = vmatpush1.bf16.msra.mxu0 %v5106_v34 }
 0x7c0   : > { %6662 = vmatmul.mubr.msk.bf16.vlgmr.msra.gmra.mxu0 %vm2122_vm8, %v6621_v59 }
 0x7c1   : > { %5737 = vmatprep.mubr.bf16.mxu0 %v7128_v42 }
 0x7c7   : > { %v9211_v5 = vpop.permute.xlu1 %5378 }
 0x838   : > { %v4626_v53 = vpop.f32.mrf.mxu0 }
 0x83a   : > { %v4628_v48 = vpop.f32.mrf.mxu0 }
 0x83c   : > { %v4630_v32 = vpop.f32.mrf.mxu0 }
 0x83d   : > { %v6623_v32 = vld [vmem:[%s9604_s1 + $0x120] sm:$0xff] }
 0x83e   : > { %v4631_v36 = vpop.f32.mrf.mxu0 }
 0x844   : > { %v4667_v29 = vpop.f32.mrf.mxu1 }
 0x846   : > { %v4669_v33 = vpop.f32.mrf.mxu1 }
 0x848   : > { %v4671_v14 = vpop.f32.mrf.mxu1  ;;  %v4708_v7 = vpop.f32.mrf.mxu0 }
 0x849   : > { %v6624_v14 = vld [vmem:[%s9604_s1 + $0x128] sm:$0xff] }
 0x84a   : > { %v4672_v24 = vpop.f32.mrf.mxu1  ;;  %v4710_v18 = vpop.f32.mrf.mxu0 }
 0x84c   : > { %v4712_v41 = vpop.f32.mrf.mxu0 }
 0x84e   : > { %v4713_v35 = vpop.f32.mrf.mxu0 }
 0x84f   : > { %v6625_v35 = vld [vmem:[%s9604_s1 + $0x130] sm:$0xff] }
 0x850   : > { %v4749_v40 = vpop.f32.mrf.mxu1 }
 0x852   : > { %v9201_v26 = vpop.f32.mrf.mxu1 }
 0x854   : > { %v4753_v47 = vpop.f32.mrf.mxu1 }
 0x856   : > { %v4754_v46 = vpop.f32.mrf.mxu1 }
 0x858   : > { %v9203_v51 = vpop.f32.mrf.mxu0  ;;  %v4864_v19 = vpop.f32.mrf.mxu1 }
 0x859   : > { %v4865_v59 = vadd.f32 %v4864_v19, %v4626_v53 }
 0x85a   : > { %v9205_v63 = vpop.f32.mrf.mxu0  ;;  %v4866_v15 = vpop.f32.mrf.mxu1 }
 0x85b   : > { %v4867_v56 = vadd.f32 %v4866_v15, %v4628_v48 }
 0x85c   : > { %v4794_v9 = vpop.f32.mrf.mxu0  ;;  %v4868_v3 = vpop.f32.mrf.mxu1 }
 0x85e   : > { %v4795_v38 = vpop.f32.mrf.mxu0  ;;  %v4869_v50 = vpop.f32.mrf.mxu1 }
 0x860   : > { %v4905_v30 = vpop.f32.mrf.mxu0  ;;  %v4946_v62 = vpop.f32.mrf.mxu1 }
 0x861   : > { %v4906_v8 = vadd.f32 %v4905_v30, %v4667_v29  ;;  %v4947_v48 = vadd.f32 %v4946_v62, %v4708_v7  ;;  %v6626_v7 = vld [vmem:[%s9604_s1 + $0x138] sm:$0xff] }
 0x862   : > { %v4907_v54 = vpop.f32.mrf.mxu0  ;;  %v4948_v45 = vpop.f32.mrf.mxu1 }
 0x863   : > { %v4908_v4 = vadd.f32 %v4907_v54, %v4669_v33  ;;  %v4949_v29 = vadd.f32 %v4948_v45, %v4710_v18 }
 0x864   : > { %v4909_v1 = vpop.f32.mrf.mxu0  ;;  %v4950_v49 = vpop.f32.mrf.mxu1 }
 0x866   : > { %v4910_v28 = vpop.f32.mrf.mxu0  ;;  %v4951_v12 = vpop.f32.mrf.mxu1 }
 0x868   : > { %v4987_v58 = vpop.f32.mrf.mxu0  ;;  %v9207_v44 = vpop.f32.mrf.mxu1 }
 0x869   : > { %v4988_v33 = vadd.f32 %v4987_v58, %v4749_v40 }
 0x86a   : > { %v4989_v16 = vpop.f32.mrf.mxu0  ;;  %v9209_v20 = vpop.f32.mrf.mxu1 }
 0x86b   : > { %v4990_v19 = vadd.f32 %v4989_v16, %v9201_v26 }
 0x86c   : > { %v4991_v57 = vpop.f32.mrf.mxu0  ;;  %v5032_v60 = vpop.f32.mrf.mxu1 }
 0x86e   : > { %v4992_v22 = vpop.f32.mrf.mxu0  ;;  %v5033_v52 = vpop.f32.mrf.mxu1 }
 0x870   : > { %v5195_v23 = vpop.f32.mrf.mxu0  ;;  %v5236_v27 = vpop.f32.mrf.mxu1 }
 0x871   : > { %v5366_v39 = vadd.f32 %v5195_v23, %v4865_v59  ;;  %v5368_v13 = vadd.f32 %v5236_v27, %v4906_v8  ;;  %v5029_v23 = vadd.f32 %v9207_v44, %v9203_v51  ;;  %v6627_v27 = vld [vmem:[%s9604_s1 + $0x140] sm:$0xff]  ;;  %v6630_v51 = vld [vmem:[%s9604_s1 + $0x158] sm:$0xff] }
 0x872   : > { %v5197_v11 = vpop.f32.mrf.mxu0  ;;  %v5238_v2 = vpop.f32.mrf.mxu1 }
 0x873   : > { %v5381_v21 = vadd.f32 %v9211_v5, %v5366_v39  ;;  %v5383_v43 = vadd.f32 %v9211_v5, %v5368_v13  ;;  %v5367_v31 = vadd.f32 %v5197_v11, %v4867_v56  ;;  %v5369_v55 = vadd.f32 %v5238_v2, %v4908_v4  ;;  %v6628_v4 = vld [vmem:[%s9604_s1 + $0x148] sm:$0xff]  ;;  %v6629_v11 = vld [vmem:[%s9604_s1 + $0x150] sm:$0xff] }
 0x874   : > { %v5199_v37 = vpop.f32.mrf.mxu0  ;;  %v5240_v10 = vpop.f32.mrf.mxu1 }
 0x875   : > { %vm5391_vm14 = vcmp.ge.f32.partialorder %v5381_v21, 0.0  ;;  %v5401_v17 = vmul.f32 0.02, %v5381_v21  ;;  %v5403_v6 = vmul.f32 0.02, %v5383_v43  ;;  %vm5393_vm15 = vcmp.ge.f32.partialorder %v5383_v43, 0.0 }
 0x876   : > { %v5382_v61 = vadd.f32 %v9211_v5, %v5367_v31  ;;  %v5384_v34 = vadd.f32 %v9211_v5, %v5369_v55  ;;  %v5200_v0 = vpop.f32.mrf.mxu0  ;;  %v5241_v53 = vpop.f32.mrf.mxu1 }
 0x877   : > { %v5411_v36 = vsel %vm5391_vm14, %v5381_v21, %v5401_v17  ;;  %v5413_v47 = vsel %vm5393_vm15, %v5383_v43, %v5403_v6  ;;  %v5031_v43 = vadd.f32 %v9209_v20, %v9205_v63 }
 0x878   : > { %vm5392_vm0 = vcmp.ge.f32.partialorder %v5382_v61, 0.0  ;;  %v5402_v24 = vmul.f32 0.02, %v5382_v61  ;;  %v5277_v41 = vpop.f32.mrf.mxu0  ;;  %vm5394_vm4 = vcmp.ge.f32.partialorder %v5384_v34, 0.0  ;;  %v5404_v46 = vmul.f32 0.02, %v5384_v34 }
 0x879   : > { %v5370_v18 = vadd.f32 %v5277_v41, %v4947_v48  ;;  %v5318_v40 = vpop.f32.mrf.mxu1  ;;  %v9230_v15 = vmul.f32 %v6623_v32, %v5411_v36  ;;  %v9235_v1 = vmul.f32 %v6625_v35, %v5413_v47  ;;  %v6632_v35 = vld [vmem:[%s9604_s1 + $0x168] sm:$0xff] }
 0x87a   : > { %v5412_v9 = vsel %vm5392_vm0, %v5382_v61, %v5402_v24  ;;  %v5372_v3 = vadd.f32 %v5318_v40, %v4988_v33  ;;  %v5279_v38 = vpop.f32.mrf.mxu0  ;;  %v5414_v30 = vsel %vm5394_vm4, %v5384_v34, %v5404_v46  ;;  %v6631_v24 = vld [vmem:[%s9604_s1 + $0x160] sm:$0xff] }
 0x87b   : > { %v9232_v50 = vmul.f32 %v6624_v14, %v5412_v9  ;;  %v5385_v62 = vadd.f32 %v9211_v5, %v5370_v18  ;;  %v5371_v54 = vadd.f32 %v5279_v38, %v4949_v29  ;;  %v5320_v45 = vpop.f32.mrf.mxu1  ;;  %v9237_v49 = vmul.f32 %v6626_v7, %v5414_v30 }
 0x87c   : > { %v5387_v28 = vadd.f32 %v9211_v5, %v5372_v3  ;;  %v5373_v12 = vadd.f32 %v5320_v45, %v4990_v19  ;;  %v5281_v26 = vpop.f32.mrf.mxu0 }
 0x87d   : > { %vm5395_vm6 = vcmp.ge.f32.partialorder %v5385_v62, 0.0  ;;  %v5405_v58 = vmul.f32 0.02, %v5385_v62  ;;  %v5386_v16 = vadd.f32 %v9211_v5, %v5371_v54  ;;  %v7066_v57 = vpack.i.bf16 %v9232_v50, %v9230_v15  ;;  %v5322_v60 = vpop.f32.mrf.mxu1 }
 0x87e   : > { %vm5397_vm10 = vcmp.ge.f32.partialorder %v5387_v28, 0.0  ;;  %v5407_v22 = vmul.f32 0.02, %v5387_v28  ;;  %v5388_v52 = vadd.f32 %v9211_v5, %v5373_v12  ;;  %v5282_v59 = vpop.f32.mrf.mxu0  ;;  %v7076_v8 = vpack.i.bf16 %v9237_v49, %v9235_v1 }
 0x87f   : > { %v5415_v56 = vsel %vm5395_vm6, %v5385_v62, %v5405_v58  ;;  %vm5396_vm11 = vcmp.ge.f32.partialorder %v5386_v16, 0.0  ;;  %v5406_v39 = vmul.f32 0.02, %v5386_v16  ;;  %7067 = vrot.lane.b32.xlu0 %v7066_v57, %s7125_s25  ;;  %v5323_v13 = vpop.f32.mrf.mxu1  ;;  %v7071_v37 = vpack.i.bf16 %v9235_v1, %v9232_v50 }
 0x880   : > { %v5417_v2 = vsel %vm5397_vm10, %v5387_v28, %v5407_v22  ;;  %vm5398_vm12 = vcmp.ge.f32.partialorder %v5388_v52, 0.0  ;;  %v5408_v44 = vmul.f32 0.02, %v5388_v52  ;;  %7077 = vrot.lane.b32.xlu1 %v7076_v8, %s7125_s25  ;;  %v5359_v21 = vpop.f32.mrf.mxu0  ;;  %v9266_v10 = vmul.f32 %v6627_v27, %v5415_v56 }
 0x881   : > { %v5416_v31 = vsel %vm5396_vm11, %v5386_v16, %v5406_v39  ;;  %v5374_v55 = vadd.f32 %v5359_v21, %v5029_v23  ;;  %v7081_v34 = vpack.i.bf16 %v9230_v15, %v9237_v49  ;;  %v9272_v0 = vmul.f32 %v6629_v11, %v5417_v2 }
 0x882   : > { %v9268_v17 = vmul.f32 %v6628_v4, %v5416_v31  ;;  %v5418_v6 = vsel %vm5398_vm12, %v5388_v52, %v5408_v44  ;;  %v5361_v61 = vpop.f32.mrf.mxu0 }
 0x883   : > { %v9274_v53 = vmul.f32 %v6630_v51, %v5418_v6  ;;  %v5389_v63 = vadd.f32 %v9211_v5, %v5374_v55  ;;  %v5375_v20 = vadd.f32 %v5361_v61, %v5031_v43  ;;  %7072 = vrot.lane.b32.xlu0 %v7071_v37, %s7126_s26 }
 0x884   : > { %7082 = vrot.lane.b32.xlu1 %v7081_v34, %s7126_s26  ;;  %v7086_v48 = vpack.i.bf16 %v9268_v17, %v9266_v10  ;;  %v5363_v32 = vpop.f32.mrf.mxu0 }
 0x885   : > { %vm5399_vm13 = vcmp.ge.f32.partialorder %v5389_v63, 0.0  ;;  %v5409_v36 = vmul.f32 0.02, %v5389_v63  ;;  %v5390_v29 = vadd.f32 %v9211_v5, %v5375_v20  ;;  %v7096_v33 = vpack.i.bf16 %v9274_v53, %v9272_v0 }
 0x886   : > { %v5364_v14 = vpop.f32.mrf.mxu0 }
 0x887   : > { %v5419_v41 = vsel %vm5399_vm13, %v5389_v63, %v5409_v36  ;;  %vm5400_vm14 = vcmp.ge.f32.partialorder %v5390_v29, 0.0  ;;  %v5410_v47 = vmul.f32 0.02, %v5390_v29  ;;  %7087 = vrot.lane.b32.xlu0 %v7086_v48, %s7125_s25 }
 0x888   : > { %7097 = vrot.lane.b32.xlu1 %v7096_v33, %s7125_s25  ;;  %v9292_v7 = vmul.f32 %v6631_v24, %v5419_v41 }
 0x889   : > { %v5420_v5 = vsel %vm5400_vm14, %v5390_v29, %v5410_v47 }
 0x88a   : > { %v9294_v46 = vmul.f32 %v6632_v35, %v5420_v5 }
 0x88b   : > { %7092 = vrot.lane.b32.xlu0 %v7086_v48, %s7126_s26 }
 0x88c   : > { %7102 = vrot.lane.b32.xlu1 %v7096_v33, %s7126_s26  ;;  %v7111_v18 = vpack.i.bf16 %v9294_v46, %v9292_v7 }
 0x88f   : > { %7107 = vrot.lane.b32.xlu0 %v7111_v18, %s7125_s25 }
 0x890   : > { %7112 = vrot.lane.b32.xlu1 %v7111_v18, %s7126_s26 }
 0x8f1   : > { %v7068_v40 = vpop.permute.xlu0 %7067 }
 0x8f2   : > { %v7078_v19 = vpop.permute.xlu1 %7077  ;;  %v7070_v9 = vunpack.i.h.bf16 %v7068_v40  ;;  %v7069_v3 = vunpack.i.l.bf16 %v7068_v40 }
 0x8f3   : > { %v7080_v38 = vunpack.i.h.bf16 %v7078_v19  ;;  %v7079_v30 = vunpack.i.l.bf16 %v7078_v19 }
 0x8f4   : > { %v5507_v62 = vsel %vm343_vm1, %v7069_v3, %v7070_v9 }
 0x8f5   : > { %v9303_v54 = vpack.c.bf16 %v5507_v62, %v5507_v62  ;;  %v7073_v45 = vpop.permute.xlu0 %7072  ;;  %v5509_v28 = vsel %vm343_vm1, %v7079_v30, %v7080_v38  ;;  %v5508_v27 = vsel %vm343_vm1, %v7070_v9, %v7079_v30 }
 0x8f6   : > { %v7083_v12 = vpop.permute.xlu1 %7082  ;;  %v7075_v26 = vunpack.i.h.bf16 %v7073_v45  ;;  %v7074_v58 = vunpack.i.l.bf16 %v7073_v45  ;;  %v9308_v60 = vpack.c.bf16 %v5509_v28, %v5509_v28  ;;  %v9323_v13 = vpack.c.bf16 %v5508_v27, %v5508_v27 }
 0x8f7   : > { %v7085_v16 = vunpack.i.h.bf16 %v7083_v12  ;;  %v7084_v57 = vunpack.i.l.bf16 %v7083_v12  ;;  %5587 = vrot.lane.b32.xlu0 %v9303_v54, %s7127_s27 }
 0x8f8   : > { %v5470_v2 = vsel %vm295_vm2, %v7074_v58, %v7075_v26 }
 0x8f9   : > { %v5469_v22 = vsel %vm295_vm2, %v7085_v16, %v7074_v58  ;;  %v7088_v52 = vpop.permute.xlu0 %7087  ;;  %v5471_v59 = vsel %vm295_vm2, %v7075_v26, %v7084_v57 }
 0x8fa   : > { %v9313_v8 = vpack.c.bf16 %v5469_v22, %v9230_v15  ;;  %v7089_v23 = vunpack.i.l.bf16 %v7088_v52  ;;  %v9321_v56 = vpack.c.bf16 %v5471_v59, %v9235_v1  ;;  %v7098_v4 = vpop.permute.xlu1 %7097  ;;  %v7090_v51 = vunpack.i.h.bf16 %v7088_v52 }
 0x8fb   : > { %5591 = vrot.lane.b32.xlu0 %v9308_v60, %s7127_s27  ;;  %v9334_v1 = vpack.c.bf16 %v5470_v2, %v9232_v50  ;;  %v7099_v21 = vunpack.i.l.bf16 %v7098_v4  ;;  %v7100_v63 = vunpack.i.h.bf16 %v7098_v4 }
 0x8fc   : > { %5567 = vrot.lane.b32.xlu1 %v9313_v8, %s7127_s27  ;;  %v5510_v11 = vsel %vm343_vm1, %v7080_v38, %v7089_v23  ;;  %v5511_v31 = vsel %vm343_vm1, %v7089_v23, %v7090_v51 }
 0x8fd   : > { %v7093_v39 = vpop.permute.xlu0 %7092  ;;  %v9331_v44 = vpack.c.bf16 %v5510_v11, %v5510_v11  ;;  %v5512_v61 = vsel %vm343_vm1, %v7090_v51, %v7099_v21  ;;  %v9346_v50 = vpack.c.bf16 %v5511_v31, %v5511_v31  ;;  %v5513_v29 = vsel %vm343_vm1, %v7099_v21, %v7100_v63  ;;  %v6664_v11 = vld [vmem:[%s9606_s3 + $0x28] sm:$0xf] }
 0x8fe   : > { %v7094_v15 = vunpack.i.l.bf16 %v7093_v39  ;;  %v7103_v55 = vpop.permute.xlu1 %7102  ;;  %v7095_v37 = vunpack.i.h.bf16 %v7093_v39  ;;  %v9353_v48 = vpack.c.bf16 %v5512_v61, %v5512_v61  ;;  %v9367_v41 = vpack.c.bf16 %v5513_v29, %v5513_v29 }
 0x8ff   : > { %5571 = vrot.lane.b32.xlu0 %v9321_v56, %s7127_s27  ;;  %v7104_v34 = vunpack.i.l.bf16 %v7103_v55  ;;  %v7105_v33 = vunpack.i.h.bf16 %v7103_v55 }
 0x900   : > { %5589 = vrot.lane.b32.xlu1 %v9323_v13, %s7127_s27  ;;  %v5472_v43 = vsel %vm295_vm2, %v7084_v57, %v7094_v15  ;;  %v5473_v20 = vsel %vm295_vm2, %v7094_v15, %v7095_v37 }
 0x901   : > { %v9343_v6 = vpack.c.bf16 %v5472_v43, %v9237_v49  ;;  %v5474_v32 = vsel %vm295_vm2, %v7095_v37, %v7104_v34  ;;  %v9357_v49 = vpack.c.bf16 %v5473_v20, %v9266_v10  ;;  %v7108_v36 = vpop.permute.xlu0 %7107  ;;  %v5475_v10 = vsel %vm295_vm2, %v7104_v34, %v7105_v33 }
 0x902   : > { %v9365_v14 = vpack.c.bf16 %v5474_v32, %v9268_v17  ;;  %v7110_v24 = vunpack.i.h.bf16 %v7108_v36  ;;  %v7109_v35 = vunpack.i.l.bf16 %v7108_v36  ;;  %v7113_v47 = vpop.permute.xlu1 %7112  ;;  %v9375_v18 = vpack.c.bf16 %v5475_v10, %v9272_v0 }
 0x903   : > { %5593 = vrot.lane.b32.xlu0 %v9331_v44, %s7127_s27  ;;  %v7115_v40 = vunpack.i.h.bf16 %v7113_v47  ;;  %v7114_v17 = vunpack.i.l.bf16 %v7113_v47 }
 0x904   : > { %5569 = vrot.lane.b32.xlu1 %v9334_v1, %s7127_s27  ;;  %v5546_v5 = vpack.c.bf16 %v7110_v24, %v7110_v24  ;;  %v5514_v19 = vsel %vm343_vm1, %v7100_v63, %v7109_v35  ;;  %v5515_v9 = vsel %vm343_vm1, %v7109_v35, %v7110_v24 }
 0x905   : > { %v9382_v3 = vpack.c.bf16 %v5514_v19, %v5514_v19  ;;  %v5477_v38 = vsel %vm295_vm2, %v7114_v17, %v7115_v40  ;;  %v9385_v30 = vpack.c.bf16 %v5515_v9, %v5515_v9  ;;  %v5476_v0 = vsel %vm295_vm2, %v7105_v33, %v7114_v17 }
 0x906   : > { %v9393_v62 = vpack.c.bf16 %v5477_v38, %v9292_v7  ;;  %v9396_v45 = vpack.c.bf16 %v5476_v0, %v9274_v53  ;;  %v5545_v28 = vpack.c.bf16 %v7115_v40, %v9294_v46  ;;  %v6666_v53 = vld [vmem:[%s9607_s4 + $0x20] sm:$0xff] }
 0x907   : > { %5573 = vrot.lane.b32.xlu0 %v9343_v6, %s7127_s27 }
 0x908   : > { %5595 = vrot.lane.b32.xlu1 %v9346_v50, %s7127_s27 }
 0x90b   : > { %5597 = vrot.lane.b32.xlu0 %v9353_v48, %s7127_s27 }
 0x90c   : > { %5575 = vrot.lane.b32.xlu1 %v9357_v49, %s7127_s27 }
 0x90f   : > { %5577 = vrot.lane.b32.xlu0 %v9365_v14, %s7127_s27 }
 0x910   : > { %5599 = vrot.lane.b32.xlu1 %v9367_v41, %s7127_s27 }
 0x913   : > { %5605 = vrot.lane.b32.xlu0 %v5546_v5, %s7127_s27 }
 0x914   : > { %5579 = vrot.lane.b32.xlu1 %v9375_v18, %s7127_s27 }
 0x917   : > { %5601 = vrot.lane.b32.xlu0 %v9382_v3, %s7127_s27 }
 0x918   : > { %5603 = vrot.lane.b32.xlu1 %v9385_v30, %s7127_s27 }
 0x91b   : > { %5583 = vrot.lane.b32.xlu0 %v9393_v62, %s7127_s27 }
 0x91c   : > { %5581 = vrot.lane.b32.xlu1 %v9396_v45, %s7127_s27 }
 0x91f   : > { %6122 = vrot.lane.b32.xlu0 %v9303_v54, %s7129_s28 }
 0x920   : > { %5585 = vrot.lane.b32.xlu1 %v5545_v28, %s7127_s27 }
 0x923   : > { %6126 = vrot.lane.b32.xlu0 %v9308_v60, %s7129_s28 }
 0x924   : > { %6124 = vrot.lane.b32.xlu1 %v9323_v13, %s7129_s28 }
 0x927   : > { %6106 = vrot.lane.b32.xlu0 %v9321_v56, %s7129_s28 }
 0x928   : > { %6104 = vrot.lane.b32.xlu1 %v9334_v1, %s7129_s28 }
 0x92b   : > { %6128 = vrot.lane.b32.xlu0 %v9331_v44, %s7129_s28 }
 0x92c   : > { %6102 = vrot.lane.b32.xlu1 %v9313_v8, %s7129_s28 }
 0x92f   : > { %6132 = vrot.lane.b32.xlu0 %v9353_v48, %s7129_s28 }
 0x930   : > { %6130 = vrot.lane.b32.xlu1 %v9346_v50, %s7129_s28 }
 0x933   : > { %6108 = vrot.lane.b32.xlu0 %v9343_v6, %s7129_s28 }
 0x934   : > { %6110 = vrot.lane.b32.xlu1 %v9357_v49, %s7129_s28 }
 0x937   : > { %6112 = vrot.lane.b32.xlu0 %v9365_v14, %s7129_s28 }
 0x938   : > { %6134 = vrot.lane.b32.xlu1 %v9367_v41, %s7129_s28 }
 0x93b   : > { %6140 = vrot.lane.b32.xlu0 %v5546_v5, %s7129_s28 }
 0x93c   : > { %6114 = vrot.lane.b32.xlu1 %v9375_v18, %s7129_s28 }
 0x93f   : > { %6136 = vrot.lane.b32.xlu0 %v9382_v3, %s7129_s28 }
 0x940   : > { %6138 = vrot.lane.b32.xlu1 %v9385_v30, %s7129_s28 }
 0x943   : > { %6118 = vrot.lane.b32.xlu0 %v9393_v62, %s7129_s28 }
 0x944   : > { %6116 = vrot.lane.b32.xlu1 %v9396_v45, %s7129_s28 }
 0x947   : > { %6414 = vperm.xlu0 %6965, %v6666_v53  }
 0x948   : > { %6120 = vrot.lane.b32.xlu1 %v5545_v28, %s7129_s28 }
 0x969   : > { %v5588_v7 = vpop.permute.xlu0 %5587 }
 0x96d   : > { %v5592_v46 = vpop.permute.xlu0 %5591 }
 0x96e   : > { %v5568_v12 = vpop.permute.xlu1 %5567 }
 0x971   : > { %v5572_v26 = vpop.permute.xlu0 %5571 }
 0x972   : > { %v5590_v58 = vpop.permute.xlu1 %5589 }
 0x973   : > { %v5616_v16 = vsel %vm511_vm3, %v5588_v7, %v5590_v58  ;;  %v5617_v57 = vsel %vm511_vm3, %v5590_v58, %v5592_v46 }
 0x974   : > { %v5638_v22 = vsel %vm2126_vm7, %v5616_v16, 0  ;;  %6667 = vmatprep.subr.msk.bf16.mxu1 %vm2126_vm7, %v5617_v57 }
 0x975   : > { %5677 = vmatpush1.bf16.msra.mxu1 %v5638_v22  ;;  %v5594_v52 = vpop.permute.xlu0 %5593 }
 0x976   : > { %v5570_v59 = vpop.permute.xlu1 %5569  ;;  %v5618_v4 = vsel %vm511_vm3, %v5592_v46, %v5594_v52  ;;  %v5872_v46 = vsel %vm2126_vm7, %v9303_v54, 0 }
 0x977   : > { %v5607_v23 = vsel %vm511_vm3, %v5568_v12, %v5570_v59  ;;  %v5608_v27 = vsel %vm511_vm3, %v5570_v59, %v5572_v26  ;;  %v5644_v51 = vsel %vm2126_vm7, %v5618_v4, 0 }
 0x978   : > { %5678 = vmatprep.subr.bf16.mxu1 %v5608_v27 }
 0x979   : > { %5679 = vmatpush1.bf16.msra.mxu1 %v5607_v23  ;;  %v5574_v39 = vpop.permute.xlu0 %5573 }
 0x97a   : > { %v5596_v15 = vpop.permute.xlu1 %5595  ;;  %v5609_v55 = vsel %vm511_vm3, %v5572_v26, %v5574_v39 }
 0x97b   : > { %v5619_v2 = vsel %vm511_vm3, %v5594_v52, %v5596_v15 }
 0x97c   : > { %6669 = vmatprep.subr.msk.bf16.mxu0 %vm2126_vm7, %v5619_v2  ;;  %6668 = vmatmul.mubr.msk.bf16.vlgmr.msra.gmra.mxu1 %vm2122_vm8, %v6664_v11 }
 0x97d   : > { %5718 = vmatpush1.bf16.msra.mxu0 %v5644_v51  ;;  %v5598_v21 = vpop.permute.xlu0 %5597  ;;  %5778 = vmatprep.mubr.bf16.mxu1 %v7128_v42 }
 0x97e   : > { %v5576_v43 = vpop.permute.xlu1 %5575  ;;  %v5620_v37 = vsel %vm511_vm3, %v5596_v15, %v5598_v21 }
 0x97f   : > { %v5610_v31 = vsel %vm511_vm3, %v5574_v39, %v5576_v43  ;;  %v5650_v20 = vsel %vm2126_vm7, %v5620_v37, 0 }
 0x980   : > { %5719 = vmatprep.subr.bf16.mxu0 %v5610_v31 }
 0x981   : > { %5720 = vmatpush1.bf16.msra.mxu0 %v5609_v55  ;;  %v5578_v61 = vpop.permute.xlu0 %5577 }
 0x982   : > { %v5600_v34 = vpop.permute.xlu1 %5599  ;;  %v5611_v33 = vsel %vm511_vm3, %v5576_v43, %v5578_v61 }
 0x983   : > { %v5621_v63 = vsel %vm511_vm3, %v5598_v21, %v5600_v34 }
 0x984   : > { %6671 = vmatprep.subr.msk.bf16.mxu1 %vm2126_vm7, %v5621_v63  ;;  %6670 = vmatmul.mubr.msk.bf16.vlgmr.msra.gmra.mxu0 %vm2122_vm8, %v6664_v11 }
 0x985   : > { %5759 = vmatpush1.bf16.msra.mxu1 %v5650_v20  ;;  %v5606_v32 = vpop.permute.xlu0 %5605  ;;  %5819 = vmatprep.mubr.bf16.mxu0 %v7128_v42 }
 0x986   : > { %v5580_v36 = vpop.permute.xlu1 %5579 }
 0x987   : > { %v5612_v29 = vsel %vm511_vm3, %v5578_v61, %v5580_v36 }
 0x988   : > { %5760 = vmatprep.subr.bf16.mxu1 %v5612_v29 }
 0x989   : > { %5761 = vmatpush1.bf16.msra.mxu1 %v5611_v33  ;;  %v5602_v24 = vpop.permute.xlu0 %5601 }
 0x98a   : > { %v5604_v35 = vpop.permute.xlu1 %5603  ;;  %v5622_v10 = vsel %vm511_vm3, %v5600_v34, %v5602_v24  ;;  %6771 = vmatprep.subr.bf16.mxu1 %v7131_v25 }
 0x98b   : > { %v5624_v47 = vsel %vm511_vm3, %v5604_v35, %v5606_v32  ;;  %v5623_v5 = vsel %vm511_vm3, %v5602_v24, %v5604_v35  ;;  %v5656_v40 = vsel %vm2126_vm7, %v5622_v10, 0 }
 0x98c   : > { %v5662_v17 = vsel %vm2126_vm7, %v5624_v47, 0  ;;  %6672 = vmatmul.mubr.msk.bf16.vlgmr.msra.gmra.mxu1 %vm2122_vm8, %v6664_v11  ;;  %6673 = vmatprep.subr.msk.bf16.mxu0 %vm2126_vm7, %v5623_v5 }
 0x98d   : > { %5800 = vmatpush1.bf16.msra.mxu0 %v5656_v40  ;;  %6772 = vmatpush3.bf16.msra.mxu1 %v5662_v17  ;;  %v5584_v19 = vpop.permute.xlu0 %5583 }
 0x98e   : > { %v5582_v9 = vpop.permute.xlu1 %5581  ;;  %6773 = vmatprep.subr.bf16.mxu1 %v7131_v25  ;;  %6775 = vmatprep.mubr.msk.bf16.mxu1 %vm7132_vm9, %v7131_v25 }
 0x98f   : > { %v5613_v38 = vsel %vm511_vm3, %v5580_v36, %v5582_v9  ;;  %v5614_v0 = vsel %vm511_vm3, %v5582_v9, %v5584_v19 }
 0x990   : > { %5801 = vmatprep.subr.bf16.mxu0 %v5614_v0 }
 0x991   : > { %5802 = vmatpush1.bf16.msra.mxu0 %v5613_v38  ;;  %v6123_v28 = vpop.permute.xlu0 %6122 }
 0x992   : > { %v5586_v53 = vpop.permute.xlu1 %5585  ;;  %6676 = vmatprep.subr.msk.bf16.mxu0 %vm2126_vm7, %v9323_v13  ;;  %v5878_v13 = vsel %vm2126_vm7, %v9308_v60, 0  ;;  %v5884_v60 = vsel %vm2126_vm7, %v9346_v50, 0 }
 0x993   : > { %v5615_v7 = vsel %vm511_vm3, %v5584_v19, %v5586_v53 }
 0x994   : > { %6674 = vmatmul.mubr.msk.bf16.vlgmr.msra.gmra.mxu0 %vm2122_vm8, %v6664_v11  ;;  %6774 = vmatpush3.bf16.msra.mxu1 %v5615_v7 }
 0x995   : > { %5911 = vmatpush1.bf16.msra.mxu0 %v5872_v46  ;;  %6678 = vmatprep.subr.msk.bf16.mxu1 %vm2126_vm7, %v9331_v44  ;;  %v6127_v12 = vpop.permute.xlu0 %6126  ;;  %v6663_v44 = vld [vmem:[%s9606_s3 + $0x24] sm:$0xf] }
 0x996   : > { %v6125_v26 = vpop.permute.xlu1 %6124  ;;  %5912 = vmatprep.subr.bf16.mxu0 %v9334_v1  ;;  %5930 = vmatprep.mubr.bf16.mxu0 %v7128_v42 }
 0x997   : > { %6776 = vmatmul.mubr.msk.bf16.vlgmr.msra.gmra.mxu1 %vm2122_vm8, %v6664_v11 }
 0x998   : > { %5952 = vmatpush1.bf16.msra.mxu1 %v5878_v13  ;;  %5971 = vmatprep.mubr.bf16.mxu1 %v7128_v42 }
 0x999   : > { %5913 = vmatpush1.bf16.msra.mxu0 %v9313_v8  ;;  %5953 = vmatprep.subr.bf16.mxu1 %v9343_v6  ;;  %v9499_v54 = vpop.permute.xlu0 %6106 }
 0x99a   : > { %v6105_v1 = vpop.permute.xlu1 %6104  ;;  %6680 = vmatprep.subr.msk.bf16.mxu0 %vm2126_vm7, %v9353_v48  ;;  %v5890_v48 = vsel %vm2126_vm7, %v9367_v41, 0  ;;  %v5896_v41 = vsel %vm2126_vm7, %v9385_v30, 0 }
 0x99c   : > { %6677 = vmatmul.mubr.msk.bf16.vlgmr.msra.gmra.mxu0 %vm2122_vm8, %v6663_v44  ;;  %5954 = vmatpush1.bf16.msra.mxu1 %v9321_v56 }
 0x99d   : > { %5993 = vmatpush1.bf16.msra.mxu0 %v5884_v60  ;;  %6682 = vmatprep.subr.msk.bf16.mxu1 %vm2126_vm7, %v9382_v3  ;;  %v6129_v8 = vpop.permute.xlu0 %6128  ;;  %v6152_v3 = vsel %vm1105_vm5, %v6125_v26, %v6127_v12 }
 0x99e   : > { %v6103_v6 = vpop.permute.xlu1 %6102  ;;  %5994 = vmatprep.subr.bf16.mxu0 %v9365_v14  ;;  %6012 = vmatprep.mubr.bf16.mxu0 %v7128_v42  ;;  %v6151_v14 = vsel %vm1105_vm5, %v6123_v28, %v6125_v26  ;;  %v6153_v30 = vsel %vm1105_vm5, %v6127_v12, %v6129_v8 }
 0x99f   : > { %6679 = vmatmul.mubr.msk.bf16.vlgmr.msra.gmra.mxu1 %vm2122_vm8, %v6663_v44  ;;  %v6173_v58 = vsel %vm2126_vm7, %v6151_v14, 0  ;;  %v6142_v52 = vsel %vm1105_vm5, %v6103_v6, %v6105_v1  ;;  %v6179_v23 = vsel %vm2126_vm7, %v6153_v30, 0 }
 0x9a0   : > { %6034 = vmatpush1.bf16.msra.mxu1 %v5890_v48  ;;  %6053 = vmatprep.mubr.bf16.mxu1 %v7128_v42 }
 0x9a1   : > { %5995 = vmatpush1.bf16.msra.mxu0 %v9357_v49  ;;  %6035 = vmatprep.subr.bf16.mxu1 %v9396_v45  ;;  %v6133_v56 = vpop.permute.xlu0 %6132 }
 0x9a2   : > { %v6131_v50 = vpop.permute.xlu1 %6130  ;;  %6779 = vmatprep.subr.bf16.mxu0 %v7131_v25 }
 0x9a3   : > { %v6154_v16 = vsel %vm1105_vm5, %v6129_v8, %v6131_v50  ;;  %v6155_v27 = vsel %vm1105_vm5, %v6131_v50, %v6133_v56 }
 0x9a4   : > { %6681 = vmatmul.mubr.msk.bf16.vlgmr.msra.gmra.mxu0 %vm2122_vm8, %v6663_v44  ;;  %6036 = vmatpush1.bf16.msra.mxu1 %v9375_v18  ;;  %v6143_v18 = vsel %vm1105_vm5, %v6105_v1, %v9499_v54  ;;  %v6185_v15 = vsel %vm2126_vm7, %v6155_v27, 0 }
 0x9a5   : > { %6780 = vmatpush3.bf16.msra.mxu0 %v5896_v41  ;;  %6685 = vmatprep.subr.msk.bf16.mxu1 %vm2126_vm7, %v6152_v3  ;;  %v6109_v49 = vpop.permute.xlu0 %6108 }
 0x9a6   : > { %v6111_v45 = vpop.permute.xlu1 %6110  ;;  %6781 = vmatprep.subr.bf16.mxu0 %v7131_v25  ;;  %6783 = vmatprep.mubr.msk.bf16.mxu0 %vm7132_vm9, %v7131_v25  ;;  %v6144_v51 = vsel %vm1105_vm5, %v9499_v54, %v6109_v49 }
 0x9a7   : > { %6683 = vmatmul.mubr.msk.bf16.vlgmr.msra.gmra.mxu1 %vm2122_vm8, %v6663_v44  ;;  %v6145_v39 = vsel %vm1105_vm5, %v6109_v49, %v6111_v45 }
 0x9a8   : > { %6212 = vmatpush1.bf16.msra.mxu1 %v6173_v58  ;;  %6231 = vmatprep.mubr.bf16.mxu1 %v7128_v42 }
 0x9a9   : > { %6782 = vmatpush3.bf16.msra.mxu0 %v9393_v62  ;;  %6213 = vmatprep.subr.bf16.mxu1 %v6143_v18  ;;  %v6113_v57 = vpop.permute.xlu0 %6112  ;;  %v6665_v62 = vld [vmem:[%s9606_s3 + $0x2c] sm:$0xf] }
 0x9aa   : > { %v6135_v22 = vpop.permute.xlu1 %6134  ;;  %6687 = vmatprep.subr.msk.bf16.mxu0 %vm2126_vm7, %v6154_v16  ;;  %v6146_v55 = vsel %vm1105_vm5, %v6111_v45, %v6113_v57 }
 0x9ab   : > { %v6156_v59 = vsel %vm1105_vm5, %v6133_v56, %v6135_v22 }
 0x9ac   : > { %6784 = vmatmul.mubr.msk.bf16.vlgmr.msra.gmra.mxu0 %vm2122_vm8, %v6663_v44  ;;  %6214 = vmatpush1.bf16.msra.mxu1 %v6142_v52 }
 0x9ad   : > { %6253 = vmatpush1.bf16.msra.mxu0 %v6179_v23  ;;  %6689 = vmatprep.subr.msk.bf16.mxu1 %vm2126_vm7, %v6156_v59  ;;  %v6141_v4 = vpop.permute.xlu0 %6140 }
 0x9ae   : > { %v6115_v11 = vpop.permute.xlu1 %6114  ;;  %6254 = vmatprep.subr.bf16.mxu0 %v6145_v39  ;;  %6272 = vmatprep.mubr.bf16.mxu0 %v7128_v42 }
 0x9af   : > { %6686 = vmatmul.mubr.msk.bf16.vlgmr.msra.gmra.mxu1 %vm2122_vm8, %v6665_v62  ;;  %v6147_v2 = vsel %vm1105_vm5, %v6113_v57, %v6115_v11 }
 0x9b0   : > { %6294 = vmatpush1.bf16.msra.mxu1 %v6185_v15  ;;  %6313 = vmatprep.mubr.bf16.mxu1 %v7128_v42 }
 0x9b1   : > { %6255 = vmatpush1.bf16.msra.mxu0 %v6144_v51  ;;  %6295 = vmatprep.subr.bf16.mxu1 %v6147_v2  ;;  %v6137_v21 = vpop.permute.xlu0 %6136 }
 0x9b2   : > { %v6139_v43 = vpop.permute.xlu1 %6138  ;;  %v6157_v31 = vsel %vm1105_vm5, %v6135_v22, %v6137_v21 }
 0x9b3   : > { %v6158_v37 = vsel %vm1105_vm5, %v6137_v21, %v6139_v43  ;;  %v6191_v61 = vsel %vm2126_vm7, %v6157_v31, 0  ;;  %v6159_v34 = vsel %vm1105_vm5, %v6139_v43, %v6141_v4 }
 0x9b4   : > { %6688 = vmatmul.mubr.msk.bf16.vlgmr.msra.gmra.mxu0 %vm2122_vm8, %v6665_v62  ;;  %6296 = vmatpush1.bf16.msra.mxu1 %v6146_v55  ;;  %v6197_v32 = vsel %vm2126_vm7, %v6159_v34, 0 }
 0x9b5   : > { %6691 = vmatprep.subr.msk.bf16.mxu0 %vm2126_vm7, %v6158_v37  ;;  %v6119_v63 = vpop.permute.xlu0 %6118  ;;  %6787 = vmatprep.subr.bf16.mxu1 %v7131_v25 }
 0x9b6   : > { %6335 = vmatpush1.bf16.msra.mxu0 %v6191_v61  ;;  %v6117_v20 = vpop.permute.xlu1 %6116  ;;  %6354 = vmatprep.mubr.bf16.mxu0 %v7128_v42 }
 0x9b7   : > { %v6148_v36 = vsel %vm1105_vm5, %v6115_v11, %v6117_v20  ;;  %6690 = vmatmul.mubr.msk.bf16.vlgmr.msra.gmra.mxu1 %vm2122_vm8, %v6665_v62  ;;  %v6149_v29 = vsel %vm1105_vm5, %v6117_v20, %v6119_v63 }
 0x9b8   : > { %6336 = vmatprep.subr.bf16.mxu0 %v6149_v29  ;;  %6788 = vmatpush3.bf16.msra.mxu1 %v6197_v32 }
 0x9b9   : > { %6789 = vmatprep.subr.bf16.mxu1 %v7131_v25  ;;  %6791 = vmatprep.mubr.msk.bf16.mxu1 %vm7132_vm9, %v7131_v25 }
 0x9ba   : > { %6337 = vmatpush1.bf16.msra.mxu0 %v6148_v36  ;;  %v6121_v33 = vpop.permute.xlu1 %6120 }
 0x9bb   : > { %v6150_v24 = vsel %vm1105_vm5, %v6119_v63, %v6121_v33 }
 0x9bc   : > { %6790 = vmatpush3.bf16.msra.mxu1 %v6150_v24 }
 0x9bd   : > { %6692 = vmatmul.mubr.msk.bf16.vlgmr.msra.gmra.mxu0 %vm2122_vm8, %v6665_v62 }
 0x9bf   : > { %6792 = vmatmul.mubr.msk.bf16.vlgmr.msra.gmra.mxu1 %vm2122_vm8, %v6665_v62 }
 0x9c2   : > { %v6415_v62 = vpop.permute.xlu0 %6414 }
 0xa3c   : > { %v5698_v42 = vpop.f32.mrf.mxu1 }
 0xa3e   : > { %v5700_v35 = vpop.f32.mrf.mxu1 }
 0xa40   : > { %v5702_v10 = vpop.f32.mrf.mxu1 }
 0xa42   : > { %v5703_v47 = vpop.f32.mrf.mxu1 }
 0xa44   : > { %v5739_v5 = vpop.f32.mrf.mxu0 }
 0xa46   : > { %v5741_v40 = vpop.f32.mrf.mxu0 }
 0xa48   : > { %v5743_v17 = vpop.f32.mrf.mxu0 }
 0xa4a   : > { %v5744_v19 = vpop.f32.mrf.mxu0 }
 0xa4c   : > { %v5780_v9 = vpop.f32.mrf.mxu1 }
 0xa4e   : > { %v5782_v38 = vpop.f32.mrf.mxu1 }
 0xa50   : > { %v5784_v25 = vpop.f32.mrf.mxu1 }
 0xa52   : > { %v5785_v0 = vpop.f32.mrf.mxu1 }
 0xa54   : > { %v9576_v28 = vpop.f32.mrf.mxu0 }
 0xa56   : > { %v9578_v53 = vpop.f32.mrf.mxu0 }
 0xa57   : > { %v9580_v7 = vpop.f32.mrf.mxu1 }
 0xa58   : > { %v5825_v46 = vpop.f32.mrf.mxu0 }
 0xa59   : > { %v6777_v12 = vpop.f32.mrf.mxu1 }
 0xa5a   : > { %v5826_v26 = vpop.f32.mrf.mxu0 }
 0xa5b   : > { %v5865_v13 = vpop.f32.mrf.mxu1 }
 0xa5c   : > { %v5932_v54 = vpop.f32.mrf.mxu0 }
 0xa5d   : > { %v6778_v44 = vpop.f32.mrf.mxu1  ;;  %v5933_v57 = vadd.f32 %v5932_v54, %v5698_v42 }
 0xa5e   : > { %v5934_v1 = vpop.f32.mrf.mxu0 }
 0xa5f   : > { %v5973_v60 = vpop.f32.mrf.mxu1  ;;  %v5935_v59 = vadd.f32 %v5934_v1, %v5700_v35 }
 0xa60   : > { %v5936_v8 = vpop.f32.mrf.mxu0  ;;  %v5974_v2 = vadd.f32 %v5973_v60, %v5739_v5 }
 0xa61   : > { %v5975_v6 = vpop.f32.mrf.mxu1 }
 0xa62   : > { %v5937_v48 = vpop.f32.mrf.mxu0  ;;  %v5976_v31 = vadd.f32 %v5975_v6, %v5741_v40 }
 0xa63   : > { %v5977_v56 = vpop.f32.mrf.mxu1 }
 0xa64   : > { %v6014_v50 = vpop.f32.mrf.mxu0 }
 0xa65   : > { %v5978_v14 = vpop.f32.mrf.mxu1  ;;  %v6015_v61 = vadd.f32 %v6014_v50, %v5780_v9 }
 0xa66   : > { %v6016_v3 = vpop.f32.mrf.mxu0 }
 0xa67   : > { %v6055_v41 = vpop.f32.mrf.mxu1  ;;  %v6017_v36 = vadd.f32 %v6016_v3, %v5782_v38 }
 0xa68   : > { %v6018_v49 = vpop.f32.mrf.mxu0  ;;  %v6056_v40 = vadd.f32 %v6055_v41, %v9576_v28 }
 0xa69   : > { %v6057_v45 = vpop.f32.mrf.mxu1 }
 0xa6a   : > { %v6019_v58 = vpop.f32.mrf.mxu0  ;;  %v6058_v38 = vadd.f32 %v6057_v45, %v9578_v53 }
 0xa6b   : > { %v6059_v18 = vpop.f32.mrf.mxu1 }
 0xa6c   : > { %v6096_v30 = vpop.f32.mrf.mxu0 }
 0xa6d   : > { %v6060_v16 = vpop.f32.mrf.mxu1  ;;  %v6097_v25 = vadd.f32 %v6096_v30, %v9580_v7 }
 0xa6e   : > { %v6785_v22 = vpop.f32.mrf.mxu0 }
 0xa6f   : > { %v6233_v52 = vpop.f32.mrf.mxu1 }
 0xa70   : > { %v6403_v23 = vadd.f32 %v6233_v52, %v5933_v57  ;;  %v6099_v27 = vpop.f32.mrf.mxu0 }
 0xa71   : > { %v6235_v4 = vpop.f32.mrf.mxu1 }
 0xa72   : > { %v6417_v39 = vadd.f32 %v6415_v62, %v6403_v23  ;;  %v6404_v11 = vadd.f32 %v6235_v4, %v5935_v59  ;;  %v6786_v15 = vpop.f32.mrf.mxu0 }
 0xa73   : > { %v6237_v51 = vpop.f32.mrf.mxu1 }
 0xa74   : > { %6426 = vst [vmem:[%s9586_s22] sm:$0xff] %v6417_v39  ;;  %v6418_v21 = vadd.f32 %v6415_v62, %v6404_v11  ;;  %v6274_v43 = vpop.f32.mrf.mxu0 }
 0xa75   : > { %v6405_v55 = vadd.f32 %v6274_v43, %v5974_v2  ;;  %v6238_v37 = vpop.f32.mrf.mxu1 }
 0xa76   : > { %6427 = vst [vmem:[%s9586_s22 + $0x8] sm:$0xff] %v6418_v21  ;;  %v6276_v34 = vpop.f32.mrf.mxu0 }
 0xa77   : > { %v6419_v63 = vadd.f32 %v6415_v62, %v6405_v55  ;;  %v6406_v20 = vadd.f32 %v6276_v34, %v5976_v31  ;;  %v6315_v32 = vpop.f32.mrf.mxu1 }
 0xa78   : > { %v6407_v29 = vadd.f32 %v6315_v32, %v6015_v61  ;;  %v6278_v33 = vpop.f32.mrf.mxu0 }
 0xa79   : > { %6428 = vst [vmem:[%s9586_s22 + $0x10] sm:$0xff] %v6419_v63  ;;  %v6420_v24 = vadd.f32 %v6415_v62, %v6406_v20  ;;  %v6317_v42 = vpop.f32.mrf.mxu1 }
 0xa7a   : > { %v6421_v35 = vadd.f32 %v6415_v62, %v6407_v29  ;;  %v6408_v10 = vadd.f32 %v6317_v42, %v6017_v36  ;;  %v6279_v47 = vpop.f32.mrf.mxu0 }
 0xa7b   : > { %6429 = vst [vmem:[%s9586_s22 + $0x18] sm:$0xff] %v6420_v24  ;;  %v6319_v5 = vpop.f32.mrf.mxu1 }
 0xa7c   : > { %6430 = vst [vmem:[%s9586_s22 + $0x20] sm:$0xff] %v6421_v35  ;;  %v6422_v17 = vadd.f32 %v6415_v62, %v6408_v10 }
 0xa7d   : > { %v6356_v19 = vpop.f32.mrf.mxu0  ;;  %v6320_v9 = vpop.f32.mrf.mxu1 }
 0xa7e   : > { %6431 = vst [vmem:[%s9586_s22 + $0x28] sm:$0xff] %v6422_v17  ;;  %v6409_v0 = vadd.f32 %v6356_v19, %v6056_v40 }
 0xa7f   : > { %v6358_v46 = vpop.f32.mrf.mxu0  ;;  %v6397_v12 = vpop.f32.mrf.mxu1 }
 0xa80   : > { %v6423_v26 = vadd.f32 %v6415_v62, %v6409_v0  ;;  %v6410_v13 = vadd.f32 %v6358_v46, %v6058_v38  ;;  %v6411_v54 = vadd.f32 %v6397_v12, %v6097_v25 }
 0xa81   : > { %v6360_v44 = vpop.f32.mrf.mxu0  ;;  %v6793_v28 = vpop.f32.mrf.mxu1 }
 0xa82   : > { %6432 = vst [vmem:[%s9586_s22 + $0x30] sm:$0xff] %v6423_v26  ;;  %v6424_v1 = vadd.f32 %v6415_v62, %v6410_v13  ;;  %v6425_v60 = vadd.f32 %v6415_v62, %v6411_v54 }
 0xa83   : > { %v6361_v8 = vpop.f32.mrf.mxu0  ;;  %v6400_v6 = vpop.f32.mrf.mxu1 }
 0xa84   : > { %6433 = vst [vmem:[%s9586_s22 + $0x38] sm:$0xff] %v6424_v1  ;;  %6434 = vst [vmem:[%s9586_s22 + $0x40] sm:$0xff] %v6425_v60 }
 0xa85   : > { %v6794_v53 = vpop.f32.mrf.mxu1 }
 0xa86 PF: > { %s15_s18 = sadd.s32 1, %s7122_s18  }
 0xa87   : > { %p12_p4 = scmp.ge.s32.totalorder %s15_s18, 4  }
 0xa89   :  { %14 = sbr.rel (!%p12_p4) target bundleno = 1 (0x1), region = 91 }

</bundles_post_ra>
